<compile_context>
chip_gen: v7x
topology: tpu7x:2x2x1
jax: 0.10.0
libtpu: 0.0.40
codegen_flags: <defaults>
</compile_context>

<pallas_src>
import functools
import math

import jax
import jax.numpy as jnp
from jax.experimental import pallas as pl
from jax.experimental.pallas import tpu as pltpu


def _round_up(x, m):
    return (x + m - 1) // m * m


def _pick_tile(rows, tile_m):
    """Row tile: as large as requested, 8-aligned, and >=2 grid steps when possible."""
    rows8 = _round_up(rows, 8)
    tm = min(tile_m, rows8)
    if rows8 // tm < 2 and rows8 >= 16:          # keep both v7x TensorCores busy
        tm = _round_up(rows8 // 2, 8)
    return tm


# --------------------------- fused multi-layer MLP ---------------------------

def _make_mlp_kernel(n_layers, final_act, has_scale):
    def kernel(*refs):
        x_ref = refs[0]
        scale_ref = refs[1] if has_scale else None
        base = 2 if has_scale else 1
        o_ref = refs[-1]
        x = x_ref[...]
        for li in range(n_layers):
            w_ref = refs[base + 2 * li]
            b_ref = refs[base + 2 * li + 1]
            x = jnp.dot(x.astype(w_ref.dtype), w_ref[...],
                        preferred_element_type=jnp.float32) + b_ref[...]
            if li < n_layers - 1 or final_act == "relu":
                x = jnp.maximum(x, 0.0)
        if has_scale:
            x = x * scale_ref[...]
        o_ref[...] = x.astype(o_ref.dtype)
    return kernel


def fused_mlp(x, layers, final_act="none", scale=None, tile_m=512,
              compute_dtype=jnp.bfloat16, out_dtype=None):
    """Whole (Linear [+ReLU])* stack in ONE pallas_call, weights resident in VMEM.

    Matmul operands are bf16 (f32 accumulation); biases stay f32.  Rows are tiled and
    padded to a multiple of the tile; the tile is halved if needed so the grid always has
    >=2 parallel steps (v7x dual TC).  Optional `scale` (rows,1) is multiplied into the
    output before the store (used to fuse the adjacency weighting into the edge MLP).
    """
    rows, d_in = x.shape
    n_out = layers[-1][0].shape[1]
    out_dtype = out_dtype or compute_dtype

    tm = _pick_tile(rows, tile_m)
    rows_p = _round_up(rows, tm)

    x = x.astype(compute_dtype)
    if rows_p != rows:
        x = jnp.pad(x, ((0, rows_p - rows), (0, 0)))

    args = [x]
    in_specs = [pl.BlockSpec((tm, d_in), lambda i: (i, 0))]
    if scale is not None:
        s = scale
        if rows_p != rows:
            s = jnp.pad(s, ((0, rows_p - rows), (0, 0)))
        args.append(s)
        in_specs.append(pl.BlockSpec((tm, 1), lambda i: (i, 0)))
    for (w, b) in layers:
        args.extend([w.astype(compute_dtype), b])
        in_specs.append(pl.BlockSpec(w.shape, lambda i: (0, 0)))
        in_specs.append(pl.BlockSpec(b.shape, lambda i: (0, 0)))

    out = pl.pallas_call(
        _make_mlp_kernel(len(layers), final_act, scale is not None),
        out_shape=jax.ShapeDtypeStruct((rows_p, n_out), out_dtype),
        grid_spec=pltpu.PrefetchScalarGridSpec(
            num_scalar_prefetch=0,
            grid=(rows_p // tm,),
            in_specs=in_specs,
            out_specs=pl.BlockSpec((tm, n_out), lambda i: (i, 0)),
        ),
        compiler_params=pltpu.CompilerParams(dimension_semantics=("parallel",)),
    )(*args)
    return out[:rows] if rows_p != rows else out


# ---------------- fused message aggregation + GRU update (per layer) ----------------

def _prop_kernel(gf_ref, g_ref, wh_ref, h_ref, mask_ref,
                 bwh_ref, wih_ref, whh_ref, bih_ref, bhh_ref, wwh_ref,
                 h_out_ref, whn_out_ref):
    f32 = jnp.float32
    Bb, N, H = h_ref.shape
    M = wh_ref.shape[2]

    gf = gf_ref[...]            # (Bb, N, N*C)  bf16, g-weighted edge features (lane-dense K)
    wh = wh_ref[...]            # (Bb, N*C, M)  bf16, folded last-edge-layer contraction
    gadj = g_ref[...]           # (Bb, N, N)    bf16 adjacency
    h3 = h_ref[...]             # (Bb, N, H)    bf16
    mask = mask_ref[...]        # (Bb*N, 1)     f32

    # ---- message aggregation entirely on the MXU ----
    msg3 = jnp.einsum('bik,bkm->bim', gf, wh, preferred_element_type=f32)      # (Bb,N,M)
    # bias of the folded layer:  sum_j g_ij (b4 . h_j)  ==  (g @ h) @ b_wh
    gh3 = jnp.einsum('bij,bjh->bih', gadj, h3, preferred_element_type=f32)     # (Bb,N,H)
    msg = msg3.reshape(Bb * N, M) + jnp.dot(
        gh3.reshape(Bb * N, H).astype(jnp.bfloat16), bwh_ref[...],
        preferred_element_type=f32)                                            # (Bb*N, M)

    # ---- GRU update, rows merged across the graphs of the block ----
    # per-gate weights (PyTorch order r|z|n) -> no 32-lane slicing inside the kernel
    h2 = h3.reshape(Bb * N, H)
    msg_b = msg.astype(jnp.bfloat16)

    def gate(x, w_ref, b_ref, i):
        return jnp.dot(x, w_ref[i], preferred_element_type=f32) + b_ref[i]

    r = jax.nn.sigmoid(gate(msg_b, wih_ref, bih_ref, 0) + gate(h2, whh_ref, bhh_ref, 0))
    z = jax.nn.sigmoid(gate(msg_b, wih_ref, bih_ref, 1) + gate(h2, whh_ref, bhh_ref, 1))
    n = jnp.tanh(gate(msg_b, wih_ref, bih_ref, 2) + r * gate(h2, whh_ref, bhh_ref, 2))
    h_new = ((1.0 - z) * n + z * h2.astype(f32)) * mask
    h_new_b = h_new.astype(h_out_ref.dtype)
    h_out_ref[...] = h_new_b.reshape(Bb, N, H)

    # ---- next layer's folded contraction as a lane-dense (Bb*N, C*M) second output ----
    # (computed once more than needed on the last layer; trivial FLOPs, keeps code simple)
    whn_out_ref[...] = jnp.dot(h_new_b, wwh_ref[...],
                               preferred_element_type=f32).astype(whn_out_ref.dtype)


def propagate(gf, g, wh, h_t, mask2, b_wh, wih_g, whh_g, bih_g, bhh_g, w_wh,
              graphs_per_block):
    B, N, NC = gf.shape
    M = wh.shape[2]
    H = h_t.shape[2]
    CM = w_wh.shape[1]
    Bb = graphs_per_block

    h_next, wh_next = pl.pallas_call(
        _prop_kernel,
        out_shape=(jax.ShapeDtypeStruct((B, N, H), h_t.dtype),
                   jax.ShapeDtypeStruct((B * N, CM), h_t.dtype)),
        grid_spec=pltpu.PrefetchScalarGridSpec(
            num_scalar_prefetch=0,
            grid=(B // Bb,),
            in_specs=[
                pl.BlockSpec((Bb, N, NC), lambda b: (b, 0, 0)),
                pl.BlockSpec((Bb, N, N), lambda b: (b, 0, 0)),
                pl.BlockSpec((Bb, NC, M), lambda b: (b, 0, 0)),
                pl.BlockSpec((Bb, N, H), lambda b: (b, 0, 0)),
                pl.BlockSpec((Bb * N, 1), lambda b: (b, 0)),
                pl.BlockSpec(b_wh.shape, lambda b: (0, 0)),
                pl.BlockSpec(wih_g.shape, lambda b: (0, 0, 0)),
                pl.BlockSpec(whh_g.shape, lambda b: (0, 0, 0)),
                pl.BlockSpec(bih_g.shape, lambda b: (0, 0, 0)),
                pl.BlockSpec(bhh_g.shape, lambda b: (0, 0, 0)),
                pl.BlockSpec(w_wh.shape, lambda b: (0, 0)),
            ],
            out_specs=(pl.BlockSpec((Bb, N, H), lambda b: (b, 0, 0)),
                       pl.BlockSpec((Bb * N, CM), lambda b: (b, 0))),
        ),
        compiler_params=pltpu.CompilerParams(dimension_semantics=("parallel",)),
    )(gf, g, wh, h_t, mask2, b_wh, wih_g, whh_g, bih_g, bhh_g, w_wh)
    return h_next, wh_next


# ------------------------------ fused readout --------------------------------

def _readout_kernel(h0_ref, ht_ref, mask_ref, *refs):
    (wia, wib, bi1, wi2, bi2, wi3, bi3, wi4, bi4,
     wj1, bj1, wj2, bj2, wj3, bj3, wj4, bj4, o_ref) = refs
    h0 = h0_ref[...]      # (tm, H) bf16
    ht = ht_ref[...]      # (tm, H) bf16
    mask = mask_ref[...]  # (tm, 1) f32

    def lin(x, w_ref, b_ref, relu=True):
        y = jnp.dot(x.astype(w_ref.dtype), w_ref[...],
                    preferred_element_type=jnp.float32) + b_ref[...]
        return jnp.maximum(y, 0.0) if relu else y

    # i-NNet on [h0, hT]: first-layer weight split, concat never materialized.
    x = (jnp.dot(h0, wia[...], preferred_element_type=jnp.float32)
         + jnp.dot(ht, wib[...], preferred_element_type=jnp.float32) + bi1[...])
    x = jnp.maximum(x, 0.0)
    x = lin(x, wi2, bi2)
    x = lin(x, wi3, bi3)
    gate = jax.nn.sigmoid(lin(x, wi4, bi4, relu=False))        # (tm, L)

    y = lin(ht, wj1, bj1)
    y = lin(y, wj2, bj2)
    y = lin(y, wj3, bj3)
    val = lin(y, wj4, bj4, relu=False)                          # (tm, L)

    o_ref[...] = (gate * val * mask).astype(o_ref.dtype)        # per-node contribution


def readout(h0_2, ht_2, mask2, wia, wib, bi1, i_rest, j_layers,
            compute_dtype=jnp.bfloat16, tile_m=256):
    rows, H = h0_2.shape
    L = j_layers[-1][0].shape[1]
    cd = compute_dtype

    tm = _pick_tile(rows, tile_m)
    rows_p = _round_up(rows, tm)

    def padrows(a):
        return jnp.pad(a, ((0, rows_p - rows), (0, 0))) if rows_p != rows else a

    h0_2 = padrows(h0_2.astype(cd))
    ht_2 = padrows(ht_2.astype(cd))
    mask2 = padrows(mask2)

    weights = [wia.astype(cd), wib.astype(cd), bi1]
    for (w, b) in list(i_rest) + list(j_layers):
        weights.extend([w.astype(cd), b])

    in_specs = [
        pl.BlockSpec((tm, H), lambda i: (i, 0)),
        pl.BlockSpec((tm, H), lambda i: (i, 0)),
        pl.BlockSpec((tm, 1), lambda i: (i, 0)),
    ] + [pl.BlockSpec(w.shape, lambda i: (0, 0)) for w in weights]

    contrib = pl.pallas_call(
        _readout_kernel,
        out_shape=jax.ShapeDtypeStruct((rows_p, L), jnp.float32),
        grid_spec=pltpu.PrefetchScalarGridSpec(
            num_scalar_prefetch=0,
            grid=(rows_p // tm,),
            in_specs=in_specs,
            out_specs=pl.BlockSpec((tm, L), lambda i: (i, 0)),
        ),
        compiler_params=pltpu.CompilerParams(dimension_semantics=("parallel",)),
    )(h0_2, ht_2, mask2, *weights)
    return contrib[:rows]


# ------------------------------ Model glue ----------------------------------

def mpnn_forward(params, g, h_in, e, *, hidden, message, n_layers,
                 compute_dtype=jnp.bfloat16):
    B, N, _ = g.shape
    Fn = h_in.shape[2]
    H, M = hidden, message
    cd = compute_dtype

    # pad node features with zeros up to the hidden state size
    h0 = jnp.concatenate([h_in, jnp.zeros((B, N, H - Fn), h_in.dtype)], axis=2)
    # "virtual node" mask: sum(h_in, feature) > 0
    node_mask = (jnp.sum(h_in, axis=2, keepdims=True) > 0).astype(jnp.float32)  # (B,N,1)
    mask2 = node_mask.reshape(B * N, 1)

    # Edge NNet (weight-tied, e constant): 128-wide pre-final features with the
    # adjacency weighting g fused into the kernel epilogue -> gf directly.
    edge_layers = params["edge_nn"]
    C = edge_layers[-1][0].shape[0]                                              # 128
    e_flat = e.reshape(B * N * N, e.shape[3])
    g_flat = g.reshape(B * N * N, 1).astype(jnp.float32)
    gf_flat = fused_mlp(e_flat, edge_layers[:-1], final_act="relu",
                        scale=g_flat, tile_m=512, compute_dtype=cd)              # (B*N*N, C)
    gf = gf_flat.reshape(B, N, N * C)                 # free row-major regroup (lane-dense K)

    # Fold the last edge-NN layer algebraically into per-node contractions.
    w4, b4 = edge_layers[-1]                                                     # (C, M*H), (1, M*H)
    w_wh = jnp.transpose(w4.reshape(C, M, H), (2, 0, 1)).reshape(H, C * M).astype(cd)   # (H, C*M)
    b_wh = b4.reshape(M, H).T.astype(cd)                                         # (H, M)

    # GRU weights pre-split per gate (r|z|n) -> no 32-lane slicing inside the kernel.
    wih, whh, bih, bhh = params["gru"]
    wih_g = jnp.stack([wih[:, 0:H], wih[:, H:2 * H], wih[:, 2 * H:3 * H]]).astype(cd)   # (3,M,H)
    whh_g = jnp.stack([whh[:, 0:H], whh[:, H:2 * H], whh[:, 2 * H:3 * H]]).astype(cd)   # (3,H,H)
    bih_g = jnp.stack([bih[:, 0:H], bih[:, H:2 * H], bih[:, 2 * H:3 * H]])              # (3,1,H)
    bhh_g = jnp.stack([bhh[:, 0:H], bhh[:, H:2 * H], bhh[:, 2 * H:3 * H]])              # (3,1,H)

    g_b = g.astype(cd)
    h_t = h0.astype(cd)

    # Initial folded contraction wh(h0); subsequent layers get wh as a fused second
    # output of the propagate kernel (no per-layer extra pallas_call / HBM round trip).
    zero_bias = jnp.zeros((1, C * M), jnp.float32)
    wh_flat = fused_mlp(h_t.reshape(B * N, H), [(w_wh, zero_bias)],
                        final_act="none", compute_dtype=cd)                       # (B*N, C*M)

    # graphs per propagate block: merge GRU rows but keep >=2 parallel grid steps (v7x).
    Bb = max(1, min(8, B // 2))
    while B % Bb != 0:
        Bb -= 1

    for _ in range(n_layers):
        wh = wh_flat.reshape(B, N * C, M)             # free row-major regroup at JAX level
        h_t, wh_flat = propagate(gf, g_b, wh, h_t, mask2, b_wh,
                                 wih_g, whh_g, bih_g, bhh_g, w_wh, Bb)

    # Readout row-tiled over the B*N node rows; per-graph node sum at the JAX level.
    i_layers = params["i_nn"]
    j_layers = params["j_nn"]
    wi1, bi1 = i_layers[0]
    wia, wib = wi1[:H], wi1[H:]
    contrib = readout(h0.reshape(B * N, H), h_t.reshape(B * N, H), mask2,
                      wia, wib, bi1, i_layers[1:], j_layers, compute_dtype=cd)    # (B*N, L)
    return contrib.reshape(B, N, -1).sum(axis=1)


# --------------------------- pure-JAX reference ------------------------------

def mpnn_reference(params, g, h_in, e, *, hidden, message, n_layers):
    B, N, _ = g.shape
    H, M = hidden, message
    Fn = h_in.shape[2]
    hp = jax.lax.Precision.HIGHEST

    h0 = jnp.concatenate([h_in, jnp.zeros((B, N, H - Fn), h_in.dtype)], axis=2)
    mask = (jnp.sum(h_in, axis=2, keepdims=True) > 0).astype(h_in.dtype)

    x = e.reshape(-1, e.shape[3])
    for (w, b) in params["edge_nn"][:-1]:
        x = jax.nn.relu(jnp.dot(x, w, precision=hp) + b)
    w4, b4 = params["edge_nn"][-1]
    a = (jnp.dot(x, w4, precision=hp) + b4).reshape(B, N, N, M, H)

    wih, whh, bih, bhh = params["gru"]
    h_t = h0
    for _ in range(n_layers):
        msg = jnp.einsum('bijmh,bjh->bijm', a, h_t, precision=hp)
        msg = jnp.einsum('bij,bijm->bim', g, msg, precision=hp)
        gi = jnp.dot(msg.reshape(-1, M), wih, precision=hp) + bih
        gh = jnp.dot(h_t.reshape(-1, H), whh, precision=hp) + bhh
        r = jax.nn.sigmoid(gi[:, :H] + gh[:, :H])
        z = jax.nn.sigmoid(gi[:, H:2 * H] + gh[:, H:2 * H])
        n = jnp.tanh(gi[:, 2 * H:] + r * gh[:, 2 * H:])
        h_new = (1.0 - z) * n + z * h_t.reshape(-1, H)
        h_t = mask * h_new.reshape(B, N, H)

    def run_mlp(x, layers):
        for (w, b) in layers[:-1]:
            x = jax.nn.relu(jnp.dot(x, w, precision=hp) + b)
        w, b = layers[-1]
        return jnp.dot(x, w, precision=hp) + b

    cat = jnp.concatenate([h0, h_t], axis=2).reshape(B * N, 2 * H)
    i_out = run_mlp(cat, params["i_nn"]).reshape(B, N, -1)
    j_out = run_mlp(h_t.reshape(B * N, H), params["j_nn"]).reshape(B, N, -1)
    return jnp.sum(jax.nn.sigmoid(i_out) * j_out * mask, axis=1)


# --------------------------- deterministic init ------------------------------

def init_linear(key, fan_in, fan_out):
    kw, kb = jax.random.split(key)
    bound = 1.0 / math.sqrt(fan_in)
    w = jax.random.uniform(kw, (fan_in, fan_out), jnp.float32, -bound, bound)
    b = jax.random.uniform(kb, (1, fan_out), jnp.float32, -bound, bound)
    return w, b


def init_mlp(key, dims):
    keys = jax.random.split(key, len(dims) - 1)
    return [init_linear(k, dims[i], dims[i + 1]) for i, k in enumerate(keys)]


def init_gru(key, input_size, hidden_size):
    k1, k2, k3, k4 = jax.random.split(key, 4)
    bound = 1.0 / math.sqrt(hidden_size)
    wih = jax.random.uniform(k1, (input_size, 3 * hidden_size), jnp.float32, -bound, bound)
    whh = jax.random.uniform(k2, (hidden_size, 3 * hidden_size), jnp.float32, -bound, bound)
    bih = jax.random.uniform(k3, (1, 3 * hidden_size), jnp.float32, -bound, bound)
    bhh = jax.random.uniform(k4, (1, 3 * hidden_size), jnp.float32, -bound, bound)
    return wih, whh, bih, bhh


# --------------------------------- main --------------------------------------

if __name__ == "__main__":
    B, N = 2, 8
    node_feat, edge_feat = 6, 4
    hidden, message = 32, 32
    n_layers = 2
    l_target = 6
    nnet_hidden = (128, 256, 128)   # NNet default hlayers

    key = jax.random.PRNGKey(0)
    k_e_nn, k_i_nn, k_j_nn, k_gru, k_g, k_h, k_e = jax.random.split(key, 7)

    params = {
        "edge_nn": init_mlp(k_e_nn, [edge_feat, *nnet_hidden, message * hidden]),
        "i_nn":    init_mlp(k_i_nn, [2 * hidden, *nnet_hidden, l_target]),
        "j_nn":    init_mlp(k_j_nn, [hidden, *nnet_hidden, l_target]),
        "gru":     init_gru(k_gru, message, hidden),
    }

    # symmetric 0/1 adjacency, zero diagonal
    gu = jax.random.uniform(k_g, (B, N, N), jnp.float32)
    gsym = 0.5 * (gu + jnp.swapaxes(gu, 1, 2))
    g = (gsym > 0.5).astype(jnp.float32) * (1.0 - jnp.eye(N, dtype=jnp.float32)[None])

    # node features (last 2 nodes of each graph are zero "virtual" nodes)
    h_in = jax.random.uniform(k_h, (B, N, node_feat), jnp.float32, 0.1, 1.0)
    valid = (jnp.arange(N) < N - 2).astype(jnp.float32)[None, :, None]
    h_in = h_in * valid

    # symmetric edge features
    e = jax.random.normal(k_e, (B, N, N, edge_feat), jnp.float32)
    e = 0.5 * (e + jnp.transpose(e, (0, 2, 1, 3)))

    fwd = jax.jit(functools.partial(
        mpnn_forward, hidden=hidden, message=message, n_layers=n_layers))
    out = jax.block_until_ready(fwd(params, g, h_in, e))

    assert out.shape == (B, l_target), out.shape
    assert bool(jnp.all(jnp.isfinite(out)))

    # numerical self-check against the un-fused f32 pure-JAX reference
    # (the kernels use bf16 matmul operands with f32 accumulation, so the tolerance
    #  allows for bf16 rounding through the MLP/GRU/readout chain)
    ref = jax.block_until_ready(mpnn_reference(
        params, g, h_in, e, hidden=hidden, message=message, n_layers=n_layers))
    err = float(jnp.max(jnp.abs(out - ref)))
    scale = float(jnp.max(jnp.abs(ref)))
    assert err <= 3e-2 * max(1.0, scale), (err, scale)

    print("KERNEL_OK")
</pallas_src>

<mosaic_0001>
module attributes {stable_mosaic.version = 11 : i64} {
  func.func @kernel(%arg0: i32, %arg1: memref<64x4xbf16, #tpu.memory_space<vmem>>, %arg2: memref<64x1xf32, #tpu.memory_space<vmem>>, %arg3: memref<4x128xbf16, #tpu.memory_space<vmem>>, %arg4: memref<1x128xf32, #tpu.memory_space<vmem>>, %arg5: memref<128x256xbf16, #tpu.memory_space<vmem>>, %arg6: memref<1x256xf32, #tpu.memory_space<vmem>>, %arg7: memref<256x128xbf16, #tpu.memory_space<vmem>>, %arg8: memref<1x128xf32, #tpu.memory_space<vmem>>, %arg9: memref<64x128xbf16, #tpu.memory_space<vmem>>) attributes {dimension_semantics = [#tpu.dimension_semantics<parallel>], iteration_bounds = array<i64: 2>, scalar_prefetch = 0 : i64, scratch_operands = 0 : i64, tpu.core_type = #tpu.core_type<tc>, window_params = [{transform_indices = @transform_0, window_bounds = array<i64: 64, 4>}, {transform_indices = @transform_1, window_bounds = array<i64: 64, 1>}, {pipeline_mode = #tpu.pipeline_mode<synchronous>, transform_indices = @transform_2, window_bounds = array<i64: 4, 128>}, {pipeline_mode = #tpu.pipeline_mode<synchronous>, transform_indices = @transform_3, window_bounds = array<i64: 1, 128>}, {pipeline_mode = #tpu.pipeline_mode<synchronous>, transform_indices = @transform_4, window_bounds = array<i64: 128, 256>}, {pipeline_mode = #tpu.pipeline_mode<synchronous>, transform_indices = @transform_5, window_bounds = array<i64: 1, 256>}, {pipeline_mode = #tpu.pipeline_mode<synchronous>, transform_indices = @transform_6, window_bounds = array<i64: 256, 128>}, {pipeline_mode = #tpu.pipeline_mode<synchronous>, transform_indices = @transform_7, window_bounds = array<i64: 1, 128>}, {transform_indices = @transform_8, window_bounds = array<i64: 64, 128>}]} {
    %c0 = arith.constant 0 : index
    %c0_0 = arith.constant 0 : index
    %0 = vector.load %arg1[%c0, %c0_0] : memref<64x4xbf16, #tpu.memory_space<vmem>>, vector<64x4xbf16>
    %c0_1 = arith.constant 0 : index
    %c0_2 = arith.constant 0 : index
    %1 = vector.load %arg3[%c0_1, %c0_2] : memref<4x128xbf16, #tpu.memory_space<vmem>>, vector<4x128xbf16>
    %cst = arith.constant dense<0.000000e+00> : vector<64x128xf32>
    %2 = tpu.matmul %0, %1, %cst {dimension_numbers = #tpu.dot_dimension_numbers<[1], [0], [0], [1], [0, 0, 1, 1], [], []>} : vector<64x4xbf16>, vector<4x128xbf16>, vector<64x128xf32> -> vector<64x128xf32>
    %c0_3 = arith.constant 0 : index
    %c0_4 = arith.constant 0 : index
    %3 = vector.load %arg4[%c0_3, %c0_4] : memref<1x128xf32, #tpu.memory_space<vmem>>, vector<1x128xf32>
    %4 = vector.broadcast %3 : vector<1x128xf32> to vector<64x128xf32>
    %5 = arith.addf %2, %4 : vector<64x128xf32>
    %cst_5 = arith.constant 0.000000e+00 : f32
    %6 = vector.broadcast %cst_5 : f32 to vector<64x128xf32>
    %7 = arith.maximumf %5, %6 : vector<64x128xf32>
    %8 = arith.truncf %7 : vector<64x128xf32> to vector<64x128xbf16>
    %c0_6 = arith.constant 0 : index
    %c0_7 = arith.constant 0 : index
    %9 = vector.load %arg5[%c0_6, %c0_7] : memref<128x256xbf16, #tpu.memory_space<vmem>>, vector<128x256xbf16>
    %cst_8 = arith.constant dense<0.000000e+00> : vector<64x256xf32>
    %10 = tpu.matmul %8, %9, %cst_8 {dimension_numbers = #tpu.dot_dimension_numbers<[1], [0], [0], [1], [0, 0, 1, 1], [], []>} : vector<64x128xbf16>, vector<128x256xbf16>, vector<64x256xf32> -> vector<64x256xf32>
    %c0_9 = arith.constant 0 : index
    %c0_10 = arith.constant 0 : index
    %11 = vector.load %arg6[%c0_9, %c0_10] : memref<1x256xf32, #tpu.memory_space<vmem>>, vector<1x256xf32>
    %12 = vector.broadcast %11 : vector<1x256xf32> to vector<64x256xf32>
    %13 = arith.addf %10, %12 : vector<64x256xf32>
    %cst_11 = arith.constant 0.000000e+00 : f32
    %14 = vector.broadcast %cst_11 : f32 to vector<64x256xf32>
    %15 = arith.maximumf %13, %14 : vector<64x256xf32>
    %16 = arith.truncf %15 : vector<64x256xf32> to vector<64x256xbf16>
    %c0_12 = arith.constant 0 : index
    %c0_13 = arith.constant 0 : index
    %17 = vector.load %arg7[%c0_12, %c0_13] : memref<256x128xbf16, #tpu.memory_space<vmem>>, vector<256x128xbf16>
    %cst_14 = arith.constant dense<0.000000e+00> : vector<64x128xf32>
    %18 = tpu.matmul %16, %17, %cst_14 {dimension_numbers = #tpu.dot_dimension_numbers<[1], [0], [0], [1], [0, 0, 1, 1], [], []>} : vector<64x256xbf16>, vector<256x128xbf16>, vector<64x128xf32> -> vector<64x128xf32>
    %c0_15 = arith.constant 0 : index
    %c0_16 = arith.constant 0 : index
    %19 = vector.load %arg8[%c0_15, %c0_16] : memref<1x128xf32, #tpu.memory_space<vmem>>, vector<1x128xf32>
    %20 = vector.broadcast %19 : vector<1x128xf32> to vector<64x128xf32>
    %21 = arith.addf %18, %20 : vector<64x128xf32>
    %cst_17 = arith.constant 0.000000e+00 : f32
    %22 = vector.broadcast %cst_17 : f32 to vector<64x128xf32>
    %23 = arith.maximumf %21, %22 : vector<64x128xf32>
    %c0_18 = arith.constant 0 : index
    %c0_19 = arith.constant 0 : index
    %24 = vector.load %arg2[%c0_18, %c0_19] : memref<64x1xf32, #tpu.memory_space<vmem>>, vector<64x1xf32>
    %25 = vector.broadcast %24 : vector<64x1xf32> to vector<64x128xf32>
    %26 = arith.mulf %23, %25 : vector<64x128xf32>
    %27 = arith.truncf %26 : vector<64x128xf32> to vector<64x128xbf16>
    %c0_20 = arith.constant 0 : index
    %c0_21 = arith.constant 0 : index
    %28 = vector.load %arg9[%c0_20, %c0_21] : memref<64x128xbf16, #tpu.memory_space<vmem>>, vector<64x128xbf16>
    tpu.vector_store %arg9[%c0_20, %c0_21], %27 {strides = array<i32>} : memref<64x128xbf16, #tpu.memory_space<vmem>>, vector<64x128xbf16>,
    return
  }
  func.func @transform_0(%arg0: i32) -> (i32, i32) {
    %c0_i32 = arith.constant 0 : i32
    %c0_i32_0 = arith.constant 0 : i32
    return %arg0, %c0_i32 : i32, i32
  }
  func.func @transform_1(%arg0: i32) -> (i32, i32) {
    %c0_i32 = arith.constant 0 : i32
    %c0_i32_0 = arith.constant 0 : i32
    return %arg0, %c0_i32 : i32, i32
  }
  func.func @transform_2(%arg0: i32) -> (i32, i32) {
    %c0_i32 = arith.constant 0 : i32
    %c0_i32_0 = arith.constant 0 : i32
    %c0_i32_1 = arith.constant 0 : i32
    return %c0_i32, %c0_i32_0 : i32, i32
  }
  func.func @transform_3(%arg0: i32) -> (i32, i32) {
    %c0_i32 = arith.constant 0 : i32
    %c0_i32_0 = arith.constant 0 : i32
    %c0_i32_1 = arith.constant 0 : i32
    return %c0_i32, %c0_i32_0 : i32, i32
  }
  func.func @transform_4(%arg0: i32) -> (i32, i32) {
    %c0_i32 = arith.constant 0 : i32
    %c0_i32_0 = arith.constant 0 : i32
    %c0_i32_1 = arith.constant 0 : i32
    return %c0_i32, %c0_i32_0 : i32, i32
  }
  func.func @transform_5(%arg0: i32) -> (i32, i32) {
    %c0_i32 = arith.constant 0 : i32
    %c0_i32_0 = arith.constant 0 : i32
    %c0_i32_1 = arith.constant 0 : i32
    return %c0_i32, %c0_i32_0 : i32, i32
  }
  func.func @transform_6(%arg0: i32) -> (i32, i32) {
    %c0_i32 = arith.constant 0 : i32
    %c0_i32_0 = arith.constant 0 : i32
    %c0_i32_1 = arith.constant 0 : i32
    return %c0_i32, %c0_i32_0 : i32, i32
  }
  func.func @transform_7(%arg0: i32) -> (i32, i32) {
    %c0_i32 = arith.constant 0 : i32
    %c0_i32_0 = arith.constant 0 : i32
    %c0_i32_1 = arith.constant 0 : i32
    return %c0_i32, %c0_i32_0 : i32, i32
  }
  func.func @transform_8(%arg0: i32) -> (i32, i32) {
    %c0_i32 = arith.constant 0 : i32
    %c0_i32_0 = arith.constant 0 : i32
    return %arg0, %c0_i32 : i32, i32
  }
}

module attributes {stable_mosaic.version = 11 : i64} {
  func.func @kernel(%arg0: i32, %arg1: memref<8x32xbf16, #tpu.memory_space<vmem>>, %arg2: memref<32x4096xbf16, #tpu.memory_space<vmem>>, %arg3: memref<1x4096xf32, #tpu.memory_space<vmem>>, %arg4: memref<8x4096xbf16, #tpu.memory_space<vmem>>) attributes {dimension_semantics = [#tpu.dimension_semantics<parallel>], iteration_bounds = array<i64: 2>, scalar_prefetch = 0 : i64, scratch_operands = 0 : i64, tpu.core_type = #tpu.core_type<tc>, window_params = [{transform_indices = @transform_0, window_bounds = array<i64: 8, 32>}, {pipeline_mode = #tpu.pipeline_mode<synchronous>, transform_indices = @transform_1, window_bounds = array<i64: 32, 4096>}, {pipeline_mode = #tpu.pipeline_mode<synchronous>, transform_indices = @transform_2, window_bounds = array<i64: 1, 4096>}, {transform_indices = @transform_3, window_bounds = array<i64: 8, 4096>}]} {
    %c0 = arith.constant 0 : index
    %c0_0 = arith.constant 0 : index
    %0 = vector.load %arg1[%c0, %c0_0] : memref<8x32xbf16, #tpu.memory_space<vmem>>, vector<8x32xbf16>
    %c0_1 = arith.constant 0 : index
    %c0_2 = arith.constant 0 : index
    %1 = vector.load %arg2[%c0_1, %c0_2] : memref<32x4096xbf16, #tpu.memory_space<vmem>>, vector<32x4096xbf16>
    %cst = arith.constant dense<0.000000e+00> : vector<8x4096xf32>
    %2 = tpu.matmul %0, %1, %cst {dimension_numbers = #tpu.dot_dimension_numbers<[1], [0], [0], [1], [0, 0, 1, 1], [], []>} : vector<8x32xbf16>, vector<32x4096xbf16>, vector<8x4096xf32> -> vector<8x4096xf32>
    %c0_3 = arith.constant 0 : index
    %c0_4 = arith.constant 0 : index
    %3 = vector.load %arg3[%c0_3, %c0_4] : memref<1x4096xf32, #tpu.memory_space<vmem>>, vector<1x4096xf32>
    %4 = vector.broadcast %3 : vector<1x4096xf32> to vector<8x4096xf32>
    %5 = arith.addf %2, %4 : vector<8x4096xf32>
    %6 = arith.truncf %5 : vector<8x4096xf32> to vector<8x4096xbf16>
    %c0_5 = arith.constant 0 : index
    %c0_6 = arith.constant 0 : index
    %7 = vector.load %arg4[%c0_5, %c0_6] : memref<8x4096xbf16, #tpu.memory_space<vmem>>, vector<8x4096xbf16>
    tpu.vector_store %arg4[%c0_5, %c0_6], %6 {strides = array<i32>} : memref<8x4096xbf16, #tpu.memory_space<vmem>>, vector<8x4096xbf16>,
    return
  }
  func.func @transform_0(%arg0: i32) -> (i32, i32) {
    %c0_i32 = arith.constant 0 : i32
    %c0_i32_0 = arith.constant 0 : i32
    return %arg0, %c0_i32 : i32, i32
  }
  func.func @transform_1(%arg0: i32) -> (i32, i32) {
    %c0_i32 = arith.constant 0 : i32
    %c0_i32_0 = arith.constant 0 : i32
    %c0_i32_1 = arith.constant 0 : i32
    return %c0_i32, %c0_i32_0 : i32, i32
  }
  func.func @transform_2(%arg0: i32) -> (i32, i32) {
    %c0_i32 = arith.constant 0 : i32
    %c0_i32_0 = arith.constant 0 : i32
    %c0_i32_1 = arith.constant 0 : i32
    return %c0_i32, %c0_i32_0 : i32, i32
  }
  func.func @transform_3(%arg0: i32) -> (i32, i32) {
    %c0_i32 = arith.constant 0 : i32
    %c0_i32_0 = arith.constant 0 : i32
    return %arg0, %c0_i32 : i32, i32
  }
}

module attributes {stable_mosaic.version = 11 : i64} {
  func.func @_prop_kernel(%arg0: i32, %arg1: memref<1x8x1024xbf16, #tpu.memory_space<vmem>>, %arg2: memref<1x8x8xbf16, #tpu.memory_space<vmem>>, %arg3: memref<1x1024x32xbf16, #tpu.memory_space<vmem>>, %arg4: memref<1x8x32xbf16, #tpu.memory_space<vmem>>, %arg5: memref<8x1xf32, #tpu.memory_space<vmem>>, %arg6: memref<32x32xbf16, #tpu.memory_space<vmem>>, %arg7: memref<3x32x32xbf16, #tpu.memory_space<vmem>>, %arg8: memref<3x32x32xbf16, #tpu.memory_space<vmem>>, %arg9: memref<3x1x32xf32, #tpu.memory_space<vmem>>, %arg10: memref<3x1x32xf32, #tpu.memory_space<vmem>>, %arg11: memref<32x4096xbf16, #tpu.memory_space<vmem>>, %arg12: memref<1x8x32xbf16, #tpu.memory_space<vmem>>, %arg13: memref<8x4096xbf16, #tpu.memory_space<vmem>>) attributes {dimension_semantics = [#tpu.dimension_semantics<parallel>], iteration_bounds = array<i64: 2>, scalar_prefetch = 0 : i64, scratch_operands = 0 : i64, tpu.core_type = #tpu.core_type<tc>, window_params = [{transform_indices = @transform_0, window_bounds = array<i64: 1, 8, 1024>}, {transform_indices = @transform_1, window_bounds = array<i64: 1, 8, 8>}, {transform_indices = @transform_2, window_bounds = array<i64: 1, 1024, 32>}, {transform_indices = @transform_3, window_bounds = array<i64: 1, 8, 32>}, {transform_indices = @transform_4, window_bounds = array<i64: 8, 1>}, {pipeline_mode = #tpu.pipeline_mode<synchronous>, transform_indices = @transform_5, window_bounds = array<i64: 32, 32>}, {pipeline_mode = #tpu.pipeline_mode<synchronous>, transform_indices = @transform_6, window_bounds = array<i64: 3, 32, 32>}, {pipeline_mode = #tpu.pipeline_mode<synchronous>, transform_indices = @transform_7, window_bounds = array<i64: 3, 32, 32>}, {pipeline_mode = #tpu.pipeline_mode<synchronous>, transform_indices = @transform_8, window_bounds = array<i64: 3, 1, 32>}, {pipeline_mode = #tpu.pipeline_mode<synchronous>, transform_indices = @transform_9, window_bounds = array<i64: 3, 1, 32>}, {pipeline_mode = #tpu.pipeline_mode<synchronous>, transform_indices = @transform_10, window_bounds = array<i64: 32, 4096>}, {transform_indices = @transform_11, window_bounds = array<i64: 1, 8, 32>}, {transform_indices = @transform_12, window_bounds = array<i64: 8, 4096>}]} {
    %c0 = arith.constant 0 : index
    %c0_0 = arith.constant 0 : index
    %c0_1 = arith.constant 0 : index
    %0 = vector.load %arg1[%c0, %c0_0, %c0_1] : memref<1x8x1024xbf16, #tpu.memory_space<vmem>>, vector<1x8x1024xbf16>
    %c0_2 = arith.constant 0 : index
    %c0_3 = arith.constant 0 : index
    %c0_4 = arith.constant 0 : index
    %1 = vector.load %arg3[%c0_2, %c0_3, %c0_4] : memref<1x1024x32xbf16, #tpu.memory_space<vmem>>, vector<1x1024x32xbf16>
    %c0_5 = arith.constant 0 : index
    %c0_6 = arith.constant 0 : index
    %c0_7 = arith.constant 0 : index
    %2 = vector.load %arg2[%c0_5, %c0_6, %c0_7] : memref<1x8x8xbf16, #tpu.memory_space<vmem>>, vector<1x8x8xbf16>
    %c0_8 = arith.constant 0 : index
    %c0_9 = arith.constant 0 : index
    %c0_10 = arith.constant 0 : index
    %3 = vector.load %arg4[%c0_8, %c0_9, %c0_10] : memref<1x8x32xbf16, #tpu.memory_space<vmem>>, vector<1x8x32xbf16>
    %c0_11 = arith.constant 0 : index
    %c0_12 = arith.constant 0 : index
    %4 = vector.load %arg5[%c0_11, %c0_12] : memref<8x1xf32, #tpu.memory_space<vmem>>, vector<8x1xf32>
    "tpu.trace_start"() <{level = 10 : i32, message = "bik,bkm->bim"}> : () -> ()
    %cst = arith.constant dense<0.000000e+00> : vector<1x8x32xf32>
    %5 = tpu.matmul %0, %1, %cst {dimension_numbers = #tpu.dot_dimension_numbers<[2], [1], [1], [2], [0, 0, 0, 1, 1, 2], [0], [0]>} : vector<1x8x1024xbf16>, vector<1x1024x32xbf16>, vector<1x8x32xf32> -> vector<1x8x32xf32>
    "tpu.trace_stop"() : () -> ()
    "tpu.trace_start"() <{level = 10 : i32, message = "bij,bjh->bih"}> : () -> ()
    %cst_13 = arith.constant dense<0.000000e+00> : vector<1x8x32xf32>
    %6 = tpu.matmul %2, %3, %cst_13 {dimension_numbers = #tpu.dot_dimension_numbers<[2], [1], [1], [2], [0, 0, 0, 1, 1, 2], [0], [0]>} : vector<1x8x8xbf16>, vector<1x8x32xbf16>, vector<1x8x32xf32> -> vector<1x8x32xf32>
    "tpu.trace_stop"() : () -> ()
    %7 = vector.shape_cast %5 : vector<1x8x32xf32> to vector<8x32xf32>
    %8 = vector.shape_cast %6 : vector<1x8x32xf32> to vector<8x32xf32>
    %9 = arith.truncf %8 : vector<8x32xf32> to vector<8x32xbf16>
    %c0_14 = arith.constant 0 : index
    %c0_15 = arith.constant 0 : index
    %10 = vector.load %arg6[%c0_14, %c0_15] : memref<32x32xbf16, #tpu.memory_space<vmem>>, vector<32x32xbf16>
    %cst_16 = arith.constant dense<0.000000e+00> : vector<8x32xf32>
    %11 = tpu.matmul %9, %10, %cst_16 {dimension_numbers = #tpu.dot_dimension_numbers<[1], [0], [0], [1], [0, 0, 1, 1], [], []>} : vector<8x32xbf16>, vector<32x32xbf16>, vector<8x32xf32> -> vector<8x32xf32>
    %12 = arith.addf %7, %11 : vector<8x32xf32>
    %13 = vector.shape_cast %3 : vector<1x8x32xbf16> to vector<8x32xbf16>
    %14 = arith.truncf %12 : vector<8x32xf32> to vector<8x32xbf16>
    %c0_17 = arith.constant 0 : index
    %c0_18 = arith.constant 0 : index
    %c0_19 = arith.constant 0 : index
    %15 = vector.load %arg7[%c0_17, %c0_18, %c0_19] : memref<3x32x32xbf16, #tpu.memory_space<vmem>>, vector<1x32x32xbf16>
    %16 = vector.shape_cast %15 : vector<1x32x32xbf16> to vector<32x32xbf16>
    %cst_20 = arith.constant dense<0.000000e+00> : vector<8x32xf32>
    %17 = tpu.matmul %14, %16, %cst_20 {dimension_numbers = #tpu.dot_dimension_numbers<[1], [0], [0], [1], [0, 0, 1, 1], [], []>} : vector<8x32xbf16>, vector<32x32xbf16>, vector<8x32xf32> -> vector<8x32xf32>
    %c0_21 = arith.constant 0 : index
    %c0_22 = arith.constant 0 : index
    %c0_23 = arith.constant 0 : index
    %18 = vector.load %arg9[%c0_21, %c0_22, %c0_23] : memref<3x1x32xf32, #tpu.memory_space<vmem>>, vector<1x1x32xf32>
    %19 = vector.shape_cast %18 : vector<1x1x32xf32> to vector<1x32xf32>
    %20 = vector.broadcast %19 : vector<1x32xf32> to vector<8x32xf32>
    %21 = arith.addf %17, %20 : vector<8x32xf32>
    %c0_24 = arith.constant 0 : index
    %c0_25 = arith.constant 0 : index
    %c0_26 = arith.constant 0 : index
    %22 = vector.load %arg8[%c0_24, %c0_25, %c0_26] : memref<3x32x32xbf16, #tpu.memory_space<vmem>>, vector<1x32x32xbf16>
    %23 = vector.shape_cast %22 : vector<1x32x32xbf16> to vector<32x32xbf16>
    %cst_27 = arith.constant dense<0.000000e+00> : vector<8x32xf32>
    %24 = tpu.matmul %13, %23, %cst_27 {dimension_numbers = #tpu.dot_dimension_numbers<[1], [0], [0], [1], [0, 0, 1, 1], [], []>} : vector<8x32xbf16>, vector<32x32xbf16>, vector<8x32xf32> -> vector<8x32xf32>
    %c0_28 = arith.constant 0 : index
    %c0_29 = arith.constant 0 : index
    %c0_30 = arith.constant 0 : index
    %25 = vector.load %arg10[%c0_28, %c0_29, %c0_30] : memref<3x1x32xf32, #tpu.memory_space<vmem>>, vector<1x1x32xf32>
    %26 = vector.shape_cast %25 : vector<1x1x32xf32> to vector<1x32xf32>
    %27 = vector.broadcast %26 : vector<1x32xf32> to vector<8x32xf32>
    %28 = arith.addf %24, %27 : vector<8x32xf32>
    %29 = arith.addf %21, %28 : vector<8x32xf32>
    %30 = arith.negf %29 : vector<8x32xf32>
    %31 = math.exp %30 : vector<8x32xf32>
    %cst_31 = arith.constant 1.000000e+00 : f32
    %32 = vector.broadcast %cst_31 : f32 to vector<8x32xf32>
    %33 = arith.addf %32, %31 : vector<8x32xf32>
    %34 = arith.divf %32, %33 : vector<8x32xf32>
    %c1 = arith.constant 1 : index
    %c0_32 = arith.constant 0 : index
    %c0_33 = arith.constant 0 : index
    %35 = vector.load %arg7[%c1, %c0_32, %c0_33] : memref<3x32x32xbf16, #tpu.memory_space<vmem>>, vector<1x32x32xbf16>
    %36 = vector.shape_cast %35 : vector<1x32x32xbf16> to vector<32x32xbf16>
    %cst_34 = arith.constant dense<0.000000e+00> : vector<8x32xf32>
    %37 = tpu.matmul %14, %36, %cst_34 {dimension_numbers = #tpu.dot_dimension_numbers<[1], [0], [0], [1], [0, 0, 1, 1], [], []>} : vector<8x32xbf16>, vector<32x32xbf16>, vector<8x32xf32> -> vector<8x32xf32>
    %c1_35 = arith.constant 1 : index
    %c0_36 = arith.constant 0 : index
    %c0_37 = arith.constant 0 : index
    %38 = vector.load %arg9[%c1_35, %c0_36, %c0_37] : memref<3x1x32xf32, #tpu.memory_space<vmem>>, vector<1x1x32xf32>
    %39 = vector.shape_cast %38 : vector<1x1x32xf32> to vector<1x32xf32>
    %40 = vector.broadcast %39 : vector<1x32xf32> to vector<8x32xf32>
    %41 = arith.addf %37, %40 : vector<8x32xf32>
    %c1_38 = arith.constant 1 : index
    %c0_39 = arith.constant 0 : index
    %c0_40 = arith.constant 0 : index
    %42 = vector.load %arg8[%c1_38, %c0_39, %c0_40] : memref<3x32x32xbf16, #tpu.memory_space<vmem>>, vector<1x32x32xbf16>
    %43 = vector.shape_cast %42 : vector<1x32x32xbf16> to vector<32x32xbf16>
    %cst_41 = arith.constant dense<0.000000e+00> : vector<8x32xf32>
    %44 = tpu.matmul %13, %43, %cst_41 {dimension_numbers = #tpu.dot_dimension_numbers<[1], [0], [0], [1], [0, 0, 1, 1], [], []>} : vector<8x32xbf16>, vector<32x32xbf16>, vector<8x32xf32> -> vector<8x32xf32>
    %c1_42 = arith.constant 1 : index
    %c0_43 = arith.constant 0 : index
    %c0_44 = arith.constant 0 : index
    %45 = vector.load %arg10[%c1_42, %c0_43, %c0_44] : memref<3x1x32xf32, #tpu.memory_space<vmem>>, vector<1x1x32xf32>
    %46 = vector.shape_cast %45 : vector<1x1x32xf32> to vector<1x32xf32>
    %47 = vector.broadcast %46 : vector<1x32xf32> to vector<8x32xf32>
    %48 = arith.addf %44, %47 : vector<8x32xf32>
    %49 = arith.addf %41, %48 : vector<8x32xf32>
    %50 = arith.negf %49 : vector<8x32xf32>
    %51 = math.exp %50 : vector<8x32xf32>
    %cst_45 = arith.constant 1.000000e+00 : f32
    %52 = vector.broadcast %cst_45 : f32 to vector<8x32xf32>
    %53 = arith.addf %52, %51 : vector<8x32xf32>
    %54 = arith.divf %52, %53 : vector<8x32xf32>
    %c2 = arith.constant 2 : index
    %c0_46 = arith.constant 0 : index
    %c0_47 = arith.constant 0 : index
    %55 = vector.load %arg7[%c2, %c0_46, %c0_47] : memref<3x32x32xbf16, #tpu.memory_space<vmem>>, vector<1x32x32xbf16>
    %56 = vector.shape_cast %55 : vector<1x32x32xbf16> to vector<32x32xbf16>
    %cst_48 = arith.constant dense<0.000000e+00> : vector<8x32xf32>
    %57 = tpu.matmul %14, %56, %cst_48 {dimension_numbers = #tpu.dot_dimension_numbers<[1], [0], [0], [1], [0, 0, 1, 1], [], []>} : vector<8x32xbf16>, vector<32x32xbf16>, vector<8x32xf32> -> vector<8x32xf32>
    %c2_49 = arith.constant 2 : index
    %c0_50 = arith.constant 0 : index
    %c0_51 = arith.constant 0 : index
    %58 = vector.load %arg9[%c2_49, %c0_50, %c0_51] : memref<3x1x32xf32, #tpu.memory_space<vmem>>, vector<1x1x32xf32>
    %59 = vector.shape_cast %58 : vector<1x1x32xf32> to vector<1x32xf32>
    %60 = vector.broadcast %59 : vector<1x32xf32> to vector<8x32xf32>
    %61 = arith.addf %57, %60 : vector<8x32xf32>
    %c2_52 = arith.constant 2 : index
    %c0_53 = arith.constant 0 : index
    %c0_54 = arith.constant 0 : index
    %62 = vector.load %arg8[%c2_52, %c0_53, %c0_54] : memref<3x32x32xbf16, #tpu.memory_space<vmem>>, vector<1x32x32xbf16>
    %63 = vector.shape_cast %62 : vector<1x32x32xbf16> to vector<32x32xbf16>
    %cst_55 = arith.constant dense<0.000000e+00> : vector<8x32xf32>
    %64 = tpu.matmul %13, %63, %cst_55 {dimension_numbers = #tpu.dot_dimension_numbers<[1], [0], [0], [1], [0, 0, 1, 1], [], []>} : vector<8x32xbf16>, vector<32x32xbf16>, vector<8x32xf32> -> vector<8x32xf32>
    %c2_56 = arith.constant 2 : index
    %c0_57 = arith.constant 0 : index
    %c0_58 = arith.constant 0 : index
    %65 = vector.load %arg10[%c2_56, %c0_57, %c0_58] : memref<3x1x32xf32, #tpu.memory_space<vmem>>, vector<1x1x32xf32>
    %66 = vector.shape_cast %65 : vector<1x1x32xf32> to vector<1x32xf32>
    %67 = vector.broadcast %66 : vector<1x32xf32> to vector<8x32xf32>
    %68 = arith.addf %64, %67 : vector<8x32xf32>
    %69 = arith.mulf %34, %68 : vector<8x32xf32>
    %70 = arith.addf %61, %69 : vector<8x32xf32>
    %71 = math.tanh %70 : vector<8x32xf32>
    %cst_59 = arith.constant 1.000000e+00 : f32
    %72 = vector.broadcast %cst_59 : f32 to vector<8x32xf32>
    %73 = arith.subf %72, %54 : vector<8x32xf32>
    %74 = arith.mulf %73, %71 : vector<8x32xf32>
    %75 = arith.extf %13 : vector<8x32xbf16> to vector<8x32xf32>
    %76 = arith.mulf %54, %75 : vector<8x32xf32>
    %77 = arith.addf %74, %76 : vector<8x32xf32>
    %78 = vector.broadcast %4 : vector<8x1xf32> to vector<8x32xf32>
    %79 = arith.mulf %77, %78 : vector<8x32xf32>
    %80 = arith.truncf %79 : vector<8x32xf32> to vector<8x32xbf16>
    %81 = vector.shape_cast %80 : vector<8x32xbf16> to vector<1x8x32xbf16>
    %c0_60 = arith.constant 0 : index
    %c0_61 = arith.constant 0 : index
    %c0_62 = arith.constant 0 : index
    %82 = vector.load %arg12[%c0_60, %c0_61, %c0_62] : memref<1x8x32xbf16, #tpu.memory_space<vmem>>, vector<1x8x32xbf16>
    tpu.vector_store %arg12[%c0_60, %c0_61, %c0_62], %81 {strides = array<i32>} : memref<1x8x32xbf16, #tpu.memory_space<vmem>>, vector<1x8x32xbf16>,
    %c0_63 = arith.constant 0 : index
    %c0_64 = arith.constant 0 : index
    %83 = vector.load %arg11[%c0_63, %c0_64] : memref<32x4096xbf16, #tpu.memory_space<vmem>>, vector<32x4096xbf16>
    %cst_65 = arith.constant dense<0.000000e+00> : vector<8x4096xf32>
    %84 = tpu.matmul %80, %83, %cst_65 {dimension_numbers = #tpu.dot_dimension_numbers<[1], [0], [0], [1], [0, 0, 1, 1], [], []>} : vector<8x32xbf16>, vector<32x4096xbf16>, vector<8x4096xf32> -> vector<8x4096xf32>
    %85 = arith.truncf %84 : vector<8x4096xf32> to vector<8x4096xbf16>
    %c0_66 = arith.constant 0 : index
    %c0_67 = arith.constant 0 : index
    %86 = vector.load %arg13[%c0_66, %c0_67] : memref<8x4096xbf16, #tpu.memory_space<vmem>>, vector<8x4096xbf16>
    tpu.vector_store %arg13[%c0_66, %c0_67], %85 {strides = array<i32>} : memref<8x4096xbf16, #tpu.memory_space<vmem>>, vector<8x4096xbf16>,
    return
  }
  func.func @transform_0(%arg0: i32) -> (i32, i32, i32) {
    %c0_i32 = arith.constant 0 : i32
    %c0_i32_0 = arith.constant 0 : i32
    %c0_i32_1 = arith.constant 0 : i32
    return %arg0, %c0_i32, %c0_i32_0 : i32, i32, i32
  }
  func.func @transform_1(%arg0: i32) -> (i32, i32, i32) {
    %c0_i32 = arith.constant 0 : i32
    %c0_i32_0 = arith.constant 0 : i32
    %c0_i32_1 = arith.constant 0 : i32
    return %arg0, %c0_i32, %c0_i32_0 : i32, i32, i32
  }
  func.func @transform_2(%arg0: i32) -> (i32, i32, i32) {
    %c0_i32 = arith.constant 0 : i32
    %c0_i32_0 = arith.constant 0 : i32
    %c0_i32_1 = arith.constant 0 : i32
    return %arg0, %c0_i32, %c0_i32_0 : i32, i32, i32
  }
  func.func @transform_3(%arg0: i32) -> (i32, i32, i32) {
    %c0_i32 = arith.constant 0 : i32
    %c0_i32_0 = arith.constant 0 : i32
    %c0_i32_1 = arith.constant 0 : i32
    return %arg0, %c0_i32, %c0_i32_0 : i32, i32, i32
  }
  func.func @transform_4(%arg0: i32) -> (i32, i32) {
    %c0_i32 = arith.constant 0 : i32
    %c0_i32_0 = arith.constant 0 : i32
    return %arg0, %c0_i32 : i32, i32
  }
  func.func @transform_5(%arg0: i32) -> (i32, i32) {
    %c0_i32 = arith.constant 0 : i32
    %c0_i32_0 = arith.constant 0 : i32
    %c0_i32_1 = arith.constant 0 : i32
    return %c0_i32, %c0_i32_0 : i32, i32
  }
  func.func @transform_6(%arg0: i32) -> (i32, i32, i32) {
    %c0_i32 = arith.constant 0 : i32
    %c0_i32_0 = arith.constant 0 : i32
    %c0_i32_1 = arith.constant 0 : i32
    %c0_i32_2 = arith.constant 0 : i32
    return %c0_i32, %c0_i32_0, %c0_i32_1 : i32, i32, i32
  }
  func.func @transform_7(%arg0: i32) -> (i32, i32, i32) {
    %c0_i32 = arith.constant 0 : i32
    %c0_i32_0 = arith.constant 0 : i32
    %c0_i32_1 = arith.constant 0 : i32
    %c0_i32_2 = arith.constant 0 : i32
    return %c0_i32, %c0_i32_0, %c0_i32_1 : i32, i32, i32
  }
  func.func @transform_8(%arg0: i32) -> (i32, i32, i32) {
    %c0_i32 = arith.constant 0 : i32
    %c0_i32_0 = arith.constant 0 : i32
    %c0_i32_1 = arith.constant 0 : i32
    %c0_i32_2 = arith.constant 0 : i32
    return %c0_i32, %c0_i32_0, %c0_i32_1 : i32, i32, i32
  }
  func.func @transform_9(%arg0: i32) -> (i32, i32, i32) {
    %c0_i32 = arith.constant 0 : i32
    %c0_i32_0 = arith.constant 0 : i32
    %c0_i32_1 = arith.constant 0 : i32
    %c0_i32_2 = arith.constant 0 : i32
    return %c0_i32, %c0_i32_0, %c0_i32_1 : i32, i32, i32
  }
  func.func @transform_10(%arg0: i32) -> (i32, i32) {
    %c0_i32 = arith.constant 0 : i32
    %c0_i32_0 = arith.constant 0 : i32
    %c0_i32_1 = arith.constant 0 : i32
    return %c0_i32, %c0_i32_0 : i32, i32
  }
  func.func @transform_11(%arg0: i32) -> (i32, i32, i32) {
    %c0_i32 = arith.constant 0 : i32
    %c0_i32_0 = arith.constant 0 : i32
    %c0_i32_1 = arith.constant 0 : i32
    return %arg0, %c0_i32, %c0_i32_0 : i32, i32, i32
  }
  func.func @transform_12(%arg0: i32) -> (i32, i32) {
    %c0_i32 = arith.constant 0 : i32
    %c0_i32_0 = arith.constant 0 : i32
    return %arg0, %c0_i32 : i32, i32
  }
}

module attributes {stable_mosaic.version = 11 : i64} {
  func.func @_prop_kernel(%arg0: i32, %arg1: memref<1x8x1024xbf16, #tpu.memory_space<vmem>>, %arg2: memref<1x8x8xbf16, #tpu.memory_space<vmem>>, %arg3: memref<1x1024x32xbf16, #tpu.memory_space<vmem>>, %arg4: memref<1x8x32xbf16, #tpu.memory_space<vmem>>, %arg5: memref<8x1xf32, #tpu.memory_space<vmem>>, %arg6: memref<32x32xbf16, #tpu.memory_space<vmem>>, %arg7: memref<3x32x32xbf16, #tpu.memory_space<vmem>>, %arg8: memref<3x32x32xbf16, #tpu.memory_space<vmem>>, %arg9: memref<3x1x32xf32, #tpu.memory_space<vmem>>, %arg10: memref<3x1x32xf32, #tpu.memory_space<vmem>>, %arg11: memref<32x4096xbf16, #tpu.memory_space<vmem>>, %arg12: memref<1x8x32xbf16, #tpu.memory_space<vmem>>, %arg13: memref<8x4096xbf16, #tpu.memory_space<vmem>>) attributes {dimension_semantics = [#tpu.dimension_semantics<parallel>], iteration_bounds = array<i64: 2>, scalar_prefetch = 0 : i64, scratch_operands = 0 : i64, tpu.core_type = #tpu.core_type<tc>, window_params = [{transform_indices = @transform_0, window_bounds = array<i64: 1, 8, 1024>}, {transform_indices = @transform_1, window_bounds = array<i64: 1, 8, 8>}, {transform_indices = @transform_2, window_bounds = array<i64: 1, 1024, 32>}, {transform_indices = @transform_3, window_bounds = array<i64: 1, 8, 32>}, {transform_indices = @transform_4, window_bounds = array<i64: 8, 1>}, {pipeline_mode = #tpu.pipeline_mode<synchronous>, transform_indices = @transform_5, window_bounds = array<i64: 32, 32>}, {pipeline_mode = #tpu.pipeline_mode<synchronous>, transform_indices = @transform_6, window_bounds = array<i64: 3, 32, 32>}, {pipeline_mode = #tpu.pipeline_mode<synchronous>, transform_indices = @transform_7, window_bounds = array<i64: 3, 32, 32>}, {pipeline_mode = #tpu.pipeline_mode<synchronous>, transform_indices = @transform_8, window_bounds = array<i64: 3, 1, 32>}, {pipeline_mode = #tpu.pipeline_mode<synchronous>, transform_indices = @transform_9, window_bounds = array<i64: 3, 1, 32>}, {pipeline_mode = #tpu.pipeline_mode<synchronous>, transform_indices = @transform_10, window_bounds = array<i64: 32, 4096>}, {transform_indices = @transform_11, window_bounds = array<i64: 1, 8, 32>}, {transform_indices = @transform_12, window_bounds = array<i64: 8, 4096>}]} {
    %c0 = arith.constant 0 : index
    %c0_0 = arith.constant 0 : index
    %c0_1 = arith.constant 0 : index
    %0 = vector.load %arg1[%c0, %c0_0, %c0_1] : memref<1x8x1024xbf16, #tpu.memory_space<vmem>>, vector<1x8x1024xbf16>
    %c0_2 = arith.constant 0 : index
    %c0_3 = arith.constant 0 : index
    %c0_4 = arith.constant 0 : index
    %1 = vector.load %arg3[%c0_2, %c0_3, %c0_4] : memref<1x1024x32xbf16, #tpu.memory_space<vmem>>, vector<1x1024x32xbf16>
    %c0_5 = arith.constant 0 : index
    %c0_6 = arith.constant 0 : index
    %c0_7 = arith.constant 0 : index
    %2 = vector.load %arg2[%c0_5, %c0_6, %c0_7] : memref<1x8x8xbf16, #tpu.memory_space<vmem>>, vector<1x8x8xbf16>
    %c0_8 = arith.constant 0 : index
    %c0_9 = arith.constant 0 : index
    %c0_10 = arith.constant 0 : index
    %3 = vector.load %arg4[%c0_8, %c0_9, %c0_10] : memref<1x8x32xbf16, #tpu.memory_space<vmem>>, vector<1x8x32xbf16>
    %c0_11 = arith.constant 0 : index
    %c0_12 = arith.constant 0 : index
    %4 = vector.load %arg5[%c0_11, %c0_12] : memref<8x1xf32, #tpu.memory_space<vmem>>, vector<8x1xf32>
    "tpu.trace_start"() <{level = 10 : i32, message = "bik,bkm->bim"}> : () -> ()
    %cst = arith.constant dense<0.000000e+00> : vector<1x8x32xf32>
    %5 = tpu.matmul %0, %1, %cst {dimension_numbers = #tpu.dot_dimension_numbers<[2], [1], [1], [2], [0, 0, 0, 1, 1, 2], [0], [0]>} : vector<1x8x1024xbf16>, vector<1x1024x32xbf16>, vector<1x8x32xf32> -> vector<1x8x32xf32>
    "tpu.trace_stop"() : () -> ()
    "tpu.trace_start"() <{level = 10 : i32, message = "bij,bjh->bih"}> : () -> ()
    %cst_13 = arith.constant dense<0.000000e+00> : vector<1x8x32xf32>
    %6 = tpu.matmul %2, %3, %cst_13 {dimension_numbers = #tpu.dot_dimension_numbers<[2], [1], [1], [2], [0, 0, 0, 1, 1, 2], [0], [0]>} : vector<1x8x8xbf16>, vector<1x8x32xbf16>, vector<1x8x32xf32> -> vector<1x8x32xf32>
    "tpu.trace_stop"() : () -> ()
    %7 = vector.shape_cast %5 : vector<1x8x32xf32> to vector<8x32xf32>
    %8 = vector.shape_cast %6 : vector<1x8x32xf32> to vector<8x32xf32>
    %9 = arith.truncf %8 : vector<8x32xf32> to vector<8x32xbf16>
    %c0_14 = arith.constant 0 : index
    %c0_15 = arith.constant 0 : index
    %10 = vector.load %arg6[%c0_14, %c0_15] : memref<32x32xbf16, #tpu.memory_space<vmem>>, vector<32x32xbf16>
    %cst_16 = arith.constant dense<0.000000e+00> : vector<8x32xf32>
    %11 = tpu.matmul %9, %10, %cst_16 {dimension_numbers = #tpu.dot_dimension_numbers<[1], [0], [0], [1], [0, 0, 1, 1], [], []>} : vector<8x32xbf16>, vector<32x32xbf16>, vector<8x32xf32> -> vector<8x32xf32>
    %12 = arith.addf %7, %11 : vector<8x32xf32>
    %13 = vector.shape_cast %3 : vector<1x8x32xbf16> to vector<8x32xbf16>
    %14 = arith.truncf %12 : vector<8x32xf32> to vector<8x32xbf16>
    %c0_17 = arith.constant 0 : index
    %c0_18 = arith.constant 0 : index
    %c0_19 = arith.constant 0 : index
    %15 = vector.load %arg7[%c0_17, %c0_18, %c0_19] : memref<3x32x32xbf16, #tpu.memory_space<vmem>>, vector<1x32x32xbf16>
    %16 = vector.shape_cast %15 : vector<1x32x32xbf16> to vector<32x32xbf16>
    %cst_20 = arith.constant dense<0.000000e+00> : vector<8x32xf32>
    %17 = tpu.matmul %14, %16, %cst_20 {dimension_numbers = #tpu.dot_dimension_numbers<[1], [0], [0], [1], [0, 0, 1, 1], [], []>} : vector<8x32xbf16>, vector<32x32xbf16>, vector<8x32xf32> -> vector<8x32xf32>
    %c0_21 = arith.constant 0 : index
    %c0_22 = arith.constant 0 : index
    %c0_23 = arith.constant 0 : index
    %18 = vector.load %arg9[%c0_21, %c0_22, %c0_23] : memref<3x1x32xf32, #tpu.memory_space<vmem>>, vector<1x1x32xf32>
    %19 = vector.shape_cast %18 : vector<1x1x32xf32> to vector<1x32xf32>
    %20 = vector.broadcast %19 : vector<1x32xf32> to vector<8x32xf32>
    %21 = arith.addf %17, %20 : vector<8x32xf32>
    %c0_24 = arith.constant 0 : index
    %c0_25 = arith.constant 0 : index
    %c0_26 = arith.constant 0 : index
    %22 = vector.load %arg8[%c0_24, %c0_25, %c0_26] : memref<3x32x32xbf16, #tpu.memory_space<vmem>>, vector<1x32x32xbf16>
    %23 = vector.shape_cast %22 : vector<1x32x32xbf16> to vector<32x32xbf16>
    %cst_27 = arith.constant dense<0.000000e+00> : vector<8x32xf32>
    %24 = tpu.matmul %13, %23, %cst_27 {dimension_numbers = #tpu.dot_dimension_numbers<[1], [0], [0], [1], [0, 0, 1, 1], [], []>} : vector<8x32xbf16>, vector<32x32xbf16>, vector<8x32xf32> -> vector<8x32xf32>
    %c0_28 = arith.constant 0 : index
    %c0_29 = arith.constant 0 : index
    %c0_30 = arith.constant 0 : index
    %25 = vector.load %arg10[%c0_28, %c0_29, %c0_30] : memref<3x1x32xf32, #tpu.memory_space<vmem>>, vector<1x1x32xf32>
    %26 = vector.shape_cast %25 : vector<1x1x32xf32> to vector<1x32xf32>
    %27 = vector.broadcast %26 : vector<1x32xf32> to vector<8x32xf32>
    %28 = arith.addf %24, %27 : vector<8x32xf32>
    %29 = arith.addf %21, %28 : vector<8x32xf32>
    %30 = arith.negf %29 : vector<8x32xf32>
    %31 = math.exp %30 : vector<8x32xf32>
    %cst_31 = arith.constant 1.000000e+00 : f32
    %32 = vector.broadcast %cst_31 : f32 to vector<8x32xf32>
    %33 = arith.addf %32, %31 : vector<8x32xf32>
    %34 = arith.divf %32, %33 : vector<8x32xf32>
    %c1 = arith.constant 1 : index
    %c0_32 = arith.constant 0 : index
    %c0_33 = arith.constant 0 : index
    %35 = vector.load %arg7[%c1, %c0_32, %c0_33] : memref<3x32x32xbf16, #tpu.memory_space<vmem>>, vector<1x32x32xbf16>
    %36 = vector.shape_cast %35 : vector<1x32x32xbf16> to vector<32x32xbf16>
    %cst_34 = arith.constant dense<0.000000e+00> : vector<8x32xf32>
    %37 = tpu.matmul %14, %36, %cst_34 {dimension_numbers = #tpu.dot_dimension_numbers<[1], [0], [0], [1], [0, 0, 1, 1], [], []>} : vector<8x32xbf16>, vector<32x32xbf16>, vector<8x32xf32> -> vector<8x32xf32>
    %c1_35 = arith.constant 1 : index
    %c0_36 = arith.constant 0 : index
    %c0_37 = arith.constant 0 : index
    %38 = vector.load %arg9[%c1_35, %c0_36, %c0_37] : memref<3x1x32xf32, #tpu.memory_space<vmem>>, vector<1x1x32xf32>
    %39 = vector.shape_cast %38 : vector<1x1x32xf32> to vector<1x32xf32>
    %40 = vector.broadcast %39 : vector<1x32xf32> to vector<8x32xf32>
    %41 = arith.addf %37, %40 : vector<8x32xf32>
    %c1_38 = arith.constant 1 : index
    %c0_39 = arith.constant 0 : index
    %c0_40 = arith.constant 0 : index
    %42 = vector.load %arg8[%c1_38, %c0_39, %c0_40] : memref<3x32x32xbf16, #tpu.memory_space<vmem>>, vector<1x32x32xbf16>
    %43 = vector.shape_cast %42 : vector<1x32x32xbf16> to vector<32x32xbf16>
    %cst_41 = arith.constant dense<0.000000e+00> : vector<8x32xf32>
    %44 = tpu.matmul %13, %43, %cst_41 {dimension_numbers = #tpu.dot_dimension_numbers<[1], [0], [0], [1], [0, 0, 1, 1], [], []>} : vector<8x32xbf16>, vector<32x32xbf16>, vector<8x32xf32> -> vector<8x32xf32>
    %c1_42 = arith.constant 1 : index
    %c0_43 = arith.constant 0 : index
    %c0_44 = arith.constant 0 : index
    %45 = vector.load %arg10[%c1_42, %c0_43, %c0_44] : memref<3x1x32xf32, #tpu.memory_space<vmem>>, vector<1x1x32xf32>
    %46 = vector.shape_cast %45 : vector<1x1x32xf32> to vector<1x32xf32>
    %47 = vector.broadcast %46 : vector<1x32xf32> to vector<8x32xf32>
    %48 = arith.addf %44, %47 : vector<8x32xf32>
    %49 = arith.addf %41, %48 : vector<8x32xf32>
    %50 = arith.negf %49 : vector<8x32xf32>
    %51 = math.exp %50 : vector<8x32xf32>
    %cst_45 = arith.constant 1.000000e+00 : f32
    %52 = vector.broadcast %cst_45 : f32 to vector<8x32xf32>
    %53 = arith.addf %52, %51 : vector<8x32xf32>
    %54 = arith.divf %52, %53 : vector<8x32xf32>
    %c2 = arith.constant 2 : index
    %c0_46 = arith.constant 0 : index
    %c0_47 = arith.constant 0 : index
    %55 = vector.load %arg7[%c2, %c0_46, %c0_47] : memref<3x32x32xbf16, #tpu.memory_space<vmem>>, vector<1x32x32xbf16>
    %56 = vector.shape_cast %55 : vector<1x32x32xbf16> to vector<32x32xbf16>
    %cst_48 = arith.constant dense<0.000000e+00> : vector<8x32xf32>
    %57 = tpu.matmul %14, %56, %cst_48 {dimension_numbers = #tpu.dot_dimension_numbers<[1], [0], [0], [1], [0, 0, 1, 1], [], []>} : vector<8x32xbf16>, vector<32x32xbf16>, vector<8x32xf32> -> vector<8x32xf32>
    %c2_49 = arith.constant 2 : index
    %c0_50 = arith.constant 0 : index
    %c0_51 = arith.constant 0 : index
    %58 = vector.load %arg9[%c2_49, %c0_50, %c0_51] : memref<3x1x32xf32, #tpu.memory_space<vmem>>, vector<1x1x32xf32>
    %59 = vector.shape_cast %58 : vector<1x1x32xf32> to vector<1x32xf32>
    %60 = vector.broadcast %59 : vector<1x32xf32> to vector<8x32xf32>
    %61 = arith.addf %57, %60 : vector<8x32xf32>
    %c2_52 = arith.constant 2 : index
    %c0_53 = arith.constant 0 : index
    %c0_54 = arith.constant 0 : index
    %62 = vector.load %arg8[%c2_52, %c0_53, %c0_54] : memref<3x32x32xbf16, #tpu.memory_space<vmem>>, vector<1x32x32xbf16>
    %63 = vector.shape_cast %62 : vector<1x32x32xbf16> to vector<32x32xbf16>
    %cst_55 = arith.constant dense<0.000000e+00> : vector<8x32xf32>
    %64 = tpu.matmul %13, %63, %cst_55 {dimension_numbers = #tpu.dot_dimension_numbers<[1], [0], [0], [1], [0, 0, 1, 1], [], []>} : vector<8x32xbf16>, vector<32x32xbf16>, vector<8x32xf32> -> vector<8x32xf32>
    %c2_56 = arith.constant 2 : index
    %c0_57 = arith.constant 0 : index
    %c0_58 = arith.constant 0 : index
    %65 = vector.load %arg10[%c2_56, %c0_57, %c0_58] : memref<3x1x32xf32, #tpu.memory_space<vmem>>, vector<1x1x32xf32>
    %66 = vector.shape_cast %65 : vector<1x1x32xf32> to vector<1x32xf32>
    %67 = vector.broadcast %66 : vector<1x32xf32> to vector<8x32xf32>
    %68 = arith.addf %64, %67 : vector<8x32xf32>
    %69 = arith.mulf %34, %68 : vector<8x32xf32>
    %70 = arith.addf %61, %69 : vector<8x32xf32>
    %71 = math.tanh %70 : vector<8x32xf32>
    %cst_59 = arith.constant 1.000000e+00 : f32
    %72 = vector.broadcast %cst_59 : f32 to vector<8x32xf32>
    %73 = arith.subf %72, %54 : vector<8x32xf32>
    %74 = arith.mulf %73, %71 : vector<8x32xf32>
    %75 = arith.extf %13 : vector<8x32xbf16> to vector<8x32xf32>
    %76 = arith.mulf %54, %75 : vector<8x32xf32>
    %77 = arith.addf %74, %76 : vector<8x32xf32>
    %78 = vector.broadcast %4 : vector<8x1xf32> to vector<8x32xf32>
    %79 = arith.mulf %77, %78 : vector<8x32xf32>
    %80 = arith.truncf %79 : vector<8x32xf32> to vector<8x32xbf16>
    %81 = vector.shape_cast %80 : vector<8x32xbf16> to vector<1x8x32xbf16>
    %c0_60 = arith.constant 0 : index
    %c0_61 = arith.constant 0 : index
    %c0_62 = arith.constant 0 : index
    %82 = vector.load %arg12[%c0_60, %c0_61, %c0_62] : memref<1x8x32xbf16, #tpu.memory_space<vmem>>, vector<1x8x32xbf16>
    tpu.vector_store %arg12[%c0_60, %c0_61, %c0_62], %81 {strides = array<i32>} : memref<1x8x32xbf16, #tpu.memory_space<vmem>>, vector<1x8x32xbf16>,
    %c0_63 = arith.constant 0 : index
    %c0_64 = arith.constant 0 : index
    %83 = vector.load %arg11[%c0_63, %c0_64] : memref<32x4096xbf16, #tpu.memory_space<vmem>>, vector<32x4096xbf16>
    %cst_65 = arith.constant dense<0.000000e+00> : vector<8x4096xf32>
    %84 = tpu.matmul %80, %83, %cst_65 {dimension_numbers = #tpu.dot_dimension_numbers<[1], [0], [0], [1], [0, 0, 1, 1], [], []>} : vector<8x32xbf16>, vector<32x4096xbf16>, vector<8x4096xf32> -> vector<8x4096xf32>
    %85 = arith.truncf %84 : vector<8x4096xf32> to vector<8x4096xbf16>
    %c0_66 = arith.constant 0 : index
    %c0_67 = arith.constant 0 : index
    %86 = vector.load %arg13[%c0_66, %c0_67] : memref<8x4096xbf16, #tpu.memory_space<vmem>>, vector<8x4096xbf16>
    tpu.vector_store %arg13[%c0_66, %c0_67], %85 {strides = array<i32>} : memref<8x4096xbf16, #tpu.memory_space<vmem>>, vector<8x4096xbf16>,
    return
  }
  func.func @transform_0(%arg0: i32) -> (i32, i32, i32) {
    %c0_i32 = arith.constant 0 : i32
    %c0_i32_0 = arith.constant 0 : i32
    %c0_i32_1 = arith.constant 0 : i32
    return %arg0, %c0_i32, %c0_i32_0 : i32, i32, i32
  }
  func.func @transform_1(%arg0: i32) -> (i32, i32, i32) {
    %c0_i32 = arith.constant 0 : i32
    %c0_i32_0 = arith.constant 0 : i32
    %c0_i32_1 = arith.constant 0 : i32
    return %arg0, %c0_i32, %c0_i32_0 : i32, i32, i32
  }
  func.func @transform_2(%arg0: i32) -> (i32, i32, i32) {
    %c0_i32 = arith.constant 0 : i32
    %c0_i32_0 = arith.constant 0 : i32
    %c0_i32_1 = arith.constant 0 : i32
    return %arg0, %c0_i32, %c0_i32_0 : i32, i32, i32
  }
  func.func @transform_3(%arg0: i32) -> (i32, i32, i32) {
    %c0_i32 = arith.constant 0 : i32
    %c0_i32_0 = arith.constant 0 : i32
    %c0_i32_1 = arith.constant 0 : i32
    return %arg0, %c0_i32, %c0_i32_0 : i32, i32, i32
  }
  func.func @transform_4(%arg0: i32) -> (i32, i32) {
    %c0_i32 = arith.constant 0 : i32
    %c0_i32_0 = arith.constant 0 : i32
    return %arg0, %c0_i32 : i32, i32
  }
  func.func @transform_5(%arg0: i32) -> (i32, i32) {
    %c0_i32 = arith.constant 0 : i32
    %c0_i32_0 = arith.constant 0 : i32
    %c0_i32_1 = arith.constant 0 : i32
    return %c0_i32, %c0_i32_0 : i32, i32
  }
  func.func @transform_6(%arg0: i32) -> (i32, i32, i32) {
    %c0_i32 = arith.constant 0 : i32
    %c0_i32_0 = arith.constant 0 : i32
    %c0_i32_1 = arith.constant 0 : i32
    %c0_i32_2 = arith.constant 0 : i32
    return %c0_i32, %c0_i32_0, %c0_i32_1 : i32, i32, i32
  }
  func.func @transform_7(%arg0: i32) -> (i32, i32, i32) {
    %c0_i32 = arith.constant 0 : i32
    %c0_i32_0 = arith.constant 0 : i32
    %c0_i32_1 = arith.constant 0 : i32
    %c0_i32_2 = arith.constant 0 : i32
    return %c0_i32, %c0_i32_0, %c0_i32_1 : i32, i32, i32
  }
  func.func @transform_8(%arg0: i32) -> (i32, i32, i32) {
    %c0_i32 = arith.constant 0 : i32
    %c0_i32_0 = arith.constant 0 : i32
    %c0_i32_1 = arith.constant 0 : i32
    %c0_i32_2 = arith.constant 0 : i32
    return %c0_i32, %c0_i32_0, %c0_i32_1 : i32, i32, i32
  }
  func.func @transform_9(%arg0: i32) -> (i32, i32, i32) {
    %c0_i32 = arith.constant 0 : i32
    %c0_i32_0 = arith.constant 0 : i32
    %c0_i32_1 = arith.constant 0 : i32
    %c0_i32_2 = arith.constant 0 : i32
    return %c0_i32, %c0_i32_0, %c0_i32_1 : i32, i32, i32
  }
  func.func @transform_10(%arg0: i32) -> (i32, i32) {
    %c0_i32 = arith.constant 0 : i32
    %c0_i32_0 = arith.constant 0 : i32
    %c0_i32_1 = arith.constant 0 : i32
    return %c0_i32, %c0_i32_0 : i32, i32
  }
  func.func @transform_11(%arg0: i32) -> (i32, i32, i32) {
    %c0_i32 = arith.constant 0 : i32
    %c0_i32_0 = arith.constant 0 : i32
    %c0_i32_1 = arith.constant 0 : i32
    return %arg0, %c0_i32, %c0_i32_0 : i32, i32, i32
  }
  func.func @transform_12(%arg0: i32) -> (i32, i32) {
    %c0_i32 = arith.constant 0 : i32
    %c0_i32_0 = arith.constant 0 : i32
    return %arg0, %c0_i32 : i32, i32
  }
}

module attributes {stable_mosaic.version = 11 : i64} {
  func.func @_readout_kernel(%arg0: i32, %arg1: memref<8x32xbf16, #tpu.memory_space<vmem>>, %arg2: memref<8x32xbf16, #tpu.memory_space<vmem>>, %arg3: memref<8x1xf32, #tpu.memory_space<vmem>>, %arg4: memref<32x128xbf16, #tpu.memory_space<vmem>>, %arg5: memref<32x128xbf16, #tpu.memory_space<vmem>>, %arg6: memref<1x128xf32, #tpu.memory_space<vmem>>, %arg7: memref<128x256xbf16, #tpu.memory_space<vmem>>, %arg8: memref<1x256xf32, #tpu.memory_space<vmem>>, %arg9: memref<256x128xbf16, #tpu.memory_space<vmem>>, %arg10: memref<1x128xf32, #tpu.memory_space<vmem>>, %arg11: memref<128x6xbf16, #tpu.memory_space<vmem>>, %arg12: memref<1x6xf32, #tpu.memory_space<vmem>>, %arg13: memref<32x128xbf16, #tpu.memory_space<vmem>>, %arg14: memref<1x128xf32, #tpu.memory_space<vmem>>, %arg15: memref<128x256xbf16, #tpu.memory_space<vmem>>, %arg16: memref<1x256xf32, #tpu.memory_space<vmem>>, %arg17: memref<256x128xbf16, #tpu.memory_space<vmem>>, %arg18: memref<1x128xf32, #tpu.memory_space<vmem>>, %arg19: memref<128x6xbf16, #tpu.memory_space<vmem>>, %arg20: memref<1x6xf32, #tpu.memory_space<vmem>>, %arg21: memref<8x6xf32, #tpu.memory_space<vmem>>) attributes {dimension_semantics = [#tpu.dimension_semantics<parallel>], iteration_bounds = array<i64: 2>, scalar_prefetch = 0 : i64, scratch_operands = 0 : i64, tpu.core_type = #tpu.core_type<tc>, window_params = [{transform_indices = @transform_0, window_bounds = array<i64: 8, 32>}, {transform_indices = @transform_1, window_bounds = array<i64: 8, 32>}, {transform_indices = @transform_2, window_bounds = array<i64: 8, 1>}, {pipeline_mode = #tpu.pipeline_mode<synchronous>, transform_indices = @transform_3, window_bounds = array<i64: 32, 128>}, {pipeline_mode = #tpu.pipeline_mode<synchronous>, transform_indices = @transform_4, window_bounds = array<i64: 32, 128>}, {pipeline_mode = #tpu.pipeline_mode<synchronous>, transform_indices = @transform_5, window_bounds = array<i64: 1, 128>}, {pipeline_mode = #tpu.pipeline_mode<synchronous>, transform_indices = @transform_6, window_bounds = array<i64: 128, 256>}, {pipeline_mode = #tpu.pipeline_mode<synchronous>, transform_indices = @transform_7, window_bounds = array<i64: 1, 256>}, {pipeline_mode = #tpu.pipeline_mode<synchronous>, transform_indices = @transform_8, window_bounds = array<i64: 256, 128>}, {pipeline_mode = #tpu.pipeline_mode<synchronous>, transform_indices = @transform_9, window_bounds = array<i64: 1, 128>}, {pipeline_mode = #tpu.pipeline_mode<synchronous>, transform_indices = @transform_10, window_bounds = array<i64: 128, 6>}, {pipeline_mode = #tpu.pipeline_mode<synchronous>, transform_indices = @transform_11, window_bounds = array<i64: 1, 6>}, {pipeline_mode = #tpu.pipeline_mode<synchronous>, transform_indices = @transform_12, window_bounds = array<i64: 32, 128>}, {pipeline_mode = #tpu.pipeline_mode<synchronous>, transform_indices = @transform_13, window_bounds = array<i64: 1, 128>}, {pipeline_mode = #tpu.pipeline_mode<synchronous>, transform_indices = @transform_14, window_bounds = array<i64: 128, 256>}, {pipeline_mode = #tpu.pipeline_mode<synchronous>, transform_indices = @transform_15, window_bounds = array<i64: 1, 256>}, {pipeline_mode = #tpu.pipeline_mode<synchronous>, transform_indices = @transform_16, window_bounds = array<i64: 256, 128>}, {pipeline_mode = #tpu.pipeline_mode<synchronous>, transform_indices = @transform_17, window_bounds = array<i64: 1, 128>}, {pipeline_mode = #tpu.pipeline_mode<synchronous>, transform_indices = @transform_18, window_bounds = array<i64: 128, 6>}, {pipeline_mode = #tpu.pipeline_mode<synchronous>, transform_indices = @transform_19, window_bounds = array<i64: 1, 6>}, {transform_indices = @transform_20, window_bounds = array<i64: 8, 6>}]} {
    %c0 = arith.constant 0 : index
    %c0_0 = arith.constant 0 : index
    %0 = vector.load %arg1[%c0, %c0_0] : memref<8x32xbf16, #tpu.memory_space<vmem>>, vector<8x32xbf16>
    %c0_1 = arith.constant 0 : index
    %c0_2 = arith.constant 0 : index
    %1 = vector.load %arg2[%c0_1, %c0_2] : memref<8x32xbf16, #tpu.memory_space<vmem>>, vector<8x32xbf16>
    %c0_3 = arith.constant 0 : index
    %c0_4 = arith.constant 0 : index
    %2 = vector.load %arg3[%c0_3, %c0_4] : memref<8x1xf32, #tpu.memory_space<vmem>>, vector<8x1xf32>
    %c0_5 = arith.constant 0 : index
    %c0_6 = arith.constant 0 : index
    %3 = vector.load %arg4[%c0_5, %c0_6] : memref<32x128xbf16, #tpu.memory_space<vmem>>, vector<32x128xbf16>
    %cst = arith.constant dense<0.000000e+00> : vector<8x128xf32>
    %4 = tpu.matmul %0, %3, %cst {dimension_numbers = #tpu.dot_dimension_numbers<[1], [0], [0], [1], [0, 0, 1, 1], [], []>} : vector<8x32xbf16>, vector<32x128xbf16>, vector<8x128xf32> -> vector<8x128xf32>
    %c0_7 = arith.constant 0 : index
    %c0_8 = arith.constant 0 : index
    %5 = vector.load %arg5[%c0_7, %c0_8] : memref<32x128xbf16, #tpu.memory_space<vmem>>, vector<32x128xbf16>
    %cst_9 = arith.constant dense<0.000000e+00> : vector<8x128xf32>
    %6 = tpu.matmul %1, %5, %cst_9 {dimension_numbers = #tpu.dot_dimension_numbers<[1], [0], [0], [1], [0, 0, 1, 1], [], []>} : vector<8x32xbf16>, vector<32x128xbf16>, vector<8x128xf32> -> vector<8x128xf32>
    %7 = arith.addf %4, %6 : vector<8x128xf32>
    %c0_10 = arith.constant 0 : index
    %c0_11 = arith.constant 0 : index
    %8 = vector.load %arg6[%c0_10, %c0_11] : memref<1x128xf32, #tpu.memory_space<vmem>>, vector<1x128xf32>
    %9 = vector.broadcast %8 : vector<1x128xf32> to vector<8x128xf32>
    %10 = arith.addf %7, %9 : vector<8x128xf32>
    %cst_12 = arith.constant 0.000000e+00 : f32
    %11 = vector.broadcast %cst_12 : f32 to vector<8x128xf32>
    %12 = arith.maximumf %10, %11 : vector<8x128xf32>
    %13 = arith.truncf %12 : vector<8x128xf32> to vector<8x128xbf16>
    %c0_13 = arith.constant 0 : index
    %c0_14 = arith.constant 0 : index
    %14 = vector.load %arg7[%c0_13, %c0_14] : memref<128x256xbf16, #tpu.memory_space<vmem>>, vector<128x256xbf16>
    %cst_15 = arith.constant dense<0.000000e+00> : vector<8x256xf32>
    %15 = tpu.matmul %13, %14, %cst_15 {dimension_numbers = #tpu.dot_dimension_numbers<[1], [0], [0], [1], [0, 0, 1, 1], [], []>} : vector<8x128xbf16>, vector<128x256xbf16>, vector<8x256xf32> -> vector<8x256xf32>
    %c0_16 = arith.constant 0 : index
    %c0_17 = arith.constant 0 : index
    %16 = vector.load %arg8[%c0_16, %c0_17] : memref<1x256xf32, #tpu.memory_space<vmem>>, vector<1x256xf32>
    %17 = vector.broadcast %16 : vector<1x256xf32> to vector<8x256xf32>
    %18 = arith.addf %15, %17 : vector<8x256xf32>
    %cst_18 = arith.constant 0.000000e+00 : f32
    %19 = vector.broadcast %cst_18 : f32 to vector<8x256xf32>
    %20 = arith.maximumf %18, %19 : vector<8x256xf32>
    %21 = arith.truncf %20 : vector<8x256xf32> to vector<8x256xbf16>
    %c0_19 = arith.constant 0 : index
    %c0_20 = arith.constant 0 : index
    %22 = vector.load %arg9[%c0_19, %c0_20] : memref<256x128xbf16, #tpu.memory_space<vmem>>, vector<256x128xbf16>
    %cst_21 = arith.constant dense<0.000000e+00> : vector<8x128xf32>
    %23 = tpu.matmul %21, %22, %cst_21 {dimension_numbers = #tpu.dot_dimension_numbers<[1], [0], [0], [1], [0, 0, 1, 1], [], []>} : vector<8x256xbf16>, vector<256x128xbf16>, vector<8x128xf32> -> vector<8x128xf32>
    %c0_22 = arith.constant 0 : index
    %c0_23 = arith.constant 0 : index
    %24 = vector.load %arg10[%c0_22, %c0_23] : memref<1x128xf32, #tpu.memory_space<vmem>>, vector<1x128xf32>
    %25 = vector.broadcast %24 : vector<1x128xf32> to vector<8x128xf32>
    %26 = arith.addf %23, %25 : vector<8x128xf32>
    %cst_24 = arith.constant 0.000000e+00 : f32
    %27 = vector.broadcast %cst_24 : f32 to vector<8x128xf32>
    %28 = arith.maximumf %26, %27 : vector<8x128xf32>
    %29 = arith.truncf %28 : vector<8x128xf32> to vector<8x128xbf16>
    %c0_25 = arith.constant 0 : index
    %c0_26 = arith.constant 0 : index
    %30 = vector.load %arg11[%c0_25, %c0_26] : memref<128x6xbf16, #tpu.memory_space<vmem>>, vector<128x6xbf16>
    %cst_27 = arith.constant dense<0.000000e+00> : vector<8x6xf32>
    %31 = tpu.matmul %29, %30, %cst_27 {dimension_numbers = #tpu.dot_dimension_numbers<[1], [0], [0], [1], [0, 0, 1, 1], [], []>} : vector<8x128xbf16>, vector<128x6xbf16>, vector<8x6xf32> -> vector<8x6xf32>
    %c0_28 = arith.constant 0 : index
    %c0_29 = arith.constant 0 : index
    %32 = vector.load %arg12[%c0_28, %c0_29] : memref<1x6xf32, #tpu.memory_space<vmem>>, vector<1x6xf32>
    %33 = vector.broadcast %32 : vector<1x6xf32> to vector<8x6xf32>
    %34 = arith.addf %31, %33 : vector<8x6xf32>
    %35 = arith.negf %34 : vector<8x6xf32>
    %36 = math.exp %35 : vector<8x6xf32>
    %cst_30 = arith.constant 1.000000e+00 : f32
    %37 = vector.broadcast %cst_30 : f32 to vector<8x6xf32>
    %38 = arith.addf %37, %36 : vector<8x6xf32>
    %39 = arith.divf %37, %38 : vector<8x6xf32>
    %c0_31 = arith.constant 0 : index
    %c0_32 = arith.constant 0 : index
    %40 = vector.load %arg13[%c0_31, %c0_32] : memref<32x128xbf16, #tpu.memory_space<vmem>>, vector<32x128xbf16>
    %cst_33 = arith.constant dense<0.000000e+00> : vector<8x128xf32>
    %41 = tpu.matmul %1, %40, %cst_33 {dimension_numbers = #tpu.dot_dimension_numbers<[1], [0], [0], [1], [0, 0, 1, 1], [], []>} : vector<8x32xbf16>, vector<32x128xbf16>, vector<8x128xf32> -> vector<8x128xf32>
    %c0_34 = arith.constant 0 : index
    %c0_35 = arith.constant 0 : index
    %42 = vector.load %arg14[%c0_34, %c0_35] : memref<1x128xf32, #tpu.memory_space<vmem>>, vector<1x128xf32>
    %43 = vector.broadcast %42 : vector<1x128xf32> to vector<8x128xf32>
    %44 = arith.addf %41, %43 : vector<8x128xf32>
    %cst_36 = arith.constant 0.000000e+00 : f32
    %45 = vector.broadcast %cst_36 : f32 to vector<8x128xf32>
    %46 = arith.maximumf %44, %45 : vector<8x128xf32>
    %47 = arith.truncf %46 : vector<8x128xf32> to vector<8x128xbf16>
    %c0_37 = arith.constant 0 : index
    %c0_38 = arith.constant 0 : index
    %48 = vector.load %arg15[%c0_37, %c0_38] : memref<128x256xbf16, #tpu.memory_space<vmem>>, vector<128x256xbf16>
    %cst_39 = arith.constant dense<0.000000e+00> : vector<8x256xf32>
    %49 = tpu.matmul %47, %48, %cst_39 {dimension_numbers = #tpu.dot_dimension_numbers<[1], [0], [0], [1], [0, 0, 1, 1], [], []>} : vector<8x128xbf16>, vector<128x256xbf16>, vector<8x256xf32> -> vector<8x256xf32>
    %c0_40 = arith.constant 0 : index
    %c0_41 = arith.constant 0 : index
    %50 = vector.load %arg16[%c0_40, %c0_41] : memref<1x256xf32, #tpu.memory_space<vmem>>, vector<1x256xf32>
    %51 = vector.broadcast %50 : vector<1x256xf32> to vector<8x256xf32>
    %52 = arith.addf %49, %51 : vector<8x256xf32>
    %cst_42 = arith.constant 0.000000e+00 : f32
    %53 = vector.broadcast %cst_42 : f32 to vector<8x256xf32>
    %54 = arith.maximumf %52, %53 : vector<8x256xf32>
    %55 = arith.truncf %54 : vector<8x256xf32> to vector<8x256xbf16>
    %c0_43 = arith.constant 0 : index
    %c0_44 = arith.constant 0 : index
    %56 = vector.load %arg17[%c0_43, %c0_44] : memref<256x128xbf16, #tpu.memory_space<vmem>>, vector<256x128xbf16>
    %cst_45 = arith.constant dense<0.000000e+00> : vector<8x128xf32>
    %57 = tpu.matmul %55, %56, %cst_45 {dimension_numbers = #tpu.dot_dimension_numbers<[1], [0], [0], [1], [0, 0, 1, 1], [], []>} : vector<8x256xbf16>, vector<256x128xbf16>, vector<8x128xf32> -> vector<8x128xf32>
    %c0_46 = arith.constant 0 : index
    %c0_47 = arith.constant 0 : index
    %58 = vector.load %arg18[%c0_46, %c0_47] : memref<1x128xf32, #tpu.memory_space<vmem>>, vector<1x128xf32>
    %59 = vector.broadcast %58 : vector<1x128xf32> to vector<8x128xf32>
    %60 = arith.addf %57, %59 : vector<8x128xf32>
    %cst_48 = arith.constant 0.000000e+00 : f32
    %61 = vector.broadcast %cst_48 : f32 to vector<8x128xf32>
    %62 = arith.maximumf %60, %61 : vector<8x128xf32>
    %63 = arith.truncf %62 : vector<8x128xf32> to vector<8x128xbf16>
    %c0_49 = arith.constant 0 : index
    %c0_50 = arith.constant 0 : index
    %64 = vector.load %arg19[%c0_49, %c0_50] : memref<128x6xbf16, #tpu.memory_space<vmem>>, vector<128x6xbf16>
    %cst_51 = arith.constant dense<0.000000e+00> : vector<8x6xf32>
    %65 = tpu.matmul %63, %64, %cst_51 {dimension_numbers = #tpu.dot_dimension_numbers<[1], [0], [0], [1], [0, 0, 1, 1], [], []>} : vector<8x128xbf16>, vector<128x6xbf16>, vector<8x6xf32> -> vector<8x6xf32>
    %c0_52 = arith.constant 0 : index
    %c0_53 = arith.constant 0 : index
    %66 = vector.load %arg20[%c0_52, %c0_53] : memref<1x6xf32, #tpu.memory_space<vmem>>, vector<1x6xf32>
    %67 = vector.broadcast %66 : vector<1x6xf32> to vector<8x6xf32>
    %68 = arith.addf %65, %67 : vector<8x6xf32>
    %69 = arith.mulf %39, %68 : vector<8x6xf32>
    %70 = vector.broadcast %2 : vector<8x1xf32> to vector<8x6xf32>
    %71 = arith.mulf %69, %70 : vector<8x6xf32>
    %c0_54 = arith.constant 0 : index
    %c0_55 = arith.constant 0 : index
    %72 = vector.load %arg21[%c0_54, %c0_55] : memref<8x6xf32, #tpu.memory_space<vmem>>, vector<8x6xf32>
    tpu.vector_store %arg21[%c0_54, %c0_55], %71 {strides = array<i32>} : memref<8x6xf32, #tpu.memory_space<vmem>>, vector<8x6xf32>,
    return
  }
  func.func @transform_0(%arg0: i32) -> (i32, i32) {
    %c0_i32 = arith.constant 0 : i32
    %c0_i32_0 = arith.constant 0 : i32
    return %arg0, %c0_i32 : i32, i32
  }
  func.func @transform_1(%arg0: i32) -> (i32, i32) {
    %c0_i32 = arith.constant 0 : i32
    %c0_i32_0 = arith.constant 0 : i32
    return %arg0, %c0_i32 : i32, i32
  }
  func.func @transform_2(%arg0: i32) -> (i32, i32) {
    %c0_i32 = arith.constant 0 : i32
    %c0_i32_0 = arith.constant 0 : i32
    return %arg0, %c0_i32 : i32, i32
  }
  func.func @transform_3(%arg0: i32) -> (i32, i32) {
    %c0_i32 = arith.constant 0 : i32
    %c0_i32_0 = arith.constant 0 : i32
    %c0_i32_1 = arith.constant 0 : i32
    return %c0_i32, %c0_i32_0 : i32, i32
  }
  func.func @transform_4(%arg0: i32) -> (i32, i32) {
    %c0_i32 = arith.constant 0 : i32
    %c0_i32_0 = arith.constant 0 : i32
    %c0_i32_1 = arith.constant 0 : i32
    return %c0_i32, %c0_i32_0 : i32, i32
  }
  func.func @transform_5(%arg0: i32) -> (i32, i32) {
    %c0_i32 = arith.constant 0 : i32
    %c0_i32_0 = arith.constant 0 : i32
    %c0_i32_1 = arith.constant 0 : i32
    return %c0_i32, %c0_i32_0 : i32, i32
  }
  func.func @transform_6(%arg0: i32) -> (i32, i32) {
    %c0_i32 = arith.constant 0 : i32
    %c0_i32_0 = arith.constant 0 : i32
    %c0_i32_1 = arith.constant 0 : i32
    return %c0_i32, %c0_i32_0 : i32, i32
  }
  func.func @transform_7(%arg0: i32) -> (i32, i32) {
    %c0_i32 = arith.constant 0 : i32
    %c0_i32_0 = arith.constant 0 : i32
    %c0_i32_1 = arith.constant 0 : i32
    return %c0_i32, %c0_i32_0 : i32, i32
  }
  func.func @transform_8(%arg0: i32) -> (i32, i32) {
    %c0_i32 = arith.constant 0 : i32
    %c0_i32_0 = arith.constant 0 : i32
    %c0_i32_1 = arith.constant 0 : i32
    return %c0_i32, %c0_i32_0 : i32, i32
  }
  func.func @transform_9(%arg0: i32) -> (i32, i32) {
    %c0_i32 = arith.constant 0 : i32
    %c0_i32_0 = arith.constant 0 : i32
    %c0_i32_1 = arith.constant 0 : i32
    return %c0_i32, %c0_i32_0 : i32, i32
  }
  func.func @transform_10(%arg0: i32) -> (i32, i32) {
    %c0_i32 = arith.constant 0 : i32
    %c0_i32_0 = arith.constant 0 : i32
    %c0_i32_1 = arith.constant 0 : i32
    return %c0_i32, %c0_i32_0 : i32, i32
  }
  func.func @transform_11(%arg0: i32) -> (i32, i32) {
    %c0_i32 = arith.constant 0 : i32
    %c0_i32_0 = arith.constant 0 : i32
    %c0_i32_1 = arith.constant 0 : i32
    return %c0_i32, %c0_i32_0 : i32, i32
  }
  func.func @transform_12(%arg0: i32) -> (i32, i32) {
    %c0_i32 = arith.constant 0 : i32
    %c0_i32_0 = arith.constant 0 : i32
    %c0_i32_1 = arith.constant 0 : i32
    return %c0_i32, %c0_i32_0 : i32, i32
  }
  func.func @transform_13(%arg0: i32) -> (i32, i32) {
    %c0_i32 = arith.constant 0 : i32
    %c0_i32_0 = arith.constant 0 : i32
    %c0_i32_1 = arith.constant 0 : i32
    return %c0_i32, %c0_i32_0 : i32, i32
  }
  func.func @transform_14(%arg0: i32) -> (i32, i32) {
    %c0_i32 = arith.constant 0 : i32
    %c0_i32_0 = arith.constant 0 : i32
    %c0_i32_1 = arith.constant 0 : i32
    return %c0_i32, %c0_i32_0 : i32, i32
  }
  func.func @transform_15(%arg0: i32) -> (i32, i32) {
    %c0_i32 = arith.constant 0 : i32
    %c0_i32_0 = arith.constant 0 : i32
    %c0_i32_1 = arith.constant 0 : i32
    return %c0_i32, %c0_i32_0 : i32, i32
  }
  func.func @transform_16(%arg0: i32) -> (i32, i32) {
    %c0_i32 = arith.constant 0 : i32
    %c0_i32_0 = arith.constant 0 : i32
    %c0_i32_1 = arith.constant 0 : i32
    return %c0_i32, %c0_i32_0 : i32, i32
  }
  func.func @transform_17(%arg0: i32) -> (i32, i32) {
    %c0_i32 = arith.constant 0 : i32
    %c0_i32_0 = arith.constant 0 : i32
    %c0_i32_1 = arith.constant 0 : i32
    return %c0_i32, %c0_i32_0 : i32, i32
  }
  func.func @transform_18(%arg0: i32) -> (i32, i32) {
    %c0_i32 = arith.constant 0 : i32
    %c0_i32_0 = arith.constant 0 : i32
    %c0_i32_1 = arith.constant 0 : i32
    return %c0_i32, %c0_i32_0 : i32, i32
  }
  func.func @transform_19(%arg0: i32) -> (i32, i32) {
    %c0_i32 = arith.constant 0 : i32
    %c0_i32_0 = arith.constant 0 : i32
    %c0_i32_1 = arith.constant 0 : i32
    return %c0_i32, %c0_i32_0 : i32, i32
  }
  func.func @transform_20(%arg0: i32) -> (i32, i32) {
    %c0_i32 = arith.constant 0 : i32
    %c0_i32_0 = arith.constant 0 : i32
    return %arg0, %c0_i32 : i32, i32
  }
}

</mosaic_0001>

<bundles_post_ra>
// kernel: mpnn_forward.5
= control target key start
LH: loop header
LB: loop body
LE: loop exit
PB: predicated region body
PF: predicated region fallthrough
CT: control target
= control target key end

     0   :  { %13 = vsyncpa [#allocation3], 0  ;;  %s1657_s0 = inlined_call_operand.vmem [shape: bf16[128,4], index: 0, kind: input, shape index: {}]   ;;  %s1658_s1 = inlined_call_operand.vmem [shape: f32[128,1], index: 1, kind: input, shape index: {}]   ;;  %s1659_s2 = inlined_call_operand.vmem [shape: bf16[4,128], index: 2, kind: input, shape index: {}]   ;;  %s1660_s3 = inlined_call_operand.vmem [shape: f32[1,128], index: 3, kind: input, shape index: {}]   ;;  %s1661_s4 = inlined_call_operand.vmem [shape: bf16[128,256], index: 4, kind: input, shape index: {}]   ;;  %s1662_s5 = inlined_call_operand.hbm [shape: f32[1,256], index: 5, kind: input, shape index: {}]   ;;  %s1663_s6 = inlined_call_operand.vmem [shape: bf16[256,128], index: 6, kind: input, shape index: {}]   ;;  %s1664_s7 = inlined_call_operand.hbm [shape: f32[1,128], index: 7, kind: input, shape index: {}]   ;;  %s1665_s8 = inlined_call_operand.vmem [shape: bf16[128,128], index: 8, kind: output, shape index: {}]  }
   0x1   :  { %14 = vsyncpa [#allocation5], 0  ;;  %s1437_s27 = smov 0  }
   0x2 LB: > { %s1087_s28 = sadd.s32 4294967295, %s1387_s27   ;;  %p1089_p0 = scmp.ge.s32.totalorder %s1387_s27, 1  ;;  %s1387_s27 = sphi %s1437_s27, %s20_s27  }
   0x3   : > { %p229_p1 = scmp.lt.s32.totalorder %s1387_s27, 3  ;;  %p1447_p2 = scmp.eq.s32.totalorder %s1087_s28, 0 }
   0x4   : > { %s1389_s9 = smov [#allocation2]   ;;  %s1390_s11 = smov [#allocation4]  }
   0x5   : > { %s1669_s29 = scalar_select %p1447_p2, 1, 0 }
   0x6   : > { %p1451_p3 = pnand %p1089_p0, %p229_p1  ;;  %s251_s10 = sshll.u32 %s1389_s9, 4  ;;  %s252_s10 = int_to_ptr.vmem [resolvable:$true] %s251_s10 }
   0x7   : > { %s265_s12 = sshll.u32 %s1390_s11, 4  ;;  %s1317_s16 = scalar_lea.hbm %s1662_s5, 32  ;;  %s1463_s12 = int_to_ptr.vmem [resolvable:$true] %s265_s12 }
   0x8   : > { %s1670_s30 = scalar_select %p1451_p3, 1, 0 }
   0x9   : > { %p1249_p4 = pneg %p1451_p3  ;;  %p1318_p6 = scmp.ne.s32.totalorder %s1662_s5, %s1317_s16 }
   0xa   : > { %p1324_p10 = scmp.lt.u32.totalorder %s1317_s16, %s1662_s5 }
   0xb   : > { %p1459_p5 = pnand %p1447_p2, %p1249_p4 }
   0xd   : > { %p1319_p7 = pneg %p1459_p5 }
   0xf   : > { %p1320_p8 = pnand %p1319_p7, %p1318_p6 }
  0x11   : > { %p1321_p9 = pneg %p1320_p8 }
  0x13   : > { %p1326_p11 = pnand %p1324_p10, %p1321_p9 }
  0x15   : > { %1329 = shalt.err (!%p1326_p11)
}
  0x16   : > { %s1330_s21 = scalar_lea.vmem %s252_s10, 32  ;;  %p1338_p1 = scmp.lt.s32.totalorder %s252_s10, %s252_s10 }
  0x17   : > { %p1331_p12 = scmp.ne.s32.totalorder %s252_s10, %s1330_s21  ;;  %p1339_p4 = scmp.lt.s32.totalorder %s1330_s21, %s1330_s21 }
  0x19   : > { %p1333_p13 = pnand %p1331_p12, %p1319_p7  ;;  %p1340_p2 = por %p1339_p4, %p1338_p1 }
  0x1b   : > { %p1334_p0 = pneg %p1333_p13 }
  0x1d   : > { %p1341_p3 = pnand %p1340_p2, %p1334_p0 }
  0x1f   : > { %1344 = shalt.err (!%p1341_p3)
}
  0x20   : > { %1252 = dma.hbm_to_vmem [thread:$0]  (!%p1459_p5), %s1662_s5, 32, %s252_s10, [#allocation3]  }
  0x21   : > { %s1345_s26 = scalar_lea.hbm %s1664_s7, 16 }
  0x22   : > { %p1346_p6 = scmp.ne.s32.totalorder %s1664_s7, %s1345_s26  ;;  %p1352_p3 = scmp.lt.u32.totalorder %s1345_s26, %s1664_s7 }
  0x24   : > { %p1348_p8 = pnand %p1346_p6, %p1319_p7 }
  0x26   : > { %p1349_p2 = pneg %p1348_p8 }
  0x28   : > { %p1354_p9 = pnand %p1352_p3, %p1349_p2 }
  0x2a   : > { %1357 = shalt.err (!%p1354_p9)
}
  0x2b   : > { %s1358_s10 = scalar_lea.vmem %s1463_s12, 16  ;;  %s1365_s16 = scalar_lea.vmem %s1463_s12, 32 }
  0x2c   : > { %p1359_p10 = scmp.ne.s32.totalorder %s1463_s12, %s1358_s10  ;;  %p1366_p13 = scmp.lt.s32.totalorder %s1463_s12, %s1463_s12 }
  0x2d   : > { %p1367_p0 = scmp.lt.s32.totalorder %s1365_s16, %s1358_s10 }
  0x2e   : > { %p1361_p11 = pnand %p1359_p10, %p1319_p7 }
  0x2f   : > { %p1368_p1 = por %p1367_p0, %p1366_p13 }
  0x30   : > { %p1362_p12 = pneg %p1361_p11 }
  0x32   : > { %p1369_p4 = pnand %p1368_p1, %p1362_p12 }
  0x34   : > { %1372 = shalt.err (!%p1369_p4)
}
  0x35   : > { %1255 = dma.hbm_to_vmem [thread:$0]  (!%p1459_p5), %s1664_s7, 16, %s1463_s12, [#allocation5]  }
  0x36   : > { %p1672_p6 = scmp.ne.s32.totalorder %s1670_s30, 0 }
  0x37   : > { %p1673_p7 = scmp.ne.s32.totalorder (!%p1672_p6), %s1669_s29, 0 }
  0x38   : > { %296 = sbr.rel (%p1672_p6) target bundleno = 767 (0x2ff), region = 52 }
  0x3f   : > { %1378 = dma.done.wait (%p1673_p7), [#allocation3], 32  }
  0x40   : > { %1380 = vsyncadd (%p1673_p7), [#allocation3], 4294967264 }
  0x41   : > { %1382 = dma.done.wait (%p1673_p7), [#allocation5], 16  }
  0x42   : > { %1384 = vsyncadd (%p1673_p7), [#allocation5], 4294967280  ;;  %s1096_s13 = sshll.u32 %s1087_s28, 3  ;;  %vm407_vm0 = vcmask 1041408   ;;  %vm394_vm1 = vcmask 31744   ;;  %v1391_v22 = vmov 0  }
  0x43   : > { %p340_p8 = scmp.lt.s32.totalorder %s1096_s13, 15  ;;  %v366_v0 = vld [vmem:[%s1659_s2] sm:$0x3]  ;;  %v1277_v5 = vld [vmem:[%s1661_s4 + $0x4] ss:$8 sps:$4 sm:$0xff]   ;;  %628 = vmatprep.mubr.bf16.mxu1 %v1391_v22  ;;  %1271 = vset.pattern.permute.xlu0 %v1391_v22  ;;  %v1305_v27 = vld [vmem:[%s1663_s6 + $0x50] sm:$0xff]  }
  0x44   : > { %1240 = vmatprep.subr.msk.bf16.mxu0 %vm407_vm0, %v366_v0  ;;  %v409_v1 = vsel %vm407_vm0, %v366_v0, 0  ;;  %v1279_v6 = vld [vmem:[%s1661_s4] ss:$8 sps:$4 sm:$0xff]   ;;  %v1280_v7 = vld [vmem:[%s1661_s4 + $0x14] ss:$8 sps:$4 sm:$0xff]   ;;  %596 = vmatprep.subr.bf16.mxu1 %v1277_v5 }
  0x45   : > { %s1675_s13 = smov (!%p340_p8, %s1096_s13), 15  ;;  %1231 = vmatpush3.bf16.msra.mxu0 %v409_v1  ;;  %597 = vmatpush1.bf16.msra.mxu1 %v1279_v6  ;;  %v1282_v8 = vld [vmem:[%s1661_s4 + $0x10] ss:$8 sps:$4 sm:$0xff]   ;;  %v1283_v10 = vld [vmem:[%s1661_s4 + $0x24] ss:$8 sps:$4 sm:$0xff]  }
  0x46   : > { %s1097_s30 = sshll.u32 %s1675_s13, 2  ;;  %598 = vmatprep.subr.bf16.mxu1 %v1280_v7  ;;  %v1285_v11 = vld [vmem:[%s1661_s4 + $0x20] ss:$8 sps:$4 sm:$0xff]   ;;  %v1286_v12 = vld [vmem:[%s1661_s4 + $0x34] ss:$8 sps:$4 sm:$0xff]   ;;  %1272 = vset.pattern.permute.xlu1 %v1391_v22  ;;  %s1099_s15 = sshll.u32 %s1675_s13, 3 }
  0x47   : > { %s343_s20 = scalar_lea.vmem %s1657_s0, %s1097_s30  ;;  %v1288_v13 = vld [vmem:[%s1661_s4 + $0x30] ss:$8 sps:$4 sm:$0xff]   ;;  %v1289_v14 = vld [vmem:[%s1661_s4 + $0x44] ss:$8 sps:$4 sm:$0xff]   ;;  %v1291_v15 = vld [vmem:[%s1661_s4 + $0x40] ss:$8 sps:$4 sm:$0xff]   ;;  %s349_s17 = scalar_lea.vmem %s1658_s1, %s1099_s15 }
  0x48   : > { %v1273_v2 = vld [vmem:[%s343_s20] sm:$0xff]   ;;  %v1274_v3 = vld [vmem:[%s343_s20 + $0x8] sm:$0xff]   ;;  %v1275_v4 = vld [vmem:[%s343_s20 + $0x10] sm:$0xff]   ;;  %s1648_s19 = scalar_lea.vmem %s1665_s8, %s1097_s30 }
  0x49   : > { %1232 = vmatprep.mubr.msk.bf16.mxu0 %vm394_vm1, %v1273_v2  ;;  %v1276_v9 = vld [vmem:[%s343_s20 + $0x18] sm:$0xff]   ;;  %599 = vmatpush1.bf16.msra.mxu1 %v1282_v8  ;;  %v1295_v18 = vld [vmem:[%s1661_s4 + $0x64] ss:$8 sps:$4 sm:$0xff]   ;;  %v1297_v19 = vld [vmem:[%s1661_s4 + $0x60] ss:$8 sps:$4 sm:$0xff]  }
  0x4a   : > { %1233 = vmatmul.mubr.msk.bf16.vlgmr.msra.gmra.mrb[0].mxu0 %vm394_vm1, %v1274_v3  ;;  %600 = vmatprep.subr.bf16.mxu1 %v1283_v10  ;;  %v1292_v16 = vld [vmem:[%s1661_s4 + $0x54] ss:$8 sps:$4 sm:$0xff]   ;;  %v1294_v17 = vld [vmem:[%s1661_s4 + $0x50] ss:$8 sps:$4 sm:$0xff]   ;;  %v1301_v23 = vld [vmem:[%s1663_s6 + $0x40] sm:$0xff]  }
  0x4b   : > { %1236 = vmatprep.mubr.msk.bf16.mxu0 %vm394_vm1, %v1275_v4  ;;  %v1298_v20 = vld [vmem:[%s1661_s4 + $0x74] ss:$8 sps:$4 sm:$0xff]   ;;  %v1300_v21 = vld [vmem:[%s1661_s4 + $0x70] ss:$8 sps:$4 sm:$0xff]   ;;  %v1302_v24 = vld [vmem:[%s1663_s6] sm:$0xff]   ;;  %1190 = vmatprep.subr.bf16.mxu0 %v1301_v23 }
  0x4c   : > { %v1303_v25 = vld [vmem:[%s1663_s6 + $0x48] sm:$0xff]   ;;  %1191 = vmatpush3.bf16.msra.mxu0 %v1302_v24  ;;  %v1306_v28 = vld [vmem:[%s1663_s6 + $0x10] sm:$0xff]   ;;  %v1307_v29 = vld [vmem:[%s1663_s6 + $0x58] sm:$0xff]  }
  0x4d   : > { %601 = vmatpush1.bf16.msra.mxu1 %v1285_v11  ;;  %v1304_v26 = vld [vmem:[%s1663_s6 + $0x8] sm:$0xff]   ;;  %1192 = vmatprep.subr.bf16.mxu0 %v1303_v25  ;;  %v1308_v30 = vld [vmem:[%s1663_s6 + $0x18] sm:$0xff]   ;;  %v1309_v31 = vld [vmem:[%s1663_s6 + $0x60] sm:$0xff]  }
  0x4e   : > { %602 = vmatprep.subr.bf16.mxu1 %v1286_v12  ;;  %v1310_v32 = vld [vmem:[%s1663_s6 + $0x20] sm:$0xff]   ;;  %v1311_v33 = vld [vmem:[%s1663_s6 + $0x68] sm:$0xff]   ;;  %v1313_v0 = vld [vmem:[%s1663_s6 + $0x70] sm:$0xff]   ;;  %v506_v12 = vlaneseq }
  0x4f   : > { %v1102_v34 = vld [vmem:[%s1660_s3] ss:$0 sm:$0xff]  ;;  %v1312_v63 = vld [vmem:[%s1663_s6 + $0x28] sm:$0xff]   ;;  %v1314_v1 = vld [vmem:[%s1663_s6 + $0x30] sm:$0xff]  }
  0x50   : > { %1193 = vmatpush3.bf16.msra.mxu0 %v1304_v26  ;;  %v1315_v2 = vld [vmem:[%s1663_s6 + $0x78] sm:$0xff]   ;;  %v901_v4 = vld [vmem:[%s349_s17] sm:$0xff]  ;;  %v903_v5 = vld [vmem:[%s349_s17 + $0x10] sm:$0xff] }
  0x51   : > { %603 = vmatpush1.bf16.msra.mxu1 %v1288_v13  ;;  %1194 = vmatprep.subr.bf16.mxu0 %v1305_v27  ;;  %v1316_v3 = vld [vmem:[%s1663_s6 + $0x38] sm:$0xff]   ;;  %v902_v6 = vld [vmem:[%s349_s17 + $0x8] sm:$0xff]  ;;  %v907_v11 = vld [vmem:[%s349_s17 + $0x30] sm:$0xff]  ;;  %v507_v13 = vshrl.u32 %v506_v12, 7 }
  0x52   : > { %1237 = vmatmul.mubr.msk.bf16.gmra.mrb[4].mxu0 %vm394_vm1, %v1276_v9  ;;  %604 = vmatprep.subr.bf16.mxu1 %v1289_v14  ;;  %v904_v7 = vld [vmem:[%s349_s17 + $0x18] sm:$0xff]  ;;  %v906_v8 = vld [vmem:[%s349_s17 + $0x28] sm:$0xff]  ;;  %v905_v9 = vld [vmem:[%s349_s17 + $0x20] sm:$0xff] }
  0x53   : > { %911 = vperm.xlu0 %1271, %v901_v4   ;;  %921 = vperm.xlu1 %1272, %v903_v5   ;;  %v908_v10 = vld [vmem:[%s349_s17 + $0x38] sm:$0xff]  ;;  %v508_v14 = vsub.s32 0, %v507_v13  ;;  %v1127_v12 = vld [vmem:[#allocation4] ss:$0 sm:$0xff] }
  0x54   : > { %1195 = vmatpush3.bf16.msra.mxu0 %v1306_v28 }
  0x55   : > { %605 = vmatpush1.bf16.msra.mxu1 %v1291_v15  ;;  %1196 = vmatprep.subr.bf16.mxu0 %v1307_v29  ;;  %v504_v15 = vld [vmem:[#allocation2] sm:$0x3] }
  0x56   : > { %606 = vmatprep.subr.bf16.mxu1 %v1292_v16  ;;  %v512_v16 = vsub.s32 1, %v507_v13 }
  0x57   : > { %916 = vperm.xlu0 %1271, %v902_v6   ;;  %926 = vperm.xlu1 %1272, %v904_v7  }
  0x58   : > { %1197 = vmatpush3.bf16.msra.mxu0 %v1308_v30 }
  0x59   : > { %607 = vmatpush1.bf16.msra.mxu1 %v1294_v17  ;;  %1198 = vmatprep.subr.bf16.mxu0 %v1309_v31  ;;  %v509_v17 = vrot.slane %v504_v15, %v508_v14 }
  0x5a   : > { %608 = vmatprep.subr.bf16.mxu1 %v1295_v18  ;;  %v513_v18 = vrot.slane %v504_v15, %v512_v16 }
  0x5b   : > { %936 = vperm.xlu1 %1272, %v906_v8   ;;  %931 = vperm.xlu0 %1271, %v905_v9  }
  0x5c   : > { %1199 = vmatpush3.bf16.msra.mxu0 %v1310_v32 }
  0x5d   : > { %609 = vmatpush1.bf16.msra.mxu1 %v1297_v19  ;;  %1200 = vmatprep.subr.bf16.mxu0 %v1311_v33 }
  0x5e   : > { %610 = vmatprep.subr.bf16.mxu1 %v1298_v20 }
  0x5f   : > { %946 = vperm.xlu1 %1272, %v908_v10   ;;  %941 = vperm.xlu0 %1271, %v907_v11  }
  0x60   : > { %1201 = vmatpush3.bf16.msra.mxu0 %v1312_v63 }
  0x61   : > { %611 = vmatpush1.bf16.msra.mxu1 %v1300_v21  ;;  %1202 = vmatprep.subr.bf16.mxu0 %v1313_v0 }
  0x64   : > { %1203 = vmatpush3.bf16.msra.mxu0 %v1314_v1 }
  0x65   : > { %1204 = vmatprep.subr.bf16.mxu0 %v1315_v2 }
  0x68   : > { %1205 = vmatpush3.bf16.msra.mxu0 %v1316_v3 }
  0xd2   : > { %v912_v14 = vpop.permute.xlu0 %911 }
 0x11d   : > { %v1234_v35 = vpop.f32.mrb[0].mxu0 }
 0x11e   : > { %v454_v36 = vadd.f32 %v1234_v35, %v1102_v34  ;;  %v445_v37 = vpop.f32.mrb[1].mxu0 }
 0x11f   : > { %v446_v38 = vadd.f32 %v1102_v34, %v445_v37  ;;  %v1235_v39 = vpop.f32.mrb[2].mxu0 }
 0x120   : > { %v457_v40 = vadd.f32 %v1235_v39, %v1102_v34  ;;  %v448_v41 = vpop.f32.mrb[3].mxu0  ;;  %v478_v43 = vmax.f32 %v454_v36, 0.0 }
 0x121   : > { %v449_v42 = vadd.f32 %v1102_v34, %v448_v41  ;;  %v476_v45 = vmax.f32 %v446_v38, 0.0 }
 0x122   : > { %v479_v44 = vmax.f32 %v457_v40, 0.0 }
 0x123   : > { %v477_v46 = vmax.f32 %v449_v42, 0.0 }
 0x124   : > { %v485_v47 = vpack.c.bf16 %v479_v44, %v478_v43 }
 0x125   : > { %v484_v48 = vpack.c.bf16 %v477_v46, %v476_v45  ;;  %v1238_v49 = vpop.f32.mrb[4].mxu0 }
 0x126   : > { %v470_v50 = vadd.f32 %v1238_v49, %v1102_v34  ;;  %v461_v51 = vpop.f32.mrb[5].mxu0 }
 0x127   : > { %629 = vmatmul.mubr.bf16.vlgmr.msra.gmra.mrb[0].mxu1 %v484_v48  ;;  %v462_v52 = vadd.f32 %v1102_v34, %v461_v51  ;;  %v1239_v53 = vpop.f32.mrb[6].mxu0 }
 0x128   : > { %v482_v54 = vmax.f32 %v470_v50, 0.0  ;;  %v473_v55 = vadd.f32 %v1239_v53, %v1102_v34  ;;  %v464_v56 = vpop.f32.mrb[7].mxu0  ;;  %638 = vmatprep.mubr.bf16.mxu1 %v1391_v22 }
 0x129   : > { %v480_v57 = vmax.f32 %v462_v52, 0.0  ;;  %v465_v58 = vadd.f32 %v1102_v34, %v464_v56 }
 0x12a   : > { %v483_v59 = vmax.f32 %v473_v55, 0.0 }
 0x12b   : > { %v481_v60 = vmax.f32 %v465_v58, 0.0 }
 0x12c   : > { %v487_v61 = vpack.c.bf16 %v483_v59, %v482_v54 }
 0x12d   : > { %v486_v62 = vpack.c.bf16 %v481_v60, %v480_v57 }
 0x12f   : > { %639 = vmatmul.mubr.bf16.gmra.mrb[4].mxu1 %v485_v47 }
 0x130   : > { %648 = vmatprep.mubr.bf16.mxu1 %v1391_v22 }
 0x137   : > { %649 = vmatmul.mubr.bf16.gmra.mrb[8].mxu1 %v486_v62 }
 0x138   : > { %658 = vmatprep.mubr.bf16.mxu1 %v1391_v22 }
 0x13f   : > { %659 = vmatmul.mubr.bf16.gmra.mrb[12].mxu1 %v487_v61 }
 0x1fa   : > { %v630_v19 = vpop.f32.mrb[0].mxu1 }
 0x1fb   : > { %v631_v20 = vadd.f32 %v630_v19, %v509_v17  ;;  %v632_v21 = vpop.f32.mrb[1].mxu1 }
 0x1fc   : > { %v633_v22 = vadd.f32 %v632_v21, %v513_v18  ;;  %v634_v23 = vpop.f32.mrb[2].mxu1 }
 0x1fd   : > { %v635_v24 = vadd.f32 %v634_v23, %v509_v17  ;;  %v636_v25 = vpop.f32.mrb[3].mxu1  ;;  %v669_v27 = vmax.f32 %v631_v20, 0.0 }
 0x1fe   : > { %v637_v26 = vadd.f32 %v636_v25, %v513_v18  ;;  %v670_v29 = vmax.f32 %v633_v22, 0.0  ;;  %v917_v22 = vpop.permute.xlu0 %916 }
 0x1ff   : > { %v671_v28 = vmax.f32 %v635_v24, 0.0 }
 0x200   : > { %v672_v30 = vmax.f32 %v637_v26, 0.0 }
 0x201   : > { %v685_v31 = vpack.c.bf16 %v671_v28, %v669_v27 }
 0x202   : > { %v686_v32 = vpack.c.bf16 %v672_v30, %v670_v29  ;;  %v640_v33 = vpop.f32.mrb[4].mxu1  ;;  %v922_v30 = vpop.permute.xlu1 %921 }
 0x203   : > { %v641_v34 = vadd.f32 %v640_v33, %v509_v17  ;;  %v642_v35 = vpop.f32.mrb[5].mxu1 }
 0x204   : > { %v643_v36 = vadd.f32 %v642_v35, %v513_v18  ;;  %v644_v37 = vpop.f32.mrb[6].mxu1  ;;  %860 = vmatprep.mubr.bf16.mxu0 %v686_v32 }
 0x205   : > { %v645_v38 = vadd.f32 %v644_v37, %v509_v17  ;;  %v646_v39 = vpop.f32.mrb[7].mxu1  ;;  %861 = vmatmul.mubr.bf16.vlgmr.msra.gmra.mrb[8].mxu0 %v685_v31  ;;  %v673_v41 = vmax.f32 %v641_v34, 0.0 }
 0x206   : > { %v647_v40 = vadd.f32 %v646_v39, %v513_v18  ;;  %v674_v43 = vmax.f32 %v643_v36, 0.0  ;;  %v927_v39 = vpop.permute.xlu1 %926 }
 0x207   : > { %v675_v42 = vmax.f32 %v645_v38, 0.0 }
 0x208   : > { %v676_v44 = vmax.f32 %v647_v40, 0.0 }
 0x209   : > { %v687_v45 = vpack.c.bf16 %v675_v42, %v673_v41 }
 0x20a   : > { %v688_v46 = vpack.c.bf16 %v676_v44, %v674_v43  ;;  %v650_v47 = vpop.f32.mrb[8].mxu1 }
 0x20b   : > { %v651_v48 = vadd.f32 %v650_v47, %v509_v17  ;;  %v652_v49 = vpop.f32.mrb[9].mxu1 }
 0x20c   : > { %v653_v50 = vadd.f32 %v652_v49, %v513_v18  ;;  %v654_v51 = vpop.f32.mrb[10].mxu1  ;;  %868 = vmatprep.mubr.bf16.mxu0 %v688_v46 }
 0x20d   : > { %v655_v52 = vadd.f32 %v654_v51, %v509_v17  ;;  %v656_v53 = vpop.f32.mrb[11].mxu1  ;;  %869 = vmatmul.mubr.bf16.gmra.mrb[12].mxu0 %v687_v45  ;;  %v677_v55 = vmax.f32 %v651_v48, 0.0  ;;  %v937_v51 = vpop.permute.xlu1 %936 }
 0x20e   : > { %v657_v54 = vadd.f32 %v656_v53, %v513_v18  ;;  %v678_v57 = vmax.f32 %v653_v50, 0.0 }
 0x20f   : > { %v679_v56 = vmax.f32 %v655_v52, 0.0 }
 0x210   : > { %v680_v58 = vmax.f32 %v657_v54, 0.0  ;;  %v932_v54 = vpop.permute.xlu0 %931 }
 0x211   : > { %v689_v59 = vpack.c.bf16 %v679_v56, %v677_v55 }
 0x212   : > { %v690_v60 = vpack.c.bf16 %v680_v58, %v678_v57  ;;  %v660_v61 = vpop.f32.mrb[12].mxu1 }
 0x213   : > { %v661_v62 = vadd.f32 %v660_v61, %v509_v17  ;;  %v662_v63 = vpop.f32.mrb[13].mxu1 }
 0x214   : > { %v663_v0 = vadd.f32 %v662_v63, %v513_v18  ;;  %v664_v1 = vpop.f32.mrb[14].mxu1  ;;  %876 = vmatprep.mubr.bf16.mxu0 %v690_v60 }
 0x215   : > { %v665_v2 = vadd.f32 %v664_v1, %v509_v17  ;;  %v666_v3 = vpop.f32.mrb[15].mxu1  ;;  %877 = vmatmul.mubr.bf16.gmra.mrb[16].mxu0 %v689_v59  ;;  %v681_v5 = vmax.f32 %v661_v62, 0.0 }
 0x216   : > { %v667_v4 = vadd.f32 %v666_v3, %v513_v18  ;;  %v682_v7 = vmax.f32 %v663_v0, 0.0  ;;  %v947_v3 = vpop.permute.xlu1 %946 }
 0x217   : > { %v683_v6 = vmax.f32 %v665_v2, 0.0 }
 0x218   : > { %v684_v8 = vmax.f32 %v667_v4, 0.0  ;;  %v942_v4 = vpop.permute.xlu0 %941 }
 0x219   : > { %v691_v9 = vpack.c.bf16 %v683_v6, %v681_v5 }
 0x21a   : > { %v692_v10 = vpack.c.bf16 %v684_v8, %v682_v7 }
 0x21c   : > { %884 = vmatprep.mubr.bf16.mxu0 %v692_v10 }
 0x21d   : > { %885 = vmatmul.mubr.bf16.gmra.mrb[20].mxu0 %v691_v9 }
 0x2d8   : > { %v1206_v11 = vpop.f32.mrb[8].mxu0 }
 0x2d9   : > { %v1207_v13 = vpop.f32.mrb[9].mxu0 }
 0x2da   : > { %v1208_v15 = vadd.f32 %v1207_v13, %v1206_v11  ;;  %v1209_v16 = vpop.f32.mrb[10].mxu0 }
 0x2db   : > { %v1210_v19 = vpop.f32.mrb[11].mxu0 }
 0x2dc   : > { %v863_v17 = vadd.f32 %v1208_v15, %v1127_v12  ;;  %v1211_v20 = vadd.f32 %v1210_v19, %v1209_v16 }
 0x2de   : > { %v866_v21 = vadd.f32 %v1211_v20, %v1127_v12  ;;  %v893_v18 = vmax.f32 %v863_v17, 0.0 }
 0x2e0   : > { %v1212_v23 = vpop.f32.mrb[12].mxu0  ;;  %v894_v24 = vmax.f32 %v866_v21, 0.0  ;;  %v949_v26 = vmul.f32 %v912_v14, %v893_v18 }
 0x2e1   : > { %v1213_v25 = vpop.f32.mrb[13].mxu0 }
 0x2e2   : > { %v950_v27 = vmul.f32 %v917_v22, %v894_v24  ;;  %v1214_v28 = vadd.f32 %v1213_v25, %v1212_v23  ;;  %v1215_v29 = vpop.f32.mrb[14].mxu0 }
 0x2e3   : > { %v1216_v31 = vpop.f32.mrb[15].mxu0 }
 0x2e4   : > { %v1165_v32 = vpack.c.bf16 %v950_v27, %v949_v26  ;;  %v871_v33 = vadd.f32 %v1214_v28, %v1127_v12  ;;  %v1217_v34 = vadd.f32 %v1216_v31, %v1215_v29 }
 0x2e6   : > { %1166 = vst [vmem:[%s1648_s19] sm:$0xff] %v1165_v32   ;;  %v895_v35 = vmax.f32 %v871_v33, 0.0  ;;  %v874_v36 = vadd.f32 %v1217_v34, %v1127_v12 }
 0x2e8   : > { %v896_v37 = vmax.f32 %v874_v36, 0.0  ;;  %v1218_v38 = vpop.f32.mrb[16].mxu0  ;;  %v951_v41 = vmul.f32 %v922_v30, %v895_v35 }
 0x2e9   : > { %v1219_v40 = vpop.f32.mrb[17].mxu0 }
 0x2ea   : > { %v952_v42 = vmul.f32 %v927_v39, %v896_v37  ;;  %v1220_v43 = vadd.f32 %v1219_v40, %v1218_v38  ;;  %v1221_v44 = vpop.f32.mrb[18].mxu0 }
 0x2eb   : > { %v1222_v45 = vpop.f32.mrb[19].mxu0 }
 0x2ec   : > { %v1170_v46 = vpack.c.bf16 %v952_v42, %v951_v41  ;;  %v879_v47 = vadd.f32 %v1220_v43, %v1127_v12  ;;  %v1223_v48 = vadd.f32 %v1222_v45, %v1221_v44 }
 0x2ee   : > { %1182 = vst [vmem:[%s1648_s19 + $0x8] sm:$0xff] %v1170_v46   ;;  %v897_v49 = vmax.f32 %v879_v47, 0.0  ;;  %v882_v50 = vadd.f32 %v1223_v48, %v1127_v12 }
 0x2f0   : > { %v898_v52 = vmax.f32 %v882_v50, 0.0  ;;  %v1224_v53 = vpop.f32.mrb[20].mxu0  ;;  %v953_v56 = vmul.f32 %v932_v54, %v897_v49 }
 0x2f1   : > { %v1225_v55 = vpop.f32.mrb[21].mxu0 }
 0x2f2   : > { %v954_v57 = vmul.f32 %v937_v51, %v898_v52  ;;  %v1226_v58 = vadd.f32 %v1225_v55, %v1224_v53  ;;  %v1227_v59 = vpop.f32.mrb[22].mxu0 }
 0x2f3   : > { %v1228_v60 = vpop.f32.mrb[23].mxu0 }
 0x2f4   : > { %v1175_v61 = vpack.c.bf16 %v954_v57, %v953_v56  ;;  %v887_v62 = vadd.f32 %v1226_v58, %v1127_v12  ;;  %v1229_v63 = vadd.f32 %v1228_v60, %v1227_v59 }
 0x2f6   : > { %1183 = vst [vmem:[%s1648_s19 + $0x10] sm:$0xff] %v1175_v61   ;;  %v899_v0 = vmax.f32 %v887_v62, 0.0  ;;  %v890_v1 = vadd.f32 %v1229_v63, %v1127_v12 }
 0x2f8   : > { %v900_v2 = vmax.f32 %v890_v1, 0.0  ;;  %v955_v5 = vmul.f32 %v942_v4, %v899_v0 }
 0x2fa   : > { %v956_v6 = vmul.f32 %v947_v3, %v900_v2 }
 0x2fc   : > { %v1180_v7 = vpack.c.bf16 %v956_v6, %v955_v5 }
 0x2fe   : > { %1184 = vst [vmem:[%s1648_s19 + $0x18] sm:$0xff] %v1180_v7  }
 0x2ff PF: > { %s20_s27 = sadd.s32 1, %s1387_s27  }
 0x300   : > { %p17_p5 = scmp.ge.s32.totalorder %s20_s27, 4  }
 0x302   :  { %19 = sbr.rel (!%p17_p5) target bundleno = 2 (0x2), region = 94 }
 0x309   :  { %1019 = vsyncpa [#allocation3], 1 }
 0x30a   :  { %1021 = vsyncpa [#allocation3 + $0x1], 1 }
 0x30b   :  { %1022 = vsyncpa [#allocation5], 1 }

// kernel: mpnn_forward.6
= control target key start
LH: loop header
LB: loop body
LE: loop exit
PB: predicated region body
PF: predicated region fallthrough
CT: control target
= control target key end

     0   :  { %s1742_s12 = smov 0   ;;  %s2089_s0 = inlined_call_operand.vmem [shape: bf16[16,32], index: 0, kind: input, shape index: {}]   ;;  %s2090_s1 = inlined_call_operand.vmem [shape: bf16[32,4096], index: 1, kind: input, shape index: {}]   ;;  %s2091_s2 = inlined_call_operand.vmem [shape: f32[1,4096], index: 2, kind: input, shape index: {}]   ;;  %s2092_s3 = inlined_call_operand.vmem [shape: bf16[16,4096], index: 3, kind: output, shape index: {}]  }
   0x1 LB: > { %s1581_s13 = sadd.s32 4294967295, %s1719_s12   ;;  %p1585_p0 = scmp.ge.s32.totalorder %s1719_s12, 1  ;;  %s1719_s12 = sphi %s1742_s12, %s13_s12  }
   0x2   : > { %p136_p1 = scmp.lt.s32.totalorder %s1719_s12, 3 }
   0x4   : > { %p137_p2 = pnand %p1585_p0, %p136_p1 }
   0x5   : > { %v170_v0 = vld [vmem:[%s2090_s1] sm:$0xff] (!%p137_p2)  ;;  %v171_v2 = vld [vmem:[%s2090_s1 + $0x8] sm:$0xff] (!%p137_p2)  ;;  %p1759_p3 = scmp.lt.s32.totalorder (!%p137_p2), %s1581_s13, 1  ;;  %v1721_v8 = vmov (!%p137_p2), 0   ;;  %v172_v14 = vld [vmem:[%s2090_s1 + $0x10] sm:$0xff] (!%p137_p2)  ;;  %vm722_vm0 = vcmask (!%p137_p2), 261120  }
   0x6   : > { %140 = sbr.rel (%p137_p2) target bundleno = 291 (0x123), region = 32  ;;  %v186_v1 = vld [vmem:[%s2090_s1 + $0x80] sm:$0xff] (!%p137_p2)  ;;  %v187_v4 = vld [vmem:[%s2090_s1 + $0x88] sm:$0xff] (!%p137_p2)  ;;  %758 = vmatprep.mubr.bf16.mxu0 (!%p137_p2), %v1721_v8  ;;  %799 = vmatprep.mubr.bf16.mxu1 (!%p137_p2), %v1721_v8  ;;  %v188_v16 = vld [vmem:[%s2090_s1 + $0x90] sm:$0xff] (!%p137_p2) }
   0x7   : > { %v1590_v3 = vcombine.high (!%p137_p2), %v170_v0, %v186_v1  ;;  %v1589_v5 = vcombine.low (!%p137_p2), %v170_v0, %v186_v1  ;;  %v202_v6 = vld [vmem:[%s2090_s1 + $0x100] sm:$0xff] (!%p137_p2)  ;;  %v1592_v9 = vcombine.high (!%p137_p2), %v171_v2, %v187_v4  ;;  %v1591_v10 = vcombine.low (!%p137_p2), %v171_v2, %v187_v4  ;;  %v203_v12 = vld [vmem:[%s2090_s1 + $0x108] sm:$0xff] (!%p137_p2)  ;;  %v173_v17 = vld [vmem:[%s2090_s1 + $0x18] sm:$0xff] (!%p137_p2) }
   0x8   : > { %v218_v7 = vld [vmem:[%s2090_s1 + $0x180] sm:$0xff] (!%p137_p2)  ;;  %v219_v13 = vld [vmem:[%s2090_s1 + $0x188] sm:$0xff] (!%p137_p2)  ;;  %v189_v18 = vld [vmem:[%s2090_s1 + $0x98] sm:$0xff] (!%p137_p2)  ;;  %v1594_v21 = vcombine.high (!%p137_p2), %v172_v14, %v188_v16  ;;  %v1593_v28 = vcombine.low (!%p137_p2), %v172_v14, %v188_v16 }
   0x9   : > { %v1622_v11 = vcombine.high (!%p137_p2), %v202_v6, %v218_v7  ;;  %726 = vmatprep.subr.bf16.mxu0 (!%p137_p2), %v1590_v3  ;;  %v1624_v15 = vcombine.high (!%p137_p2), %v203_v12, %v219_v13  ;;  %767 = vmatprep.subr.bf16.mxu1 (!%p137_p2), %v1592_v9  ;;  %v1621_v19 = vcombine.low (!%p137_p2), %v202_v6, %v218_v7  ;;  %v204_v23 = vld [vmem:[%s2090_s1 + $0x110] sm:$0xff] (!%p137_p2)  ;;  %v205_v25 = vld [vmem:[%s2090_s1 + $0x118] sm:$0xff] (!%p137_p2)  ;;  %v174_v32 = vld [vmem:[%s2090_s1 + $0x20] sm:$0xff] (!%p137_p2) }
   0xa   : > { %727 = vmatpush1.bf16.msra.mxu0 (!%p137_p2), %v1589_v5  ;;  %768 = vmatpush1.bf16.msra.mxu1 (!%p137_p2), %v1591_v10  ;;  %v1623_v20 = vcombine.low (!%p137_p2), %v203_v12, %v219_v13  ;;  %v1596_v22 = vcombine.high (!%p137_p2), %v173_v17, %v189_v18  ;;  %v220_v24 = vld [vmem:[%s2090_s1 + $0x190] sm:$0xff] (!%p137_p2)  ;;  %v221_v26 = vld [vmem:[%s2090_s1 + $0x198] sm:$0xff] (!%p137_p2)  ;;  %v1595_v29 = vcombine.low (!%p137_p2), %v173_v17, %v189_v18  ;;  %v190_v33 = vld [vmem:[%s2090_s1 + $0xa0] sm:$0xff] (!%p137_p2) }
   0xb   : > { %728 = vmatprep.subr.bf16.mxu0 (!%p137_p2), %v1622_v11  ;;  %769 = vmatprep.subr.bf16.mxu1 (!%p137_p2), %v1624_v15  ;;  %v1626_v30 = vcombine.high (!%p137_p2), %v204_v23, %v220_v24  ;;  %v1628_v31 = vcombine.high (!%p137_p2), %v205_v25, %v221_v26  ;;  %v175_v34 = vld [vmem:[%s2090_s1 + $0x28] sm:$0xff] (!%p137_p2)  ;;  %v1625_v36 = vcombine.low (!%p137_p2), %v204_v23, %v220_v24  ;;  %v206_v40 = vld [vmem:[%s2090_s1 + $0x120] sm:$0xff] (!%p137_p2)  ;;  %v176_v48 = vld [vmem:[%s2090_s1 + $0x30] sm:$0xff] (!%p137_p2) }
   0xc   : > { %v191_v35 = vld [vmem:[%s2090_s1 + $0xa8] sm:$0xff] (!%p137_p2)  ;;  %v1627_v37 = vcombine.low (!%p137_p2), %v205_v25, %v221_v26  ;;  %v1598_v38 = vcombine.high (!%p137_p2), %v174_v32, %v190_v33  ;;  %v222_v41 = vld [vmem:[%s2090_s1 + $0x1a0] sm:$0xff] (!%p137_p2)  ;;  %v1597_v44 = vcombine.low (!%p137_p2), %v174_v32, %v190_v33  ;;  %v192_v49 = vld [vmem:[%s2090_s1 + $0xb0] sm:$0xff] (!%p137_p2) }
   0xd   : > { %s2095_s13 = smov (!%p1759_p3, %s1581_s13), 1  ;;  %v1600_v39 = vcombine.high %v175_v34, %v191_v35  ;;  %v207_v42 = vld [vmem:[%s2090_s1 + $0x128] sm:$0xff]  ;;  %v1599_v45 = vcombine.low %v175_v34, %v191_v35  ;;  %v1630_v46 = vcombine.high %v206_v40, %v222_v41  ;;  %v177_v50 = vld [vmem:[%s2090_s1 + $0x38] sm:$0xff]  ;;  %v1629_v52 = vcombine.low %v206_v40, %v222_v41  ;;  %v208_v56 = vld [vmem:[%s2090_s1 + $0x130] sm:$0xff] }
   0xe   : > { %s1586_s14 = sshll.u32 %s2095_s13, 2  ;;  %729 = vmatpush1.bf16.msra.mxu0 %v1621_v19  ;;  %770 = vmatpush1.bf16.msra.mxu1 %v1623_v20  ;;  %v223_v43 = vld [vmem:[%s2090_s1 + $0x1a8] sm:$0xff]  ;;  %v193_v51 = vld [vmem:[%s2090_s1 + $0xb8] sm:$0xff]  ;;  %v1602_v54 = vcombine.high %v176_v48, %v192_v49  ;;  %v224_v57 = vld [vmem:[%s2090_s1 + $0x1b0] sm:$0xff]  ;;  %v1601_v60 = vcombine.low %v176_v48, %v192_v49  ;;  %s1687_s24 = sshll.u32 %s2095_s13, 7 }
   0xf   : > { %s162_s17 = scalar_lea.vmem %s2089_s0, %s1586_s14  ;;  %808 = vmatprep.subr.bf16.mxu0 %v1594_v21  ;;  %849 = vmatprep.subr.bf16.mxu1 %v1596_v22  ;;  %v1632_v47 = vcombine.high %v207_v42, %v223_v43  ;;  %v1631_v53 = vcombine.low %v207_v42, %v223_v43  ;;  %v1604_v55 = vcombine.high %v177_v50, %v193_v51  ;;  %v209_v58 = vld [vmem:[%s2090_s1 + $0x138] sm:$0xff]  ;;  %v178_v0 = vld [vmem:[%s2090_s1 + $0x40] sm:$0xff]  ;;  %v179_v2 = vld [vmem:[%s2090_s1 + $0x48] sm:$0xff]  ;;  %s2029_s27 = scalar_lea.vmem %s2092_s3, %s1687_s24 }
  0x10   : > { %v1812_v27 = vld [vmem:[%s162_s17] sm:$0xf]  ;;  %v225_v59 = vld [vmem:[%s2090_s1 + $0x1b8] sm:$0xff]  ;;  %v1603_v61 = vcombine.low %v177_v50, %v193_v51  ;;  %v1634_v62 = vcombine.high %v208_v56, %v224_v57  ;;  %v195_v3 = vld [vmem:[%s2090_s1 + $0xc8] sm:$0xff]  ;;  %v1633_v4 = vcombine.low %v208_v56, %v224_v57 }
  0x11   : > { %1653 = vmatmul.mubr.msk.bf16.vlgmr.msra.gmra.mrb[0].mxu0 %vm722_vm0, %v1812_v27  ;;  %1654 = vmatmul.mubr.msk.bf16.vlgmr.msra.gmra.mrb[0].mxu1 %vm722_vm0, %v1812_v27  ;;  %v1636_v63 = vcombine.high %v209_v58, %v225_v59  ;;  %v194_v1 = vld [vmem:[%s2090_s1 + $0xc0] sm:$0xff]  ;;  %v1635_v5 = vcombine.low %v209_v58, %v225_v59  ;;  %v1608_v7 = vcombine.high %v179_v2, %v195_v3  ;;  %v211_v11 = vld [vmem:[%s2090_s1 + $0x148] sm:$0xff]  ;;  %v180_v17 = vld [vmem:[%s2090_s1 + $0x50] sm:$0xff] }
  0x12   : > { %809 = vmatpush1.bf16.msra.mxu0 %v1593_v28  ;;  %850 = vmatpush1.bf16.msra.mxu1 %v1595_v29  ;;  %v1606_v6 = vcombine.high %v178_v0, %v194_v1  ;;  %v210_v9 = vld [vmem:[%s2090_s1 + $0x140] sm:$0xff]  ;;  %v227_v12 = vld [vmem:[%s2090_s1 + $0x1c8] sm:$0xff]  ;;  %v1605_v13 = vcombine.low %v178_v0, %v194_v1  ;;  %v1607_v14 = vcombine.low %v179_v2, %v195_v3  ;;  %v196_v18 = vld [vmem:[%s2090_s1 + $0xd0] sm:$0xff] }
  0x13   : > { %810 = vmatprep.subr.bf16.mxu0 %v1626_v30  ;;  %851 = vmatprep.subr.bf16.mxu1 %v1628_v31  ;;  %v226_v10 = vld [vmem:[%s2090_s1 + $0x1c0] sm:$0xff]  ;;  %v1640_v16 = vcombine.high %v211_v11, %v227_v12  ;;  %v181_v19 = vld [vmem:[%s2090_s1 + $0x58] sm:$0xff]  ;;  %v1639_v22 = vcombine.low %v211_v11, %v227_v12  ;;  %v1610_v23 = vcombine.high %v180_v17, %v196_v18  ;;  %v212_v25 = vld [vmem:[%s2090_s1 + $0x150] sm:$0xff] }
  0x14   : > { %840 = vmatprep.mubr.bf16.mxu0 %v1721_v8  ;;  %881 = vmatprep.mubr.bf16.mxu1 %v1721_v8  ;;  %v1638_v15 = vcombine.high %v210_v9, %v226_v10  ;;  %v197_v20 = vld [vmem:[%s2090_s1 + $0xd8] sm:$0xff]  ;;  %v1637_v21 = vcombine.low %v210_v9, %v226_v10  ;;  %v228_v26 = vld [vmem:[%s2090_s1 + $0x1d0] sm:$0xff]  ;;  %v1609_v30 = vcombine.low %v180_v17, %v196_v18  ;;  %v182_v34 = vld [vmem:[%s2090_s1 + $0x60] sm:$0xff] }
  0x15   : > { %v1612_v24 = vcombine.high %v181_v19, %v197_v20  ;;  %v213_v28 = vld [vmem:[%s2090_s1 + $0x158] sm:$0xff]  ;;  %v1611_v31 = vcombine.low %v181_v19, %v197_v20  ;;  %v1642_v32 = vcombine.high %v212_v25, %v228_v26  ;;  %v198_v35 = vld [vmem:[%s2090_s1 + $0xe0] sm:$0xff]  ;;  %v184_v50 = vld [vmem:[%s2090_s1 + $0x70] sm:$0xff] }
  0x16   : > { %811 = vmatpush1.bf16.msra.mxu0 %v1625_v36  ;;  %852 = vmatpush1.bf16.msra.mxu1 %v1627_v37  ;;  %v229_v29 = vld [vmem:[%s2090_s1 + $0x1d8] sm:$0xff]  ;;  %v183_v36 = vld [vmem:[%s2090_s1 + $0x68] sm:$0xff]  ;;  %v1614_v40 = vcombine.high %v182_v34, %v198_v35  ;;  %v214_v42 = vld [vmem:[%s2090_s1 + $0x160] sm:$0xff] }
  0x17   : > { %890 = vmatprep.subr.bf16.mxu0 %v1598_v38  ;;  %931 = vmatprep.subr.bf16.mxu1 %v1600_v39  ;;  %v1644_v33 = vcombine.high %v213_v28, %v229_v29  ;;  %v199_v37 = vld [vmem:[%s2090_s1 + $0xe8] sm:$0xff]  ;;  %v1641_v38 = vcombine.low %v212_v25, %v228_v26  ;;  %v1643_v39 = vcombine.low %v213_v28, %v229_v29  ;;  %v230_v43 = vld [vmem:[%s2090_s1 + $0x1e0] sm:$0xff]  ;;  %v200_v51 = vld [vmem:[%s2090_s1 + $0xf0] sm:$0xff] }
  0x18   : > { %v1616_v41 = vcombine.high %v183_v36, %v199_v37  ;;  %v1646_v48 = vcombine.high %v214_v42, %v230_v43  ;;  %v1618_v56 = vcombine.high %v184_v50, %v200_v51  ;;  %v216_v58 = vld [vmem:[%s2090_s1 + $0x170] sm:$0xff] }
  0x19   : > { %1655 = vmatmul.mubr.msk.bf16.vlgmr.msra.gmra.mrb[4].mxu0 %vm722_vm0, %v1812_v27  ;;  %1656 = vmatmul.mubr.msk.bf16.vlgmr.msra.gmra.mrb[4].mxu1 %vm722_vm0, %v1812_v27  ;;  %v232_v59 = vld [vmem:[%s2090_s1 + $0x1f0] sm:$0xff] }
  0x1a   : > { %891 = vmatpush1.bf16.msra.mxu0 %v1597_v44  ;;  %932 = vmatpush1.bf16.msra.mxu1 %v1599_v45  ;;  %v215_v44 = vld [vmem:[%s2090_s1 + $0x168] sm:$0xff]  ;;  %v1650_v0 = vcombine.high %v216_v58, %v232_v59  ;;  %v1649_v2 = vcombine.low %v216_v58, %v232_v59 }
  0x1b   : > { %892 = vmatprep.subr.bf16.mxu0 %v1630_v46  ;;  %933 = vmatprep.subr.bf16.mxu1 %v1632_v47  ;;  %v231_v45 = vld [vmem:[%s2090_s1 + $0x1e8] sm:$0xff]  ;;  %v1613_v46 = vcombine.low %v182_v34, %v198_v35  ;;  %v1615_v47 = vcombine.low %v183_v36, %v199_v37 }
  0x1c   : > { %922 = vmatprep.mubr.bf16.mxu0 %v1721_v8  ;;  %963 = vmatprep.mubr.bf16.mxu1 %v1721_v8  ;;  %v1648_v49 = vcombine.high %v215_v44, %v231_v45 }
  0x1e   : > { %893 = vmatpush1.bf16.msra.mxu0 %v1629_v52  ;;  %934 = vmatpush1.bf16.msra.mxu1 %v1631_v53  ;;  %v185_v52 = vld [vmem:[%s2090_s1 + $0x78] sm:$0xff] }
  0x1f   : > { %972 = vmatprep.subr.bf16.mxu0 %v1602_v54  ;;  %1013 = vmatprep.subr.bf16.mxu1 %v1604_v55  ;;  %v201_v53 = vld [vmem:[%s2090_s1 + $0xf8] sm:$0xff]  ;;  %v1645_v54 = vcombine.low %v214_v42, %v230_v43  ;;  %v1647_v55 = vcombine.low %v215_v44, %v231_v45  ;;  %v235_v45 = vld [vmem:[%s2091_s2 + $0x8] sm:$0xff] }
  0x20   : > { %v1620_v57 = vcombine.high %v185_v52, %v201_v53 }
  0x21   : > { %1657 = vmatmul.mubr.msk.bf16.vlgmr.msra.gmra.mrb[8].mxu0 %vm722_vm0, %v1812_v27  ;;  %1658 = vmatmul.mubr.msk.bf16.vlgmr.msra.gmra.mrb[8].mxu1 %vm722_vm0, %v1812_v27 }
  0x22   : > { %973 = vmatpush1.bf16.msra.mxu0 %v1601_v60  ;;  %1014 = vmatpush1.bf16.msra.mxu1 %v1603_v61  ;;  %v217_v60 = vld [vmem:[%s2090_s1 + $0x178] sm:$0xff] }
  0x23   : > { %974 = vmatprep.subr.bf16.mxu0 %v1634_v62  ;;  %1015 = vmatprep.subr.bf16.mxu1 %v1636_v63  ;;  %v233_v61 = vld [vmem:[%s2090_s1 + $0x1f8] sm:$0xff]  ;;  %v1617_v62 = vcombine.low %v184_v50, %v200_v51  ;;  %v1619_v63 = vcombine.low %v185_v52, %v201_v53 }
  0x24   : > { %1004 = vmatprep.mubr.bf16.mxu0 %v1721_v8  ;;  %1045 = vmatprep.mubr.bf16.mxu1 %v1721_v8  ;;  %v1652_v1 = vcombine.high %v217_v60, %v233_v61  ;;  %v1651_v3 = vcombine.low %v217_v60, %v233_v61 }
  0x26   : > { %975 = vmatpush1.bf16.msra.mxu0 %v1633_v4  ;;  %1016 = vmatpush1.bf16.msra.mxu1 %v1635_v5  ;;  %v242_v4 = vlaneseq }
  0x27   : > { %1054 = vmatprep.subr.bf16.mxu0 %v1606_v6  ;;  %1095 = vmatprep.subr.bf16.mxu1 %v1608_v7  ;;  %v234_v7 = vld [vmem:[%s2091_s2] sm:$0xff] }
  0x28   : > { %v243_v5 = vshrl.u32 %v242_v4, 7 }
  0x29   : > { %1659 = vmatmul.mubr.msk.bf16.vlgmr.msra.gmra.mrb[12].mxu0 %vm722_vm0, %v1812_v27  ;;  %1660 = vmatmul.mubr.msk.bf16.vlgmr.msra.gmra.mrb[12].mxu1 %vm722_vm0, %v1812_v27 }
  0x2a   : > { %1055 = vmatpush1.bf16.msra.mxu0 %v1605_v13  ;;  %1096 = vmatpush1.bf16.msra.mxu1 %v1607_v14  ;;  %v2004_v6 = vsub.s32 0, %v243_v5  ;;  %v2009_v9 = vsub.s32 2, %v243_v5  ;;  %v2013_v10 = vsub.s32 3, %v243_v5  ;;  %v2020_v18 = vsub.s32 4, %v243_v5 }
  0x2b   : > { %1056 = vmatprep.subr.bf16.mxu0 %v1638_v15  ;;  %1097 = vmatprep.subr.bf16.mxu1 %v1640_v16  ;;  %v2031_v29 = vsub.s32 7, %v243_v5 }
  0x2c   : > { %1086 = vmatprep.mubr.bf16.mxu0 %v1721_v8  ;;  %1127 = vmatprep.mubr.bf16.mxu1 %v1721_v8  ;;  %v245_v11 = vrot.slane %v234_v7, %v2004_v6  ;;  %v253_v12 = vrot.slane %v234_v7, %v2009_v9  ;;  %v257_v13 = vrot.slane %v234_v7, %v2013_v10 }
  0x2d   : > { %v273_v36 = vrot.slane %v234_v7, %v2031_v29  ;;  %v277_v52 = vrot.slane %v235_v45, %v2004_v6  ;;  %v285_v53 = vrot.slane %v235_v45, %v2009_v9 }
  0x2e   : > { %1057 = vmatpush1.bf16.msra.mxu0 %v1637_v21  ;;  %1098 = vmatpush1.bf16.msra.mxu1 %v1639_v22 }
  0x2f   : > { %1136 = vmatprep.subr.bf16.mxu0 %v1610_v23  ;;  %1177 = vmatprep.subr.bf16.mxu1 %v1612_v24  ;;  %v2022_v23 = vsub.s32 6, %v243_v5  ;;  %v2024_v24 = vsub.s32 5, %v243_v5 }
  0x31   : > { %1661 = vmatmul.mubr.msk.bf16.vlgmr.msra.gmra.mrb[16].mxu0 %vm722_vm0, %v1812_v27  ;;  %1662 = vmatmul.mubr.msk.bf16.vlgmr.msra.gmra.mrb[16].mxu1 %vm722_vm0, %v1812_v27  ;;  %v269_v34 = vrot.slane %v234_v7, %v2022_v23  ;;  %v265_v35 = vrot.slane %v234_v7, %v2024_v24 }
  0x32   : > { %1137 = vmatpush1.bf16.msra.mxu0 %v1609_v30  ;;  %1178 = vmatpush1.bf16.msra.mxu1 %v1611_v31 }
  0x33   : > { %1138 = vmatprep.subr.bf16.mxu0 %v1642_v32  ;;  %1179 = vmatprep.subr.bf16.mxu1 %v1644_v33  ;;  %v261_v33 = vrot.slane %v234_v7, %v2020_v18 }
  0x34   : > { %1168 = vmatprep.mubr.bf16.mxu0 %v1721_v8  ;;  %1209 = vmatprep.mubr.bf16.mxu1 %v1721_v8 }
  0x36   : > { %1139 = vmatpush1.bf16.msra.mxu0 %v1641_v38  ;;  %1180 = vmatpush1.bf16.msra.mxu1 %v1643_v39 }
  0x37   : > { %1218 = vmatprep.subr.bf16.mxu0 %v1614_v40  ;;  %1259 = vmatprep.subr.bf16.mxu1 %v1616_v41 }
  0x39   : > { %1663 = vmatmul.mubr.msk.bf16.vlgmr.msra.gmra.mrb[20].mxu0 %vm722_vm0, %v1812_v27  ;;  %1664 = vmatmul.mubr.msk.bf16.vlgmr.msra.gmra.mrb[20].mxu1 %vm722_vm0, %v1812_v27 }
  0x3a   : > { %1219 = vmatpush1.bf16.msra.mxu0 %v1613_v46  ;;  %1260 = vmatpush1.bf16.msra.mxu1 %v1615_v47 }
  0x3b   : > { %1220 = vmatprep.subr.bf16.mxu0 %v1646_v48  ;;  %1261 = vmatprep.subr.bf16.mxu1 %v1648_v49 }
  0x3c   : > { %1250 = vmatprep.mubr.bf16.mxu0 %v1721_v8  ;;  %1291 = vmatprep.mubr.bf16.mxu1 %v1721_v8 }
  0x3e   : > { %1221 = vmatpush1.bf16.msra.mxu0 %v1645_v54  ;;  %1262 = vmatpush1.bf16.msra.mxu1 %v1647_v55  ;;  %v289_v55 = vrot.slane %v235_v45, %v2013_v10 }
  0x3f   : > { %1300 = vmatprep.subr.bf16.mxu0 %v1618_v56  ;;  %1341 = vmatprep.subr.bf16.mxu1 %v1620_v57 }
  0x41   : > { %1665 = vmatmul.mubr.msk.bf16.vlgmr.msra.gmra.mrb[24].mxu0 %vm722_vm0, %v1812_v27  ;;  %1666 = vmatmul.mubr.msk.bf16.vlgmr.msra.gmra.mrb[24].mxu1 %vm722_vm0, %v1812_v27 }
  0x42   : > { %1301 = vmatpush1.bf16.msra.mxu0 %v1617_v62  ;;  %1342 = vmatpush1.bf16.msra.mxu1 %v1619_v63 }
  0x43   : > { %1302 = vmatprep.subr.bf16.mxu0 %v1650_v0  ;;  %1343 = vmatprep.subr.bf16.mxu1 %v1652_v1 }
  0x44   : > { %1332 = vmatprep.mubr.bf16.mxu0 %v1721_v8  ;;  %1373 = vmatprep.mubr.bf16.mxu1 %v1721_v8  ;;  %v2011_v8 = vsub.s32 1, %v243_v5 }
  0x46   : > { %1303 = vmatpush1.bf16.msra.mxu0 %v1649_v2  ;;  %1344 = vmatpush1.bf16.msra.mxu1 %v1651_v3  ;;  %v281_v54 = vrot.slane %v235_v45, %v2011_v8 }
  0x49   : > { %1667 = vmatmul.mubr.msk.bf16.vlgmr.msra.gmra.mrb[28].mxu0 %vm722_vm0, %v1812_v27  ;;  %1668 = vmatmul.mubr.msk.bf16.vlgmr.msra.gmra.mrb[28].mxu1 %vm722_vm0, %v1812_v27  ;;  %v249_v27 = vrot.slane %v234_v7, %v2011_v8  ;;  %v293_v7 = vrot.slane %v235_v45, %v2020_v18 }
  0xe4   : > { %v760_v14 = vpop.f32.mrb[0].mxu0  ;;  %v801_v16 = vpop.f32.mrb[0].mxu1 }
  0xe5   : > { %v761_v15 = vadd.f32 %v760_v14, %v245_v11  ;;  %v762_v17 = vpop.f32.mrb[1].mxu0  ;;  %v802_v19 = vadd.f32 %v801_v16, %v253_v12  ;;  %v803_v21 = vpop.f32.mrb[1].mxu1  ;;  %v301_v11 = vrot.slane %v235_v45, %v2022_v23  ;;  %v297_v12 = vrot.slane %v235_v45, %v2024_v24 }
  0xe6   : > { %v763_v20 = vadd.f32 %v762_v17, %v249_v27  ;;  %v764_v22 = vpop.f32.mrb[2].mxu0  ;;  %v804_v25 = vadd.f32 %v803_v21, %v257_v13  ;;  %v805_v26 = vpop.f32.mrb[2].mxu1  ;;  %v305_v27 = vrot.slane %v235_v45, %v2031_v29 }
  0xe7   : > { %v765_v28 = vpop.f32.mrb[3].mxu0  ;;  %v806_v31 = vpop.f32.mrb[3].mxu1  ;;  %v236_v22 = vld [vmem:[%s2091_s2 + $0x10] sm:$0xff] }
  0xe8   : > { %v1688_v30 = vpack.c.bf16 %v763_v20, %v761_v15  ;;  %v1689_v32 = vpack.c.bf16 %v804_v25, %v802_v19 }
  0xea   : > { %1510 = vst [vmem:[%s2029_s27] sm:$0xff] %v1688_v30  ;;  %1511 = vst [vmem:[%s2029_s27 + $0x8] sm:$0xff] %v1689_v32 }
  0xec   : > { %v842_v37 = vpop.f32.mrb[4].mxu0  ;;  %v883_v39 = vpop.f32.mrb[4].mxu1 }
  0xed   : > { %v843_v38 = vadd.f32 %v842_v37, %v261_v33  ;;  %v844_v40 = vpop.f32.mrb[5].mxu0  ;;  %v884_v41 = vadd.f32 %v883_v39, %v269_v34  ;;  %v885_v43 = vpop.f32.mrb[5].mxu1  ;;  %v309_v33 = vrot.slane %v236_v22, %v2004_v6  ;;  %v317_v34 = vrot.slane %v236_v22, %v2009_v9 }
  0xee   : > { %v845_v42 = vadd.f32 %v844_v40, %v265_v35  ;;  %v846_v44 = vpop.f32.mrb[6].mxu0  ;;  %v886_v46 = vadd.f32 %v885_v43, %v273_v36  ;;  %v887_v47 = vpop.f32.mrb[6].mxu1  ;;  %v313_v35 = vrot.slane %v236_v22, %v2011_v8  ;;  %v321_v36 = vrot.slane %v236_v22, %v2013_v10 }
  0xef   : > { %v847_v48 = vpop.f32.mrb[7].mxu0  ;;  %v888_v50 = vpop.f32.mrb[7].mxu1 }
  0xf0   : > { %v1690_v49 = vpack.c.bf16 %v845_v42, %v843_v38  ;;  %v1691_v51 = vpack.c.bf16 %v886_v46, %v884_v41 }
  0xf2   : > { %1512 = vst [vmem:[%s2029_s27 + $0x10] sm:$0xff] %v1690_v49  ;;  %1513 = vst [vmem:[%s2029_s27 + $0x18] sm:$0xff] %v1691_v51  ;;  %v325_v51 = vrot.slane %v236_v22, %v2020_v18 }
  0xf4   : > { %v924_v56 = vpop.f32.mrb[8].mxu0  ;;  %v965_v58 = vpop.f32.mrb[8].mxu1 }
  0xf5   : > { %v925_v57 = vadd.f32 %v924_v56, %v277_v52  ;;  %v926_v59 = vpop.f32.mrb[9].mxu0  ;;  %v966_v60 = vadd.f32 %v965_v58, %v285_v53  ;;  %v967_v62 = vpop.f32.mrb[9].mxu1  ;;  %v333_v52 = vrot.slane %v236_v22, %v2022_v23  ;;  %v329_v53 = vrot.slane %v236_v22, %v2024_v24 }
  0xf6   : > { %v927_v61 = vadd.f32 %v926_v59, %v281_v54  ;;  %v928_v63 = vpop.f32.mrb[10].mxu0  ;;  %v968_v0 = vadd.f32 %v967_v62, %v289_v55  ;;  %v969_v1 = vpop.f32.mrb[10].mxu1  ;;  %v337_v54 = vrot.slane %v236_v22, %v2031_v29 }
  0xf7   : > { %v929_v2 = vpop.f32.mrb[11].mxu0  ;;  %v970_v4 = vpop.f32.mrb[11].mxu1  ;;  %v237_v63 = vld [vmem:[%s2091_s2 + $0x18] sm:$0xff] }
  0xf8   : > { %v1692_v3 = vpack.c.bf16 %v927_v61, %v925_v57  ;;  %v1693_v5 = vpack.c.bf16 %v968_v0, %v966_v60 }
  0xfa   : > { %1514 = vst [vmem:[%s2029_s27 + $0x20] sm:$0xff] %v1692_v3  ;;  %1515 = vst [vmem:[%s2029_s27 + $0x28] sm:$0xff] %v1693_v5 }
  0xfc   : > { %v1006_v13 = vpop.f32.mrb[12].mxu0  ;;  %v1047_v15 = vpop.f32.mrb[12].mxu1 }
  0xfd   : > { %v1007_v14 = vadd.f32 %v1006_v13, %v293_v7  ;;  %v1008_v16 = vpop.f32.mrb[13].mxu0  ;;  %v1048_v17 = vadd.f32 %v1047_v15, %v301_v11  ;;  %v1049_v20 = vpop.f32.mrb[13].mxu1  ;;  %v341_v7 = vrot.slane %v237_v63, %v2004_v6  ;;  %v349_v11 = vrot.slane %v237_v63, %v2009_v9 }
  0xfe   : > { %v1009_v19 = vadd.f32 %v1008_v16, %v297_v12  ;;  %v1010_v21 = vpop.f32.mrb[14].mxu0  ;;  %v1050_v25 = vadd.f32 %v1049_v20, %v305_v27  ;;  %v1051_v26 = vpop.f32.mrb[14].mxu1  ;;  %v345_v12 = vrot.slane %v237_v63, %v2011_v8  ;;  %v353_v27 = vrot.slane %v237_v63, %v2013_v10 }
  0xff   : > { %v1011_v28 = vpop.f32.mrb[15].mxu0  ;;  %v1052_v31 = vpop.f32.mrb[15].mxu1  ;;  %v357_v8 = vrot.slane %v237_v63, %v2020_v18  ;;  %v365_v10 = vrot.slane %v237_v63, %v2022_v23 }
 0x100   : > { %v1694_v30 = vpack.c.bf16 %v1009_v19, %v1007_v14  ;;  %v1695_v32 = vpack.c.bf16 %v1050_v25, %v1048_v17  ;;  %v369_v31 = vrot.slane %v237_v63, %v2031_v29 }
 0x102   : > { %1516 = vst [vmem:[%s2029_s27 + $0x30] sm:$0xff] %v1694_v30  ;;  %1517 = vst [vmem:[%s2029_s27 + $0x38] sm:$0xff] %v1695_v32  ;;  %v361_v30 = vrot.slane %v237_v63, %v2024_v24 }
 0x104   : > { %v1088_v37 = vpop.f32.mrb[16].mxu0  ;;  %v1129_v39 = vpop.f32.mrb[16].mxu1 }
 0x105   : > { %v1089_v38 = vadd.f32 %v1088_v37, %v309_v33  ;;  %v1090_v40 = vpop.f32.mrb[17].mxu0  ;;  %v1130_v41 = vadd.f32 %v1129_v39, %v317_v34  ;;  %v1131_v43 = vpop.f32.mrb[17].mxu1 }
 0x106   : > { %v1091_v42 = vadd.f32 %v1090_v40, %v313_v35  ;;  %v1092_v44 = vpop.f32.mrb[18].mxu0  ;;  %v1132_v45 = vadd.f32 %v1131_v43, %v321_v36  ;;  %v1133_v46 = vpop.f32.mrb[18].mxu1 }
 0x107   : > { %v1093_v47 = vpop.f32.mrb[19].mxu0  ;;  %v1134_v49 = vpop.f32.mrb[19].mxu1 }
 0x108   : > { %v1696_v48 = vpack.c.bf16 %v1091_v42, %v1089_v38  ;;  %v1697_v50 = vpack.c.bf16 %v1132_v45, %v1130_v41 }
 0x10a   : > { %1518 = vst [vmem:[%s2029_s27 + $0x40] sm:$0xff] %v1696_v48  ;;  %1519 = vst [vmem:[%s2029_s27 + $0x48] sm:$0xff] %v1697_v50 }
 0x10c   : > { %v1170_v55 = vpop.f32.mrb[20].mxu0  ;;  %v1211_v57 = vpop.f32.mrb[20].mxu1 }
 0x10d   : > { %v1171_v56 = vadd.f32 %v1170_v55, %v325_v51  ;;  %v1172_v58 = vpop.f32.mrb[21].mxu0  ;;  %v1212_v59 = vadd.f32 %v1211_v57, %v333_v52  ;;  %v1213_v61 = vpop.f32.mrb[21].mxu1 }
 0x10e   : > { %v1173_v60 = vadd.f32 %v1172_v58, %v329_v53  ;;  %v1174_v62 = vpop.f32.mrb[22].mxu0  ;;  %v1214_v0 = vadd.f32 %v1213_v61, %v337_v54  ;;  %v1215_v1 = vpop.f32.mrb[22].mxu1 }
 0x10f   : > { %v1175_v2 = vpop.f32.mrb[23].mxu0  ;;  %v1216_v4 = vpop.f32.mrb[23].mxu1 }
 0x110   : > { %v1698_v3 = vpack.c.bf16 %v1173_v60, %v1171_v56  ;;  %v1699_v5 = vpack.c.bf16 %v1214_v0, %v1212_v59 }
 0x112   : > { %1520 = vst [vmem:[%s2029_s27 + $0x50] sm:$0xff] %v1698_v3  ;;  %1521 = vst [vmem:[%s2029_s27 + $0x58] sm:$0xff] %v1699_v5 }
 0x114   : > { %v1252_v13 = vpop.f32.mrb[24].mxu0  ;;  %v1293_v15 = vpop.f32.mrb[24].mxu1 }
 0x115   : > { %v1253_v14 = vadd.f32 %v1252_v13, %v341_v7  ;;  %v1254_v16 = vpop.f32.mrb[25].mxu0  ;;  %v1294_v17 = vadd.f32 %v1293_v15, %v349_v11  ;;  %v1295_v20 = vpop.f32.mrb[25].mxu1 }
 0x116   : > { %v1255_v19 = vadd.f32 %v1254_v16, %v345_v12  ;;  %v1256_v21 = vpop.f32.mrb[26].mxu0  ;;  %v1296_v22 = vadd.f32 %v1295_v20, %v353_v27  ;;  %v1297_v6 = vpop.f32.mrb[26].mxu1 }
 0x117   : > { %v1257_v25 = vpop.f32.mrb[27].mxu0  ;;  %v1298_v9 = vpop.f32.mrb[27].mxu1 }
 0x118   : > { %v1700_v26 = vpack.c.bf16 %v1255_v19, %v1253_v14  ;;  %v1701_v28 = vpack.c.bf16 %v1296_v22, %v1294_v17 }
 0x11a   : > { %1522 = vst [vmem:[%s2029_s27 + $0x60] sm:$0xff] %v1700_v26  ;;  %1523 = vst [vmem:[%s2029_s27 + $0x68] sm:$0xff] %v1701_v28 }
 0x11c   : > { %v1334_v32 = vpop.f32.mrb[28].mxu0  ;;  %v1375_v34 = vpop.f32.mrb[28].mxu1 }
 0x11d   : > { %v1335_v33 = vadd.f32 %v1334_v32, %v357_v8  ;;  %v1336_v35 = vpop.f32.mrb[29].mxu0  ;;  %v1376_v36 = vadd.f32 %v1375_v34, %v365_v10  ;;  %v1377_v38 = vpop.f32.mrb[29].mxu1 }
 0x11e   : > { %v1337_v37 = vadd.f32 %v1336_v35, %v361_v30  ;;  %v1338_v39 = vpop.f32.mrb[30].mxu0  ;;  %v1378_v40 = vadd.f32 %v1377_v38, %v369_v31  ;;  %v1379_v18 = vpop.f32.mrb[30].mxu1 }
 0x11f   : > { %v1339_v41 = vpop.f32.mrb[31].mxu0  ;;  %v1380_v23 = vpop.f32.mrb[31].mxu1 }
 0x120   : > { %v1702_v42 = vpack.c.bf16 %v1337_v37, %v1335_v33  ;;  %v1703_v43 = vpack.c.bf16 %v1378_v40, %v1376_v36 }
 0x122   : > { %1524 = vst [vmem:[%s2029_s27 + $0x70] sm:$0xff] %v1702_v42  ;;  %1525 = vst [vmem:[%s2029_s27 + $0x78] sm:$0xff] %v1703_v43 }
 0x123 PF: > { %s13_s12 = sadd.s32 1, %s1719_s12  }
 0x124   : > { %p10_p4 = scmp.ge.s32.totalorder %s13_s12, 4  }
 0x126   :  { %12 = sbr.rel (!%p10_p4) target bundleno = 1 (0x1), region = 62 }

// kernel: mpnn_forward.7
= control target key start
LH: loop header
LB: loop body
LE: loop exit
PB: predicated region body
PF: predicated region fallthrough
CT: control target
= control target key end

     0   :  { %s3680_s21 = smov 0   ;;  %s4186_s0 = inlined_call_operand.vmem [shape: bf16[2,8,1024], index: 0, kind: input, shape index: {}]   ;;  %s4187_s1 = inlined_call_operand.vmem [shape: bf16[2,8,8], index: 1, kind: input, shape index: {}]   ;;  %s4188_s2 = inlined_call_operand.vmem [shape: bf16[2,1024,32], index: 2, kind: input, shape index: {}]   ;;  %s4189_s3 = inlined_call_operand.vmem [shape: bf16[2,8,32], index: 3, kind: input, shape index: {}]   ;;  %s4190_s4 = inlined_call_operand.vmem [shape: f32[16,1], index: 4, kind: input, shape index: {}]   ;;  %s4191_s5 = inlined_call_operand.vmem [shape: bf16[32,32], index: 5, kind: input, shape index: {}]   ;;  %s4192_s6 = inlined_call_operand.vmem [shape: bf16[3,32,32], index: 6, kind: input, shape index: {}]   ;;  %s4193_s7 = inlined_call_operand.vmem [shape: bf16[3,32,32], index: 7, kind: input, shape index: {}]   ;;  %s4194_s8 = inlined_call_operand.vmem [shape: f32[3,1,32], index: 8, kind: input, shape index: {}]   ;;  %s4195_s9 = inlined_call_operand.vmem [shape: f32[3,1,32], index: 9, kind: input, shape index: {}]   ;;  %s4196_s10 = inlined_call_operand.vmem [shape: bf16[32,4096], index: 10, kind: input, shape index: {}]   ;;  %s4197_s11 = inlined_call_operand.vmem [shape: bf16[2,8,32], index: 11, kind: output, shape index: {0}]   ;;  %s4198_s12 = inlined_call_operand.vmem [shape: bf16[16,4096], index: 12, kind: output, shape index: {1}]  }
   0x1 LB: > { %s3057_s22 = sadd.s32 4294967295, %s3610_s21   ;;  %p3061_p0 = scmp.ge.s32.totalorder %s3610_s21, 1  ;;  %s3610_s21 = sphi %s3680_s21, %s23_s21  }
   0x2   : > { %p402_p1 = scmp.lt.s32.totalorder %s3610_s21, 3 }
   0x4   : > { %p403_p2 = pnand %p3061_p0, %p402_p1 }
   0x5   : > { %p465_p3 = scmp.lt.s32.totalorder (!%p403_p2), %s3057_s22, 1  ;;  %vm636_vm0 = vcmask (!%p403_p2), 1043456   ;;  %v3522_v0 = vld [vmem:[%s4191_s5] sm:$0xff] (!%p403_p2)   ;;  %v3612_v1 = vmov (!%p403_p2), 0.0   ;;  %vm3613_vm1 = vmmov (!%p403_p2), 0   ;;  %v3525_v2 = vld [vmem:[%s4191_s5 + $0x8] sm:$0xff] (!%p403_p2)  }
   0x6   : > { %406 = sbr.rel (%p403_p2) target bundleno = 1065 (0x429), region = 64  ;;  %3422 = vmatprep.subr.bf16.mxu0 (!%p403_p2), %v3612_v1  ;;  %3424 = vmatprep.mubr.msk.bf16.mxu0 (!%p403_p2), %vm3613_vm1, %v3612_v1  ;;  %vm632_vm2 = vcmask (!%p403_p2), 64512   ;;  %vm697_vm3 = vcmask (!%p403_p2), 261120   ;;  %vm1734_vm4 = vcmask (!%p403_p2), 257024  }
   0x7   : > { %3428 = vmatprep.subr.bf16.mxu1 (!%p403_p2), %v3612_v1  ;;  %3432 = vmatprep.mubr.msk.bf16.mxu1 (!%p403_p2), %vm3613_vm1, %v3612_v1 }
   0x8   : > { %3429 = vmatpush3.bf16.msra.mxu1 (!%p403_p2), %v3522_v0 }
   0x9   : > { %3430 = vmatprep.subr.bf16.mxu1 (!%p403_p2), %v3612_v1 }
   0xc   : > { %3431 = vmatpush3.bf16.msra.mxu1 (!%p403_p2), %v3525_v2 }
   0xd   : > { %s4200_s22 = smov (!%p465_p3, %s3057_s22), 1 }
   0xe   : > { %s3703_s27 = sshll.u32 %s4200_s22, 2  ;;  %s3293_s28 = sshll.u32 %s4200_s22, 9 }
   0xf   : > { %s3710_s13 = scalar_lea.vmem %s4188_s2, %s3293_s28  ;;  %s482_s16 = scalar_lea.vmem %s4189_s3, %s3703_s27 }
  0x10   : > { %v3716_v3 = vld [vmem:[%s482_s16] sm:$0xf]  ;;  %s473_s19 = scalar_lea.vmem %s4187_s1, %s3703_s27  ;;  %v3510_v8 = vld [vmem:[%s3710_s13 + $0x48] sm:$0xff]   ;;  %v3512_v10 = vld [vmem:[%s3710_s13 + $0x50] sm:$0xff]   ;;  %s3292_s20 = sshll.u32 %s4200_s22, 5 }
  0x11   : > { %v3508_v4 = vld [vmem:[%s3710_s13 + $0x40] sm:$0xff]   ;;  %v638_v5 = vsel %vm636_vm0, %v3716_v3, 0  ;;  %v3511_v9 = vld [vmem:[%s3710_s13 + $0x8] sm:$0xff]   ;;  %v3513_v11 = vld [vmem:[%s3710_s13 + $0x10] sm:$0xff]   ;;  %s3735_s25 = scalar_lea.vmem %s4186_s0, %s3292_s20  ;;  %s3068_s17 = sshll.u32 %s4200_s22, 3 }
  0x12   : > { %v3509_v6 = vld [vmem:[%s3710_s13] sm:$0xff]   ;;  %3423 = vmatpush3.bf16.msra.mxu0 %v638_v5  ;;  %v3514_v12 = vld [vmem:[%s3710_s13 + $0x58] sm:$0xff]   ;;  %v3518_v17 = vld [vmem:[%s3710_s13 + $0x68] sm:$0xff]   ;;  %s486_s20 = scalar_lea.vmem %s4190_s4, %s3068_s17  ;;  %s3294_s26 = sshll.u32 %s4200_s22, 7 }
  0x13   : > { %v629_v7 = vld [vmem:[%s473_s19] sm:$0xf]  ;;  %3316 = vmatprep.subr.bf16.mxu0 %v3508_v4  ;;  %v3515_v13 = vld [vmem:[%s3710_s13 + $0x18] sm:$0xff]   ;;  %v3519_v19 = vld [vmem:[%s3710_s13 + $0x28] sm:$0xff]   ;;  %s4165_s30 = scalar_lea.vmem %s4198_s12, %s3294_s26 }
  0x14   : > { %v3516_v14 = vld [vmem:[%s3710_s13 + $0x60] sm:$0xff]   ;;  %v3520_v20 = vld [vmem:[%s3710_s13 + $0x70] sm:$0xff]   ;;  %v3523_v22 = vld [vmem:[%s3710_s13 + $0x78] sm:$0xff]  }
  0x15   : > { %3425 = vmatmul.mubr.msk.bf16.vlgmr.msra.gmra.mrb[0].mxu0 %vm632_vm2, %v629_v7  ;;  %v3517_v15 = vld [vmem:[%s3710_s13 + $0x20] sm:$0xff]   ;;  %v3521_v21 = vld [vmem:[%s3710_s13 + $0x30] sm:$0xff]   ;;  %v3524_v23 = vld [vmem:[%s3710_s13 + $0x38] sm:$0xff]  }
  0x16   : > { %3317 = vmatpush3.bf16.msra.mxu0 %v3509_v6  ;;  %v497_v16 = vld [vmem:[%s3735_s25] sm:$0xff]  ;;  %v3534_v28 = vld [vmem:[%s3710_s13 + $0x148] sm:$0xff]   ;;  %v3538_v30 = vld [vmem:[%s3710_s13 + $0x150] sm:$0xff]  }
  0x17   : > { %3318 = vmatprep.subr.bf16.mxu0 %v3510_v8  ;;  %v3077_v18 = vcombine.high %v497_v16, %v497_v16  ;;  %v3076_v24 = vcombine.low %v497_v16, %v497_v16  ;;  %v3528_v25 = vld [vmem:[%s3710_s13 + $0xc0] sm:$0xff]   ;;  %v3535_v29 = vld [vmem:[%s3710_s13 + $0x108] sm:$0xff]   ;;  %v3539_v31 = vld [vmem:[%s3710_s13 + $0x110] sm:$0xff]  }
  0x18   : > { %3338 = vmatprep.subr.bf16.mxu1 %v3528_v25  ;;  %v3530_v26 = vld [vmem:[%s3710_s13 + $0x140] sm:$0xff]   ;;  %v3542_v32 = vld [vmem:[%s3710_s13 + $0x158] sm:$0xff]   ;;  %v3550_v36 = vld [vmem:[%s3710_s13 + $0x168] sm:$0xff]  }
  0x19   : > { %1185 = vmatprep.mubr.bf16.mxu0 %v3077_v18  ;;  %v3531_v27 = vld [vmem:[%s3710_s13 + $0x100] sm:$0xff]   ;;  %v3543_v33 = vld [vmem:[%s3710_s13 + $0x118] sm:$0xff]   ;;  %v3551_v37 = vld [vmem:[%s3710_s13 + $0x128] sm:$0xff]  }
  0x1a   : > { %3319 = vmatpush3.bf16.msra.mxu0 %v3511_v9  ;;  %v3546_v34 = vld [vmem:[%s3710_s13 + $0x160] sm:$0xff]   ;;  %v3554_v38 = vld [vmem:[%s3710_s13 + $0x170] sm:$0xff]   ;;  %v3558_v40 = vld [vmem:[%s3710_s13 + $0x178] sm:$0xff]  }
  0x1b   : > { %3320 = vmatprep.subr.bf16.mxu0 %v3512_v10  ;;  %v3547_v35 = vld [vmem:[%s3710_s13 + $0x120] sm:$0xff]   ;;  %v3555_v39 = vld [vmem:[%s3710_s13 + $0x130] sm:$0xff]   ;;  %v3561_v41 = vld [vmem:[%s3710_s13 + $0x138] sm:$0xff]  }
  0x1c   : > { %v499_v42 = vld [vmem:[%s3735_s25 + $0x10] sm:$0xff]  ;;  %v498_v45 = vld [vmem:[%s3735_s25 + $0x8] sm:$0xff]  ;;  %v3529_v47 = vld [vmem:[%s3710_s13 + $0x80] sm:$0xff]  }
  0x1d   : > { %v3081_v43 = vcombine.high %v499_v42, %v499_v42  ;;  %v3080_v44 = vcombine.low %v499_v42, %v499_v42  ;;  %v3079_v48 = vcombine.high %v498_v45, %v498_v45  ;;  %v3532_v51 = vld [vmem:[%s3710_s13 + $0xc8] sm:$0xff]   ;;  %v3536_v55 = vld [vmem:[%s3710_s13 + $0xd0] sm:$0xff]   ;;  %v3540_v57 = vld [vmem:[%s3710_s13 + $0xd8] sm:$0xff]   ;;  %v3078_v7 = vcombine.low %v498_v45, %v498_v45 }
  0x1e   : > { %3321 = vmatpush3.bf16.msra.mxu0 %v3513_v11  ;;  %v3533_v54 = vld [vmem:[%s3710_s13 + $0x88] sm:$0xff]   ;;  %v3537_v56 = vld [vmem:[%s3710_s13 + $0x90] sm:$0xff]   ;;  %v3541_v58 = vld [vmem:[%s3710_s13 + $0x98] sm:$0xff]  }
  0x1f   : > { %3322 = vmatprep.subr.bf16.mxu0 %v3514_v12  ;;  %v3544_v59 = vld [vmem:[%s3710_s13 + $0xe0] sm:$0xff]   ;;  %v3548_v61 = vld [vmem:[%s3710_s13 + $0xe8] sm:$0xff]   ;;  %v3552_v63 = vld [vmem:[%s3710_s13 + $0xf0] sm:$0xff]  }
  0x20   : > { %v3545_v60 = vld [vmem:[%s3710_s13 + $0xa0] sm:$0xff]   ;;  %v3549_v62 = vld [vmem:[%s3710_s13 + $0xa8] sm:$0xff]   ;;  %v3553_v0 = vld [vmem:[%s3710_s13 + $0xb0] sm:$0xff]  }
  0x21   : > { %v3556_v2 = vld [vmem:[%s3710_s13 + $0xf8] sm:$0xff]   ;;  %v3562_v5 = vld [vmem:[%s3710_s13 + $0x1c0] sm:$0xff]   ;;  %v3566_v11 = vld [vmem:[%s3710_s13 + $0x1c8] sm:$0xff]  }
  0x22   : > { %3323 = vmatpush3.bf16.msra.mxu0 %v3515_v13  ;;  %v3557_v4 = vld [vmem:[%s3710_s13 + $0xb8] sm:$0xff]   ;;  %v3565_v8 = vld [vmem:[%s3710_s13 + $0x180] sm:$0xff]   ;;  %v3567_v16 = vld [vmem:[%s3710_s13 + $0x188] sm:$0xff]  }
  0x23   : > { %3324 = vmatprep.subr.bf16.mxu0 %v3516_v14  ;;  %v500_v6 = vld [vmem:[%s3735_s25 + $0x18] sm:$0xff]  ;;  %v3569_v18 = vld [vmem:[%s3710_s13 + $0x190] sm:$0xff]   ;;  %s490_s25 = scalar_lea.vmem %s4197_s11, %s3703_s27 }
  0x24   : > { %v3083_v9 = vcombine.high %v500_v6, %v500_v6  ;;  %v3576_v25 = vld [vmem:[%s3710_s13 + $0x1f0] sm:$0xff]  }
  0x26   : > { %3325 = vmatpush3.bf16.msra.mxu0 %v3517_v15 }
  0x27   : > { %3326 = vmatprep.subr.bf16.mxu0 %v3518_v17  ;;  %v3568_v17 = vld [vmem:[%s3710_s13 + $0x1d0] sm:$0xff]  }
  0x2a   : > { %3327 = vmatpush3.bf16.msra.mxu0 %v3519_v19  ;;  %v3570_v19 = vld [vmem:[%s3710_s13 + $0x1d8] sm:$0xff]  }
  0x2b   : > { %3328 = vmatprep.subr.bf16.mxu0 %v3520_v20  ;;  %v3571_v20 = vld [vmem:[%s3710_s13 + $0x198] sm:$0xff]  }
  0x2e   : > { %3329 = vmatpush3.bf16.msra.mxu0 %v3521_v21  ;;  %v3572_v21 = vld [vmem:[%s3710_s13 + $0x1e0] sm:$0xff]  }
  0x2f   : > { %3330 = vmatprep.subr.bf16.mxu0 %v3523_v22  ;;  %v3573_v22 = vld [vmem:[%s3710_s13 + $0x1a0] sm:$0xff]  }
  0x32   : > { %3331 = vmatpush3.bf16.msra.mxu0 %v3524_v23  ;;  %v3574_v23 = vld [vmem:[%s3710_s13 + $0x1e8] sm:$0xff]  }
  0x33   : > { %3360 = vmatprep.subr.bf16.mxu0 %v3530_v26  ;;  %v3577_v26 = vld [vmem:[%s3710_s13 + $0x1b0] sm:$0xff]  }
  0x35   : > { %1186 = vmatmul.mubr.bf16.vlgmr.msra.gmra.mrb[4].mxu0 %v3076_v24  ;;  %v3575_v24 = vld [vmem:[%s3710_s13 + $0x1a8] sm:$0xff]  }
  0x36   : > { %3361 = vmatpush3.bf16.msra.mxu0 %v3531_v27  ;;  %1265 = vmatprep.mubr.bf16.mxu0 %v3081_v43  ;;  %v3578_v27 = vld [vmem:[%s3710_s13 + $0x1f8] sm:$0xff]  }
  0x37   : > { %3362 = vmatprep.subr.bf16.mxu0 %v3534_v28  ;;  %v3579_v28 = vld [vmem:[%s3710_s13 + $0x1b8] sm:$0xff]  }
  0x3a   : > { %3363 = vmatpush3.bf16.msra.mxu0 %v3535_v29  ;;  %v3082_v29 = vcombine.low %v500_v6, %v500_v6  ;;  %v1736_v6 = vld [vmem:[%s4196_s10] sm:$0xff] }
  0x3b   : > { %3364 = vmatprep.subr.bf16.mxu0 %v3538_v30 }
  0x3e   : > { %3365 = vmatpush3.bf16.msra.mxu0 %v3539_v31 }
  0x3f   : > { %3366 = vmatprep.subr.bf16.mxu0 %v3542_v32 }
  0x42   : > { %3367 = vmatpush3.bf16.msra.mxu0 %v3543_v33 }
  0x43   : > { %3368 = vmatprep.subr.bf16.mxu0 %v3546_v34 }
  0x46   : > { %3369 = vmatpush3.bf16.msra.mxu0 %v3547_v35  ;;  %v3582_v35 = vld [vmem:[%s4192_s6] sm:$0xff]  }
  0x47   : > { %3370 = vmatprep.subr.bf16.mxu0 %v3550_v36  ;;  %v3583_v36 = vld [vmem:[%s4192_s6 + $0x10] sm:$0xff]  }
  0x4a   : > { %3371 = vmatpush3.bf16.msra.mxu0 %v3551_v37  ;;  %v3584_v37 = vld [vmem:[%s4192_s6 + $0x8] sm:$0xff]  }
  0x4b   : > { %3372 = vmatprep.subr.bf16.mxu0 %v3554_v38  ;;  %v3585_v38 = vld [vmem:[%s4192_s6 + $0x18] sm:$0xff]  }
  0x4e   : > { %3373 = vmatpush3.bf16.msra.mxu0 %v3555_v39  ;;  %v3614_v39 = vmov 0  }
  0x4f   : > { %3374 = vmatprep.subr.bf16.mxu0 %v3558_v40  ;;  %3507 = vset.pattern.permute.xlu0 %v3614_v39  ;;  %v631_v40 = vld [vmem:[%s486_s20] sm:$0xff] }
  0x50   : > { %1729 = vperm.xlu0 %3507, %v631_v40  }
  0x52   : > { %3375 = vmatpush3.bf16.msra.mxu0 %v3561_v41 }
  0x53   : > { %3436 = vmatprep.subr.bf16.mxu0 %v3612_v1 }
  0x55   : > { %1266 = vmatmul.mubr.bf16.vlgmr.msra.gmra.mrb[8].mxu0 %v3080_v44 }
  0x56   : > { %3440 = vmatprep.mubr.msk.bf16.mxu0 %vm3613_vm1, %v3612_v1  ;;  %3437 = vmatpush3.bf16.msra.mxu0 %v3582_v35 }
  0x57   : > { %3438 = vmatprep.subr.bf16.mxu0 %v3612_v1 }
  0x5a   : > { %3439 = vmatpush3.bf16.msra.mxu0 %v3584_v37 }
  0x5b   : > { %3444 = vmatprep.subr.bf16.mxu0 %v3612_v1 }
  0xe8   : > { %v674_v46 = vpop.f32.mrb[0].mxu0 }
  0xe9   : > { %v680_v49 = vpack.c.bf16 %v674_v46, %v674_v46  ;;  %v3426_v50 = vpop.f32.mrb[1].mxu0 }
  0xea   : > { %v677_v52 = vpop.f32.mrb[2].mxu0 }
  0xeb   : > { %v3427_v53 = vpop.f32.mrb[3].mxu0  ;;  %3433 = vmatmul.mubr.msk.bf16.vlgmr.msra.gmra.mrb[0].mxu1 %vm697_vm3, %v680_v49 }
  0xec   : > { %3339 = vmatpush3.bf16.msra.mxu1 %v3529_v47  ;;  %1225 = vmatprep.mubr.bf16.mxu1 %v3079_v48 }
  0xed   : > { %3340 = vmatprep.subr.bf16.mxu1 %v3532_v51 }
  0xf0   : > { %3341 = vmatpush3.bf16.msra.mxu1 %v3533_v54 }
  0xf1   : > { %3342 = vmatprep.subr.bf16.mxu1 %v3536_v55 }
  0xf4   : > { %3343 = vmatpush3.bf16.msra.mxu1 %v3537_v56 }
  0xf5   : > { %3344 = vmatprep.subr.bf16.mxu1 %v3540_v57 }
  0xf8   : > { %3345 = vmatpush3.bf16.msra.mxu1 %v3541_v58 }
  0xf9   : > { %3346 = vmatprep.subr.bf16.mxu1 %v3544_v59  ;;  %v3586_v59 = vld [vmem:[%s4193_s7] sm:$0xff]  }
  0xfc   : > { %3347 = vmatpush3.bf16.msra.mxu1 %v3545_v60  ;;  %v3587_v60 = vld [vmem:[%s4193_s7 + $0x10] sm:$0xff]  }
  0xfd   : > { %3348 = vmatprep.subr.bf16.mxu1 %v3548_v61 }
 0x100   : > { %3349 = vmatpush3.bf16.msra.mxu1 %v3549_v62  ;;  %v3588_v62 = vld [vmem:[%s4193_s7 + $0x8] sm:$0xff]  }
 0x101   : > { %3350 = vmatprep.subr.bf16.mxu1 %v3552_v63  ;;  %v3589_v63 = vld [vmem:[%s4193_s7 + $0x18] sm:$0xff]  }
 0x104   : > { %3351 = vmatpush3.bf16.msra.mxu1 %v3553_v0  ;;  %v3590_v0 = vld [vmem:[%s4192_s6 + $0x20] sm:$0xff]  }
 0x105   : > { %3352 = vmatprep.subr.bf16.mxu1 %v3556_v2  ;;  %v3592_v2 = vld [vmem:[%s4193_s7 + $0x20] sm:$0xff]  }
 0x108   : > { %3353 = vmatpush3.bf16.msra.mxu1 %v3557_v4  ;;  %v3332_v10 = vpop.f32.mrb[4].mxu0  ;;  %v3591_v4 = vld [vmem:[%s4192_s6 + $0x28] sm:$0xff]  }
 0x109   : > { %3382 = vmatprep.subr.bf16.mxu1 %v3562_v5  ;;  %v3333_v12 = vpop.f32.mrb[5].mxu0  ;;  %v3593_v5 = vld [vmem:[%s4193_s7 + $0x28] sm:$0xff]  }
 0x10a   : > { %v3334_v13 = vadd.f32 %v3333_v12, %v3332_v10  ;;  %v3335_v14 = vpop.f32.mrb[6].mxu0  ;;  %v1753_v10 = vld [vmem:[%s4196_s10 + $0x88] sm:$0xff] }
 0x10b   : > { %1226 = vmatmul.mubr.bf16.vlgmr.msra.gmra.mrb[4].mxu1 %v3078_v7  ;;  %v3336_v15 = vpop.f32.mrb[7].mxu0  ;;  %v1752_v7 = vld [vmem:[%s4196_s10 + $0x80] sm:$0xff] }
 0x10c   : > { %3383 = vmatpush3.bf16.msra.mxu1 %v3565_v8  ;;  %1305 = vmatprep.mubr.bf16.mxu1 %v3083_v9  ;;  %v3194_v8 = vcombine.low %v1736_v6, %v1752_v7  ;;  %v3195_v9 = vcombine.high %v1736_v6, %v1752_v7  ;;  %v1784_v14 = vld [vmem:[%s4196_s10 + $0x180] sm:$0xff]  ;;  %v1769_v15 = vld [vmem:[%s4196_s10 + $0x108] sm:$0xff]  ;;  %v1724_v6 = vunpack.c.l.bf16 %v3716_v3 }
 0x10d   : > { %3384 = vmatprep.subr.bf16.mxu1 %v3566_v11 }
 0x110   : > { %3385 = vmatpush3.bf16.msra.mxu1 %v3567_v16 }
 0x111   : > { %3386 = vmatprep.subr.bf16.mxu1 %v3568_v17  ;;  %v1785_v17 = vld [vmem:[%s4196_s10 + $0x188] sm:$0xff] }
 0x114   : > { %3387 = vmatpush3.bf16.msra.mxu1 %v3569_v18 }
 0x115   : > { %3388 = vmatprep.subr.bf16.mxu1 %v3570_v19  ;;  %v3228_v19 = vcombine.low %v1769_v15, %v1785_v17 }
 0x118   : > { %3389 = vmatpush3.bf16.msra.mxu1 %v3571_v20  ;;  %v3229_v20 = vcombine.high %v1769_v15, %v1785_v17 }
 0x119   : > { %3390 = vmatprep.subr.bf16.mxu1 %v3572_v21  ;;  %v3902_v21 = vld [vmem:[%s4196_s10 + $0x10] sm:$0xff] }
 0x11c   : > { %3391 = vmatpush3.bf16.msra.mxu1 %v3573_v22  ;;  %v3907_v22 = vld [vmem:[%s4196_s10 + $0x90] sm:$0xff] }
 0x11d   : > { %3392 = vmatprep.subr.bf16.mxu1 %v3574_v23  ;;  %v3912_v23 = vld [vmem:[%s4196_s10 + $0x18] sm:$0xff] }
 0x120   : > { %3393 = vmatpush3.bf16.msra.mxu1 %v3575_v24  ;;  %v3199_v24 = vcombine.high %v3902_v21, %v3907_v22 }
 0x121   : > { %3394 = vmatprep.subr.bf16.mxu1 %v3576_v25  ;;  %v3919_v25 = vld [vmem:[%s4196_s10 + $0x98] sm:$0xff] }
 0x124   : > { %3395 = vmatpush3.bf16.msra.mxu1 %v3577_v26  ;;  %v3198_v26 = vcombine.low %v3902_v21, %v3907_v22  ;;  %v1788_v21 = vld [vmem:[%s4196_s10 + $0x1a0] sm:$0xff]  ;;  %v1773_v22 = vld [vmem:[%s4196_s10 + $0x128] sm:$0xff] }
 0x125   : > { %3396 = vmatprep.subr.bf16.mxu1 %v3578_v27  ;;  %v3200_v27 = vcombine.low %v3912_v23, %v3919_v25 }
 0x128   : > { %3397 = vmatpush3.bf16.msra.mxu1 %v3579_v28  ;;  %v3376_v30 = vpop.f32.mrb[8].mxu0  ;;  %v3201_v28 = vcombine.high %v3912_v23, %v3919_v25  ;;  %v1789_v23 = vld [vmem:[%s4196_s10 + $0x1a8] sm:$0xff] }
 0x129   : > { %3452 = vmatprep.subr.bf16.mxu1 %v3612_v1  ;;  %v3377_v31 = vpop.f32.mrb[9].mxu0 }
 0x12a   : > { %v3378_v32 = vadd.f32 %v3377_v31, %v3376_v30  ;;  %v3379_v33 = vpop.f32.mrb[10].mxu0  ;;  %v3152_v30 = vld [vmem:[%s4195_s9] ss:$0 sm:$0xff] }
 0x12b   : > { %1306 = vmatmul.mubr.bf16.vlgmr.msra.gmra.mrb[8].mxu1 %v3082_v29  ;;  %v3380_v34 = vpop.f32.mrb[11].mxu0  ;;  %v3148_v29 = vld [vmem:[%s4194_s8] ss:$0 sm:$0xff]  ;;  %v3171_v33 = vld [vmem:[%s4195_s9 + $0x1] ss:$0 sm:$0xff] }
 0x12c   : > { %3456 = vmatprep.mubr.msk.bf16.mxu1 %vm3613_vm1, %v3612_v1  ;;  %3453 = vmatpush3.bf16.msra.mxu1 %v3583_v36  ;;  %v3484_v31 = vadd.f32 %v3152_v30, %v3148_v29 }
 0x12d   : > { %3454 = vmatprep.subr.bf16.mxu1 %v3612_v1 }
 0x130   : > { %3455 = vmatpush3.bf16.msra.mxu1 %v3585_v38 }
 0x131   : > { %3460 = vmatprep.subr.bf16.mxu1 %v3612_v1 }
 0x1be   : > { %v735_v41 = vpop.f32.mrb[0].mxu1 }
 0x1bf   : > { %v1188_v42 = vadd.f32 %v3334_v13, %v735_v41  ;;  %v3434_v43 = vpop.f32.mrb[1].mxu1  ;;  %v1768_v13 = vld [vmem:[%s4196_s10 + $0x100] sm:$0xff] }
 0x1c0   : > { %v738_v44 = vpop.f32.mrb[2].mxu1  ;;  %v3227_v16 = vcombine.high %v1768_v13, %v1784_v14  ;;  %v3226_v18 = vcombine.low %v1768_v13, %v1784_v14  ;;  %v1786_v13 = vld [vmem:[%s4196_s10 + $0x190] sm:$0xff]  ;;  %v1771_v14 = vld [vmem:[%s4196_s10 + $0x118] sm:$0xff] }
 0x1c1   : > { %v3435_v45 = vpop.f32.mrb[3].mxu1 }
 0x1de   : > { %v3354_v46 = vpop.f32.mrb[4].mxu1 }
 0x1df   : > { %v3355_v47 = vpop.f32.mrb[5].mxu1 }
 0x1e0   : > { %v3356_v48 = vadd.f32 %v3355_v47, %v3354_v46  ;;  %v3357_v49 = vpop.f32.mrb[6].mxu1 }
 0x1e1   : > { %v3358_v50 = vpop.f32.mrb[7].mxu1 }
 0x1e2   : > { %v1228_v51 = vadd.f32 %v3356_v48, %v1188_v42 }
 0x1e4   : > { %v1268_v52 = vadd.f32 %v3378_v32, %v1228_v51  ;;  %v3162_v32 = vld [vmem:[%s4194_s8 + $0x1] ss:$0 sm:$0xff] }
 0x1e5   : > { %v3486_v36 = vadd.f32 %v3171_v33, %v3162_v32  ;;  %v1772_v33 = vld [vmem:[%s4196_s10 + $0x120] sm:$0xff] }
 0x1fe   : > { %v3398_v53 = vpop.f32.mrb[8].mxu1 }
 0x1ff   : > { %v3399_v54 = vpop.f32.mrb[9].mxu1 }
 0x200   : > { %v3400_v55 = vadd.f32 %v3399_v54, %v3398_v53  ;;  %v3401_v56 = vpop.f32.mrb[10].mxu1 }
 0x201   : > { %v3402_v57 = vpop.f32.mrb[11].mxu1 }
 0x202   : > { %v1308_v58 = vadd.f32 %v3400_v55, %v1268_v52 }
 0x204   : > { %v1313_v61 = vpack.c.bf16 %v1308_v58, %v1308_v58 }
 0x206   : > { %3441 = vmatmul.mubr.msk.bf16.vlgmr.msra.gmra.mrb[12].mxu0 %vm697_vm3, %v1313_v61  ;;  %3457 = vmatmul.mubr.msk.bf16.vlgmr.msra.gmra.mrb[12].mxu1 %vm697_vm3, %v1313_v61 }
 0x207   : > { %3445 = vmatpush3.bf16.msra.mxu0 %v3586_v59  ;;  %3461 = vmatpush3.bf16.msra.mxu1 %v3587_v60  ;;  %v3190_v59 = vld [vmem:[%s4195_s9 + $0x2] ss:$0 sm:$0xff] }
 0x208   : > { %3446 = vmatprep.subr.bf16.mxu0 %v3612_v1  ;;  %3462 = vmatprep.subr.bf16.mxu1 %v3612_v1 }
 0x209   : > { %3448 = vmatprep.mubr.msk.bf16.mxu0 %vm3613_vm1, %v3612_v1  ;;  %3464 = vmatprep.mubr.msk.bf16.mxu1 %vm3613_vm1, %v3612_v1 }
 0x20b   : > { %3447 = vmatpush3.bf16.msra.mxu0 %v3588_v62  ;;  %3463 = vmatpush3.bf16.msra.mxu1 %v3589_v63  ;;  %v3181_v62 = vld [vmem:[%s4194_s8 + $0x2] ss:$0 sm:$0xff] }
 0x20c   : > { %3468 = vmatprep.subr.bf16.mxu0 %v3612_v1  ;;  %3476 = vmatprep.subr.bf16.mxu1 %v3612_v1 }
 0x212   : > { %3449 = vmatmul.mubr.msk.bf16.vlgmr.msra.gmra.mrb[12].mxu0 %vm697_vm3, %v3716_v3  ;;  %3465 = vmatmul.mubr.msk.bf16.vlgmr.msra.gmra.mrb[12].mxu1 %vm697_vm3, %v3716_v3 }
 0x213   : > { %3469 = vmatpush3.bf16.msra.mxu0 %v3590_v0  ;;  %3472 = vmatprep.mubr.msk.bf16.mxu0 %vm3613_vm1, %v3612_v1 }
 0x214   : > { %3470 = vmatprep.subr.bf16.mxu0 %v3612_v1  ;;  %3477 = vmatpush3.bf16.msra.mxu1 %v3592_v2 }
 0x215   : > { %3478 = vmatprep.subr.bf16.mxu1 %v3612_v1  ;;  %3480 = vmatprep.mubr.msk.bf16.mxu1 %vm3613_vm1, %v3612_v1  ;;  %v1737_v1 = vld [vmem:[%s4196_s10 + $0x8] sm:$0xff] }
 0x216   : > { %v3196_v11 = vcombine.low %v1737_v1, %v1753_v10  ;;  %v3197_v12 = vcombine.high %v1737_v1, %v1753_v10  ;;  %v1730_v10 = vpop.permute.xlu0 %1729 }
 0x217   : > { %3471 = vmatpush3.bf16.msra.mxu0 %v3591_v4 }
 0x218   : > { %3479 = vmatpush3.bf16.msra.mxu1 %v3593_v5  ;;  %2123 = vmatprep.subr.bf16.mxu0 %v3195_v9 }
 0x219   : > { %2164 = vmatprep.subr.bf16.mxu1 %v3197_v12  ;;  %v1770_v12 = vld [vmem:[%s4196_s10 + $0x110] sm:$0xff] }
 0x21a   : > { %3473 = vmatmul.mubr.msk.bf16.vlgmr.msra.gmra.mrb[16].mxu0 %vm697_vm3, %v1313_v61  ;;  %v3231_v17 = vcombine.high %v1770_v12, %v1786_v13  ;;  %v3230_v29 = vcombine.low %v1770_v12, %v1786_v13  ;;  %v1778_v13 = vld [vmem:[%s4196_s10 + $0x150] sm:$0xff] }
 0x21b   : > { %3481 = vmatmul.mubr.msk.bf16.vlgmr.msra.gmra.mrb[16].mxu1 %vm697_vm3, %v3716_v3  ;;  %2155 = vmatprep.mubr.bf16.mxu0 %v3614_v39  ;;  %v1787_v3 = vld [vmem:[%s4196_s10 + $0x198] sm:$0xff] }
 0x21c   : > { %2196 = vmatprep.mubr.bf16.mxu1 %v3614_v39  ;;  %2124 = vmatpush1.bf16.msra.mxu0 %v3194_v8  ;;  %v3232_v30 = vcombine.low %v1771_v14, %v1787_v3 }
 0x21d   : > { %2165 = vmatpush1.bf16.msra.mxu1 %v3196_v11  ;;  %2125 = vmatprep.subr.bf16.mxu0 %v3227_v16 }
 0x21e   : > { %2166 = vmatprep.subr.bf16.mxu1 %v3229_v20  ;;  %v1756_v20 = vld [vmem:[%s4196_s10 + $0xa0] sm:$0xff] }
 0x220   : > { %2126 = vmatpush1.bf16.msra.mxu0 %v3226_v18  ;;  %v3233_v18 = vcombine.high %v1771_v14, %v1787_v3  ;;  %v1794_v14 = vld [vmem:[%s4196_s10 + $0x1d0] sm:$0xff]  ;;  %v1779_v3 = vld [vmem:[%s4196_s10 + $0x158] sm:$0xff] }
 0x221   : > { %2167 = vmatpush1.bf16.msra.mxu1 %v3228_v19  ;;  %2205 = vmatprep.subr.bf16.mxu0 %v3199_v24  ;;  %v1740_v19 = vld [vmem:[%s4196_s10 + $0x20] sm:$0xff]  ;;  %v1741_v24 = vld [vmem:[%s4196_s10 + $0x28] sm:$0xff] }
 0x222   : > { %2246 = vmatprep.subr.bf16.mxu1 %v3201_v28  ;;  %v1757_v28 = vld [vmem:[%s4196_s10 + $0xa8] sm:$0xff]  ;;  %v3202_v25 = vcombine.low %v1740_v19, %v1756_v20 }
 0x223   : > { %v3205_v32 = vcombine.high %v1741_v24, %v1757_v28 }
 0x2e5   : > { %v1439_v34 = vpop.f32.mrb[12].mxu0  ;;  %v1576_v35 = vpop.f32.mrb[12].mxu1 }
 0x2e6   : > { %v3485_v37 = vadd.f32 %v3484_v31, %v1439_v34  ;;  %v3450_v38 = vpop.f32.mrb[13].mxu0  ;;  %v3466_v40 = vpop.f32.mrb[13].mxu1  ;;  %v3487_v46 = vadd.f32 %v3486_v36, %v1576_v35  ;;  %v3203_v31 = vcombine.high %v1740_v19, %v1756_v20  ;;  %v3237_v34 = vcombine.high %v1773_v22, %v1789_v23  ;;  %v1742_v35 = vld [vmem:[%s4196_s10 + $0x30] sm:$0xff] }
 0x2e7   : > { %v1442_v41 = vpop.f32.mrb[14].mxu0  ;;  %v1579_v42 = vpop.f32.mrb[14].mxu1  ;;  %v1758_v36 = vld [vmem:[%s4196_s10 + $0xb0] sm:$0xff]  ;;  %v1759_v38 = vld [vmem:[%s4196_s10 + $0xb8] sm:$0xff]  ;;  %v3234_v40 = vcombine.low %v1772_v33, %v1788_v21  ;;  %v3247_v19 = vcombine.high %v1778_v13, %v1794_v14 }
 0x2e8   : > { %v3156_v43 = vmul.f32 -1.442695, %v3485_v37  ;;  %v3451_v44 = vpop.f32.mrb[15].mxu0  ;;  %v3467_v45 = vpop.f32.mrb[15].mxu1  ;;  %v3175_v47 = vmul.f32 -1.442695, %v3487_v46  ;;  %v3236_v41 = vcombine.low %v1773_v22, %v1789_v23  ;;  %v3207_v42 = vcombine.high %v1742_v35, %v1758_v36 }
 0x2e9   : > { %v1743_v37 = vld [vmem:[%s4196_s10 + $0x38] sm:$0xff]  ;;  %v1774_v44 = vld [vmem:[%s4196_s10 + $0x130] sm:$0xff]  ;;  %v1780_v22 = vld [vmem:[%s4196_s10 + $0x160] sm:$0xff] }
 0x2ea   : > { %3594 = vpow2.f32 %v3156_v43  ;;  %v3209_v43 = vcombine.high %v1743_v37, %v1759_v38  ;;  %v1790_v45 = vld [vmem:[%s4196_s10 + $0x1b0] sm:$0xff]  ;;  %v1775_v46 = vld [vmem:[%s4196_s10 + $0x138] sm:$0xff]  ;;  %v1796_v23 = vld [vmem:[%s4196_s10 + $0x1e0] sm:$0xff] }
 0x2eb   : > { %3596 = vpow2.f32 %v3175_v47  ;;  %v1791_v47 = vld [vmem:[%s4196_s10 + $0x1b8] sm:$0xff] }
 0x2ed   : > { %v1648_v48 = vpop.f32.mrb[16].mxu0 }
 0x2ee   : > { %v3474_v49 = vpop.f32.mrb[17].mxu0  ;;  %v1713_v50 = vpop.f32.mrb[16].mxu1  ;;  %v1649_v0 = vadd.f32 %v3181_v62, %v1648_v48  ;;  %v3206_v48 = vcombine.low %v1742_v35, %v1758_v36  ;;  %v1777_v62 = vld [vmem:[%s4196_s10 + $0x148] sm:$0xff]  ;;  %v3251_v35 = vcombine.high %v1780_v22, %v1796_v23 }
 0x2ef   : > { %v1651_v51 = vpop.f32.mrb[18].mxu0  ;;  %v3482_v52 = vpop.f32.mrb[17].mxu1  ;;  %v1714_v61 = vadd.f32 %v3190_v59, %v1713_v50  ;;  %v3208_v49 = vcombine.low %v1743_v37, %v1759_v38  ;;  %v3239_v50 = vcombine.high %v1774_v44, %v1790_v45  ;;  %v1750_v37 = vld [vmem:[%s4196_s10 + $0x70] sm:$0xff] }
 0x2f0   : > { %v3475_v53 = vpop.f32.mrb[19].mxu0  ;;  %v1716_v54 = vpop.f32.mrb[18].mxu1  ;;  %v3241_v51 = vcombine.high %v1775_v46, %v1791_v47  ;;  %v1744_v52 = vld [vmem:[%s4196_s10 + $0x40] sm:$0xff]  ;;  %v1766_v38 = vld [vmem:[%s4196_s10 + $0xf0] sm:$0xff] }
 0x2f1   : > { %v3483_v55 = vpop.f32.mrb[19].mxu1  ;;  %v1760_v53 = vld [vmem:[%s4196_s10 + $0xc0] sm:$0xff]  ;;  %v1745_v54 = vld [vmem:[%s4196_s10 + $0x48] sm:$0xff] }
 0x2f2   : > { %v1761_v55 = vld [vmem:[%s4196_s10 + $0xc8] sm:$0xff] }
 0x2f3   : > { %v3213_v59 = vcombine.high %v1745_v54, %v1761_v55 }
 0x2f4   : > { %v3595_v56 = vpop.eup %3594 }
 0x2f5   : > { %v1449_v57 = vadd.f32 1.0, %v3595_v56  ;;  %v3597_v58 = vpop.eup %3596  ;;  %v3238_v56 = vcombine.low %v1774_v44, %v1790_v45  ;;  %v3223_v44 = vcombine.high %v1750_v37, %v1766_v38 }
 0x2f6   : > { %v1586_v60 = vadd.f32 1.0, %v3597_v58  ;;  %v3211_v58 = vcombine.high %v1744_v52, %v1760_v53 }
 0x2f7   : > { %3598 = vrcp.f32 %v1449_v57  ;;  %v3240_v57 = vcombine.low %v1775_v46, %v1791_v47  ;;  %v1782_v46 = vld [vmem:[%s4196_s10 + $0x170] sm:$0xff] }
 0x2f8   : > { %3600 = vrcp.f32 %v1586_v60  ;;  %v1776_v60 = vld [vmem:[%s4196_s10 + $0x140] sm:$0xff]  ;;  %v1798_v47 = vld [vmem:[%s4196_s10 + $0x1f0] sm:$0xff] }
 0x301   : > { %v3599_v63 = vpop.eup %3598 }
 0x302   : > { %v1719_v2 = vmul.f32 %v3599_v63, %v1714_v61  ;;  %v3601_v5 = vpop.eup %3600  ;;  %v1792_v61 = vld [vmem:[%s4196_s10 + $0x1c0] sm:$0xff]  ;;  %v1793_v63 = vld [vmem:[%s4196_s10 + $0x1c8] sm:$0xff] }
 0x303   : > { %v1722_v7 = vsub.f32 1.0, %v3601_v5  ;;  %v1725_v9 = vmul.f32 %v3601_v5, %v1724_v6  ;;  %v3245_v5 = vcombine.high %v1777_v62, %v1793_v63  ;;  %v1746_v6 = vld [vmem:[%s4196_s10 + $0x50] sm:$0xff] }
 0x304   : > { %v1720_v4 = vadd.f32 %v1719_v2, %v1649_v0  ;;  %v3210_v0 = vcombine.low %v1744_v52, %v1760_v53  ;;  %v3212_v2 = vcombine.low %v1745_v54, %v1761_v55  ;;  %v3255_v52 = vcombine.high %v1782_v46, %v1798_v47 }
 0x305   : > { %v3254_v54 = vcombine.low %v1782_v46, %v1798_v47 }
 0x306   : > { %3602 = vtanh.f32 %v1720_v4  ;;  %v3243_v4 = vcombine.high %v1776_v60, %v1792_v61 }
 0x310   : > { %v3603_v1 = vpop.eup %3602 }
 0x311   : > { %v1723_v8 = vmul.f32 %v3603_v1, %v1722_v7  ;;  %v1762_v7 = vld [vmem:[%s4196_s10 + $0xd0] sm:$0xff]  ;;  %v1747_v1 = vld [vmem:[%s4196_s10 + $0x58] sm:$0xff] }
 0x313   : > { %v1726_v11 = vadd.f32 %v1725_v9, %v1723_v8  ;;  %v1763_v8 = vld [vmem:[%s4196_s10 + $0xd8] sm:$0xff]  ;;  %v3242_v9 = vcombine.low %v1776_v60, %v1792_v61 }
 0x314   : > { %v3217_v12 = vcombine.high %v1747_v1, %v1763_v8 }
 0x315   : > { %v1732_v15 = vmul.f32 %v1730_v10, %v1726_v11  ;;  %v3244_v10 = vcombine.low %v1777_v62, %v1793_v63  ;;  %v3215_v11 = vcombine.high %v1746_v6, %v1762_v7 }
 0x317   : > { %v3962_v16 = vpack.c.bf16 %v1732_v15, %v1732_v15  ;;  %v1795_v15 = vld [vmem:[%s4196_s10 + $0x1d8] sm:$0xff] }
 0x318   : > { %v3249_v20 = vcombine.high %v1779_v3, %v1795_v15 }
 0x319   : > { %1735 = vst.msk [vmem:[%s490_s25] sm:$0xf] %vm1734_vm4, %v3962_v16  ;;  %3258 = vmatmul.mubr.msk.bf16.vlgmr.msra.gmra.mrb[20].mxu0 %vm697_vm3, %v3962_v16  ;;  %3259 = vmatmul.mubr.msk.bf16.vlgmr.msra.gmra.mrb[20].mxu1 %vm697_vm3, %v3962_v16 }
 0x31a   : > { %2206 = vmatpush1.bf16.msra.mxu0 %v3198_v26  ;;  %2247 = vmatpush1.bf16.msra.mxu1 %v3200_v27  ;;  %v3204_v26 = vcombine.low %v1741_v24, %v1757_v28  ;;  %v3235_v27 = vcombine.high %v1772_v33, %v1788_v21  ;;  %v1748_v24 = vld [vmem:[%s4196_s10 + $0x60] sm:$0xff] }
 0x31b   : > { %2207 = vmatprep.subr.bf16.mxu0 %v3231_v17  ;;  %2248 = vmatprep.subr.bf16.mxu1 %v3233_v18  ;;  %v3214_v17 = vcombine.low %v1746_v6, %v1762_v7  ;;  %v3216_v18 = vcombine.low %v1747_v1, %v1763_v8  ;;  %v1764_v28 = vld [vmem:[%s4196_s10 + $0xe0] sm:$0xff] }
 0x31c   : > { %2237 = vmatprep.mubr.bf16.mxu0 %v3614_v39  ;;  %2278 = vmatprep.mubr.bf16.mxu1 %v3614_v39  ;;  %v3219_v33 = vcombine.high %v1748_v24, %v1764_v28 }
 0x31e   : > { %2208 = vmatpush1.bf16.msra.mxu0 %v3230_v29  ;;  %2249 = vmatpush1.bf16.msra.mxu1 %v3232_v30  ;;  %v1749_v29 = vld [vmem:[%s4196_s10 + $0x68] sm:$0xff] }
 0x31f   : > { %2287 = vmatprep.subr.bf16.mxu0 %v3203_v31  ;;  %2328 = vmatprep.subr.bf16.mxu1 %v3205_v32  ;;  %v1765_v30 = vld [vmem:[%s4196_s10 + $0xe8] sm:$0xff]  ;;  %v3246_v31 = vcombine.low %v1778_v13, %v1794_v14  ;;  %v3248_v32 = vcombine.low %v1779_v3, %v1795_v15 }
 0x320   : > { %v3221_v21 = vcombine.high %v1749_v29, %v1765_v30 }
 0x321   : > { %3260 = vmatmul.mubr.msk.bf16.vlgmr.msra.gmra.mrb[24].mxu0 %vm697_vm3, %v3962_v16  ;;  %3261 = vmatmul.mubr.msk.bf16.vlgmr.msra.gmra.mrb[24].mxu1 %vm697_vm3, %v3962_v16 }
 0x322   : > { %2288 = vmatpush1.bf16.msra.mxu0 %v3202_v25  ;;  %2329 = vmatpush1.bf16.msra.mxu1 %v3204_v26  ;;  %v1781_v25 = vld [vmem:[%s4196_s10 + $0x168] sm:$0xff] }
 0x323   : > { %2289 = vmatprep.subr.bf16.mxu0 %v3235_v27  ;;  %2330 = vmatprep.subr.bf16.mxu1 %v3237_v34  ;;  %v1797_v26 = vld [vmem:[%s4196_s10 + $0x1e8] sm:$0xff]  ;;  %v3218_v27 = vcombine.low %v1748_v24, %v1764_v28  ;;  %v3220_v34 = vcombine.low %v1749_v29, %v1765_v30 }
 0x324   : > { %2319 = vmatprep.mubr.bf16.mxu0 %v3614_v39  ;;  %2360 = vmatprep.mubr.bf16.mxu1 %v3614_v39  ;;  %v3253_v36 = vcombine.high %v1781_v25, %v1797_v26 }
 0x326   : > { %2290 = vmatpush1.bf16.msra.mxu0 %v3234_v40  ;;  %2331 = vmatpush1.bf16.msra.mxu1 %v3236_v41  ;;  %v1751_v40 = vld [vmem:[%s4196_s10 + $0x78] sm:$0xff] }
 0x327   : > { %2369 = vmatprep.subr.bf16.mxu0 %v3207_v42  ;;  %2410 = vmatprep.subr.bf16.mxu1 %v3209_v43  ;;  %v1767_v41 = vld [vmem:[%s4196_s10 + $0xf8] sm:$0xff]  ;;  %v3250_v42 = vcombine.low %v1780_v22, %v1796_v23  ;;  %v3252_v43 = vcombine.low %v1781_v25, %v1797_v26 }
 0x328   : > { %v3225_v45 = vcombine.high %v1751_v40, %v1767_v41 }
 0x329   : > { %3262 = vmatmul.mubr.msk.bf16.vlgmr.msra.gmra.mrb[28].mxu0 %vm697_vm3, %v3962_v16  ;;  %3263 = vmatmul.mubr.msk.bf16.vlgmr.msra.gmra.mrb[28].mxu1 %vm697_vm3, %v3962_v16 }
 0x32a   : > { %2370 = vmatpush1.bf16.msra.mxu0 %v3206_v48  ;;  %2411 = vmatpush1.bf16.msra.mxu1 %v3208_v49  ;;  %v1783_v48 = vld [vmem:[%s4196_s10 + $0x178] sm:$0xff] }
 0x32b   : > { %2371 = vmatprep.subr.bf16.mxu0 %v3239_v50  ;;  %2412 = vmatprep.subr.bf16.mxu1 %v3241_v51  ;;  %v1799_v49 = vld [vmem:[%s4196_s10 + $0x1f8] sm:$0xff]  ;;  %v3222_v50 = vcombine.low %v1750_v37, %v1766_v38  ;;  %v3224_v51 = vcombine.low %v1751_v40, %v1767_v41 }
 0x32c   : > { %2401 = vmatprep.mubr.bf16.mxu0 %v3614_v39  ;;  %2442 = vmatprep.mubr.bf16.mxu1 %v3614_v39  ;;  %v3257_v53 = vcombine.high %v1783_v48, %v1799_v49  ;;  %v3256_v55 = vcombine.low %v1783_v48, %v1799_v49 }
 0x32e   : > { %2372 = vmatpush1.bf16.msra.mxu0 %v3238_v56  ;;  %2413 = vmatpush1.bf16.msra.mxu1 %v3240_v57 }
 0x32f   : > { %2451 = vmatprep.subr.bf16.mxu0 %v3211_v58  ;;  %2492 = vmatprep.subr.bf16.mxu1 %v3213_v59 }
 0x331   : > { %3264 = vmatmul.mubr.msk.bf16.vlgmr.msra.gmra.mrb[32].mxu0 %vm697_vm3, %v3962_v16  ;;  %3265 = vmatmul.mubr.msk.bf16.vlgmr.msra.gmra.mrb[32].mxu1 %vm697_vm3, %v3962_v16 }
 0x332   : > { %2452 = vmatpush1.bf16.msra.mxu0 %v3210_v0  ;;  %2493 = vmatpush1.bf16.msra.mxu1 %v3212_v2 }
 0x333   : > { %2453 = vmatprep.subr.bf16.mxu0 %v3243_v4  ;;  %2494 = vmatprep.subr.bf16.mxu1 %v3245_v5 }
 0x334   : > { %2483 = vmatprep.mubr.bf16.mxu0 %v3614_v39  ;;  %2524 = vmatprep.mubr.bf16.mxu1 %v3614_v39 }
 0x336   : > { %2454 = vmatpush1.bf16.msra.mxu0 %v3242_v9  ;;  %2495 = vmatpush1.bf16.msra.mxu1 %v3244_v10 }
 0x337   : > { %2533 = vmatprep.subr.bf16.mxu0 %v3215_v11  ;;  %2574 = vmatprep.subr.bf16.mxu1 %v3217_v12 }
 0x339   : > { %3266 = vmatmul.mubr.msk.bf16.vlgmr.msra.gmra.mrb[36].mxu0 %vm697_vm3, %v3962_v16  ;;  %3267 = vmatmul.mubr.msk.bf16.vlgmr.msra.gmra.mrb[36].mxu1 %vm697_vm3, %v3962_v16 }
 0x33a   : > { %2534 = vmatpush1.bf16.msra.mxu0 %v3214_v17  ;;  %2575 = vmatpush1.bf16.msra.mxu1 %v3216_v18 }
 0x33b   : > { %2535 = vmatprep.subr.bf16.mxu0 %v3247_v19  ;;  %2576 = vmatprep.subr.bf16.mxu1 %v3249_v20 }
 0x33c   : > { %2565 = vmatprep.mubr.bf16.mxu0 %v3614_v39  ;;  %2606 = vmatprep.mubr.bf16.mxu1 %v3614_v39 }
 0x33e   : > { %2536 = vmatpush1.bf16.msra.mxu0 %v3246_v31  ;;  %2577 = vmatpush1.bf16.msra.mxu1 %v3248_v32 }
 0x33f   : > { %2615 = vmatprep.subr.bf16.mxu0 %v3219_v33  ;;  %2656 = vmatprep.subr.bf16.mxu1 %v3221_v21 }
 0x341   : > { %3268 = vmatmul.mubr.msk.bf16.vlgmr.msra.gmra.mrb[40].mxu0 %vm697_vm3, %v3962_v16  ;;  %3269 = vmatmul.mubr.msk.bf16.vlgmr.msra.gmra.mrb[40].mxu1 %vm697_vm3, %v3962_v16 }
 0x342   : > { %2616 = vmatpush1.bf16.msra.mxu0 %v3218_v27  ;;  %2657 = vmatpush1.bf16.msra.mxu1 %v3220_v34 }
 0x343   : > { %2617 = vmatprep.subr.bf16.mxu0 %v3251_v35  ;;  %2658 = vmatprep.subr.bf16.mxu1 %v3253_v36 }
 0x344   : > { %2647 = vmatprep.mubr.bf16.mxu0 %v3614_v39  ;;  %2688 = vmatprep.mubr.bf16.mxu1 %v3614_v39 }
 0x346   : > { %2618 = vmatpush1.bf16.msra.mxu0 %v3250_v42  ;;  %2659 = vmatpush1.bf16.msra.mxu1 %v3252_v43 }
 0x347   : > { %2697 = vmatprep.subr.bf16.mxu0 %v3223_v44  ;;  %2738 = vmatprep.subr.bf16.mxu1 %v3225_v45 }
 0x349   : > { %3270 = vmatmul.mubr.msk.bf16.vlgmr.msra.gmra.mrb[44].mxu0 %vm697_vm3, %v3962_v16  ;;  %3271 = vmatmul.mubr.msk.bf16.vlgmr.msra.gmra.mrb[44].mxu1 %vm697_vm3, %v3962_v16 }
 0x34a   : > { %2698 = vmatpush1.bf16.msra.mxu0 %v3222_v50  ;;  %2739 = vmatpush1.bf16.msra.mxu1 %v3224_v51 }
 0x34b   : > { %2699 = vmatprep.subr.bf16.mxu0 %v3255_v52  ;;  %2740 = vmatprep.subr.bf16.mxu1 %v3257_v53 }
 0x34c   : > { %2729 = vmatprep.mubr.bf16.mxu0 %v3614_v39  ;;  %2770 = vmatprep.mubr.bf16.mxu1 %v3614_v39 }
 0x34e   : > { %2700 = vmatpush1.bf16.msra.mxu0 %v3254_v54  ;;  %2741 = vmatpush1.bf16.msra.mxu1 %v3256_v55 }
 0x351   : > { %3272 = vmatmul.mubr.msk.bf16.vlgmr.msra.gmra.mrb[48].mxu0 %vm697_vm3, %v3962_v16  ;;  %3273 = vmatmul.mubr.msk.bf16.vlgmr.msra.gmra.mrb[48].mxu1 %vm697_vm3, %v3962_v16 }
 0x3ec   : > { %v2157_v56 = vpop.f32.mrb[20].mxu0  ;;  %v2198_v57 = vpop.f32.mrb[20].mxu1 }
 0x3ed   : > { %v2159_v58 = vpop.f32.mrb[21].mxu0  ;;  %v2200_v39 = vpop.f32.mrb[21].mxu1 }
 0x3ee   : > { %v3295_v59 = vpack.c.bf16 %v2159_v58, %v2157_v56  ;;  %v3296_v60 = vpack.c.bf16 %v2200_v39, %v2198_v57  ;;  %v2161_v61 = vpop.f32.mrb[22].mxu0  ;;  %v2202_v62 = vpop.f32.mrb[22].mxu1 }
 0x3ef   : > { %v2162_v63 = vpop.f32.mrb[23].mxu0  ;;  %v2203_v16 = vpop.f32.mrb[23].mxu1 }
 0x3f0   : > { %2907 = vst [vmem:[%s4165_s30] sm:$0xff] %v3295_v59  ;;  %2908 = vst [vmem:[%s4165_s30 + $0x8] sm:$0xff] %v3296_v60 }
 0x3f4   : > { %v2239_v0 = vpop.f32.mrb[24].mxu0  ;;  %v2280_v2 = vpop.f32.mrb[24].mxu1 }
 0x3f5   : > { %v2241_v4 = vpop.f32.mrb[25].mxu0  ;;  %v2282_v5 = vpop.f32.mrb[25].mxu1 }
 0x3f6   : > { %v3297_v6 = vpack.c.bf16 %v2241_v4, %v2239_v0  ;;  %v3298_v7 = vpack.c.bf16 %v2282_v5, %v2280_v2  ;;  %v2243_v1 = vpop.f32.mrb[26].mxu0  ;;  %v2284_v8 = vpop.f32.mrb[26].mxu1 }
 0x3f7   : > { %v2244_v9 = vpop.f32.mrb[27].mxu0  ;;  %v2285_v10 = vpop.f32.mrb[27].mxu1 }
 0x3f8   : > { %2909 = vst [vmem:[%s4165_s30 + $0x10] sm:$0xff] %v3297_v6  ;;  %2910 = vst [vmem:[%s4165_s30 + $0x18] sm:$0xff] %v3298_v7 }
 0x3fc   : > { %v2321_v11 = vpop.f32.mrb[28].mxu0  ;;  %v2362_v12 = vpop.f32.mrb[28].mxu1 }
 0x3fd   : > { %v2323_v13 = vpop.f32.mrb[29].mxu0  ;;  %v2364_v14 = vpop.f32.mrb[29].mxu1 }
 0x3fe   : > { %v3299_v3 = vpack.c.bf16 %v2323_v13, %v2321_v11  ;;  %v3300_v15 = vpack.c.bf16 %v2364_v14, %v2362_v12  ;;  %v2325_v17 = vpop.f32.mrb[30].mxu0  ;;  %v2366_v18 = vpop.f32.mrb[30].mxu1 }
 0x3ff   : > { %v2326_v19 = vpop.f32.mrb[31].mxu0  ;;  %v2367_v20 = vpop.f32.mrb[31].mxu1 }
 0x400   : > { %2911 = vst [vmem:[%s4165_s30 + $0x20] sm:$0xff] %v3299_v3  ;;  %2912 = vst [vmem:[%s4165_s30 + $0x28] sm:$0xff] %v3300_v15 }
 0x404   : > { %v2403_v24 = vpop.f32.mrb[32].mxu0  ;;  %v2444_v28 = vpop.f32.mrb[32].mxu1 }
 0x405   : > { %v2405_v29 = vpop.f32.mrb[33].mxu0  ;;  %v2446_v30 = vpop.f32.mrb[33].mxu1 }
 0x406   : > { %v3301_v31 = vpack.c.bf16 %v2405_v29, %v2403_v24  ;;  %v3302_v32 = vpack.c.bf16 %v2446_v30, %v2444_v28  ;;  %v2407_v33 = vpop.f32.mrb[34].mxu0  ;;  %v2448_v21 = vpop.f32.mrb[34].mxu1 }
 0x407   : > { %v2408_v22 = vpop.f32.mrb[35].mxu0  ;;  %v2449_v23 = vpop.f32.mrb[35].mxu1 }
 0x408   : > { %2913 = vst [vmem:[%s4165_s30 + $0x30] sm:$0xff] %v3301_v31  ;;  %2914 = vst [vmem:[%s4165_s30 + $0x38] sm:$0xff] %v3302_v32 }
 0x40c   : > { %v2485_v25 = vpop.f32.mrb[36].mxu0  ;;  %v2526_v26 = vpop.f32.mrb[36].mxu1 }
 0x40d   : > { %v2487_v27 = vpop.f32.mrb[37].mxu0  ;;  %v2528_v34 = vpop.f32.mrb[37].mxu1 }
 0x40e   : > { %v3303_v35 = vpack.c.bf16 %v2487_v27, %v2485_v25  ;;  %v3304_v36 = vpack.c.bf16 %v2528_v34, %v2526_v26  ;;  %v2489_v37 = vpop.f32.mrb[38].mxu0  ;;  %v2530_v38 = vpop.f32.mrb[38].mxu1 }
 0x40f   : > { %v2490_v40 = vpop.f32.mrb[39].mxu0  ;;  %v2531_v41 = vpop.f32.mrb[39].mxu1 }
 0x410   : > { %2915 = vst [vmem:[%s4165_s30 + $0x40] sm:$0xff] %v3303_v35  ;;  %2916 = vst [vmem:[%s4165_s30 + $0x48] sm:$0xff] %v3304_v36 }
 0x414   : > { %v2567_v42 = vpop.f32.mrb[40].mxu0  ;;  %v2608_v43 = vpop.f32.mrb[40].mxu1 }
 0x415   : > { %v2569_v44 = vpop.f32.mrb[41].mxu0  ;;  %v2610_v45 = vpop.f32.mrb[41].mxu1 }
 0x416   : > { %v3305_v46 = vpack.c.bf16 %v2569_v44, %v2567_v42  ;;  %v3306_v47 = vpack.c.bf16 %v2610_v45, %v2608_v43  ;;  %v2571_v48 = vpop.f32.mrb[42].mxu0  ;;  %v2612_v49 = vpop.f32.mrb[42].mxu1 }
 0x417   : > { %v2572_v50 = vpop.f32.mrb[43].mxu0  ;;  %v2613_v51 = vpop.f32.mrb[43].mxu1 }
 0x418   : > { %2917 = vst [vmem:[%s4165_s30 + $0x50] sm:$0xff] %v3305_v46  ;;  %2918 = vst [vmem:[%s4165_s30 + $0x58] sm:$0xff] %v3306_v47 }
 0x41c   : > { %v2649_v52 = vpop.f32.mrb[44].mxu0  ;;  %v2690_v53 = vpop.f32.mrb[44].mxu1 }
 0x41d   : > { %v2651_v54 = vpop.f32.mrb[45].mxu0  ;;  %v2692_v55 = vpop.f32.mrb[45].mxu1 }
 0x41e   : > { %v3307_v56 = vpack.c.bf16 %v2651_v54, %v2649_v52  ;;  %v3308_v57 = vpack.c.bf16 %v2692_v55, %v2690_v53  ;;  %v2653_v58 = vpop.f32.mrb[46].mxu0  ;;  %v2694_v39 = vpop.f32.mrb[46].mxu1 }
 0x41f   : > { %v2654_v59 = vpop.f32.mrb[47].mxu0  ;;  %v2695_v60 = vpop.f32.mrb[47].mxu1 }
 0x420   : > { %2919 = vst [vmem:[%s4165_s30 + $0x60] sm:$0xff] %v3307_v56  ;;  %2920 = vst [vmem:[%s4165_s30 + $0x68] sm:$0xff] %v3308_v57 }
 0x424   : > { %v2731_v61 = vpop.f32.mrb[48].mxu0  ;;  %v2772_v62 = vpop.f32.mrb[48].mxu1 }
 0x425   : > { %v2733_v63 = vpop.f32.mrb[49].mxu0  ;;  %v2774_v16 = vpop.f32.mrb[49].mxu1 }
 0x426   : > { %v3309_v0 = vpack.c.bf16 %v2733_v63, %v2731_v61  ;;  %v3310_v2 = vpack.c.bf16 %v2774_v16, %v2772_v62  ;;  %v2735_v4 = vpop.f32.mrb[50].mxu0  ;;  %v2776_v5 = vpop.f32.mrb[50].mxu1 }
 0x427   : > { %v2736_v6 = vpop.f32.mrb[51].mxu0  ;;  %v2777_v7 = vpop.f32.mrb[51].mxu1 }
 0x428   : > { %2921 = vst [vmem:[%s4165_s30 + $0x70] sm:$0xff] %v3309_v0  ;;  %2922 = vst [vmem:[%s4165_s30 + $0x78] sm:$0xff] %v3310_v2 }
 0x429 PF: > { %s23_s21 = sadd.s32 1, %s3610_s21  }
 0x42a   : > { %p20_p4 = scmp.ge.s32.totalorder %s23_s21, 4  }
 0x42c   :  { %22 = sbr.rel (!%p20_p4) target bundleno = 1 (0x1), region = 126 }

// kernel: mpnn_forward.8
= control target key start
LH: loop header
LB: loop body
LE: loop exit
PB: predicated region body
PF: predicated region fallthrough
CT: control target
= control target key end

     0   :  { %s4379_s0 = inlined_call_operand.vmem [shape: bf16[2,8,1024], index: 0, kind: input, shape index: {}]   ;;  %s4380_s1 = inlined_call_operand.vmem [shape: bf16[2,8,8], index: 1, kind: input, shape index: {}]   ;;  %s4381_s2 = inlined_call_operand.vmem [shape: bf16[2,1024,32], index: 2, kind: input, shape index: {}]   ;;  %s4382_s3 = inlined_call_operand.vmem [shape: bf16[2,8,32], index: 3, kind: input, shape index: {}]   ;;  %s4383_s4 = inlined_call_operand.vmem [shape: f32[16,1], index: 4, kind: input, shape index: {}]   ;;  %s4384_s5 = inlined_call_operand.vmem [shape: bf16[32,32], index: 5, kind: input, shape index: {}]   ;;  %s4385_s6 = inlined_call_operand.vmem [shape: bf16[3,32,32], index: 6, kind: input, shape index: {}]   ;;  %s4386_s7 = inlined_call_operand.vmem [shape: bf16[3,32,32], index: 7, kind: input, shape index: {}]   ;;  %s4387_s8 = inlined_call_operand.vmem [shape: f32[3,1,32], index: 8, kind: input, shape index: {}]   ;;  %s4388_s9 = inlined_call_operand.vmem [shape: f32[3,1,32], index: 9, kind: input, shape index: {}]   ;;  %s4389_s10 = inlined_call_operand.vmem [shape: bf16[32,4096], index: 10, kind: input, shape index: {}]   ;;  %s4390_s11 = inlined_call_operand.vmem [shape: bf16[2,8,32], index: 11, kind: output, shape index: {0}]   ;;  %s4391_s12 = inlined_call_operand.hbm [shape: bf16[16,4096], index: 12, kind: output, shape index: {1}]  }
   0x1   :  { %4393 = sst [smem:[#allocation7_spill]] %s4384_s5 }
   0x2   :  { %18 = vsyncpa [#allocation3], 0 }
   0x3   :  { %20 = vsyncpa [#allocation3 + $0x1], 0  ;;  %s3786_s21 = smov 0   ;;  %s3788_s22 = smov 0  }
   0x4   :  { %s3790_s23 = smov 0   ;;  %s3792_s24 = smov 0  }
   0x5 LB: > { %4394 = sst [smem:[#allocation5_spill]] %s3711_s23  ;;  %s3807_s25 = sadd.s32 4294967295, %s3715_s24   ;;  %s3715_s24 = sphi %s3792_s24, %s4404_s24   ;;  %s3711_s23 = sphi %s3790_s23, %s4403_s23   ;;  %s3707_s22 = sphi %s3788_s22, %s4402_s22   ;;  %s3703_s21 = sphi %s3786_s21, %s4401_s21  }
   0x6   : > { %s3074_s26 = sadd.s32 4294967294, %s3715_s24   ;;  %s3811_s27 = sadd.s32 1, %s3715_s24  }
   0x7   : > { %s315_s28 = sadd.s32 1, %s3711_s23  ;;  %s312_s29 = ssub.s32 %s3715_s24, %s3811_s27 }
   0x8   : > { %p325_p0 = scmp.ne.s32.totalorder %s3711_s23, %s3707_s22  ;;  %p313_p1 = scmp.eq.s32.totalorder %s312_s29, 0 }
   0x9   : > { %p326_p2 = scmp.eq.s32.totalorder %s3807_s25, 1  ;;  %p331_p3 = scmp.ne.s32.totalorder %s3707_s22, %s3703_s21 }
   0xa   : > { %p332_p4 = scmp.eq.s32.totalorder %s3074_s26, 1  ;;  %p3077_p7 = scmp.ge.s32.totalorder %s3715_s24, 1 }
   0xb   : > { %s3822_s30 = scalar_select %p313_p1, %s3711_s23, %s315_s28  }
   0xc   : > { %p3824_p5 = por %p326_p2, %p325_p0  ;;  %p3828_p6 = por %p332_p4, %p331_p3 }
   0xd   : > { %4395 = sst [smem:[#allocation6_spill]] %s3822_s30  ;;  %p405_p8 = scmp.lt.s32.totalorder %s3715_s24, 3 }
   0xf   : > { %p406_p9 = pnand %p3077_p7, %p405_p8 }
  0x10   : > { %p468_p10 = scmp.lt.s32.totalorder (!%p406_p9), %s3807_s25, 1  ;;  %vm634_vm0 = vcmask (!%p406_p9), 1043456   ;;  %s4398_s5 = sld [smem:[#allocation7_spill]] (!%p406_p9)  ;;  %v3717_v1 = vmov (!%p406_p9), 0.0   ;;  %vm3718_vm1 = vmmov (!%p406_p9), 0   ;;  %vm630_vm2 = vcmask (!%p406_p9), 64512  }
  0x11   : > { %409 = sbr.rel (%p406_p9) target bundleno = 1090 (0x442), region = 64  ;;  %3440 = vmatprep.subr.bf16.mxu0 (!%p406_p9), %v3717_v1  ;;  %3442 = vmatprep.mubr.msk.bf16.mxu0 (!%p406_p9), %vm3718_vm1, %v3717_v1  ;;  %vm695_vm3 = vcmask (!%p406_p9), 261120   ;;  %vm1732_vm4 = vcmask (!%p406_p9), 257024  }
  0x12   : > { %3446 = vmatprep.subr.bf16.mxu1 (!%p406_p9), %v3717_v1  ;;  %3450 = vmatprep.mubr.msk.bf16.mxu1 (!%p406_p9), %vm3718_vm1, %v3717_v1 }
  0x16   : > { %v3571_v0 = vld [vmem:[%s4398_s5] sm:$0xff] (!%p406_p9)   ;;  %v3574_v2 = vld [vmem:[%s4398_s5 + $0x8] sm:$0xff] (!%p406_p9)  }
  0x17   : > { %3447 = vmatpush3.bf16.msra.mxu1 (!%p406_p9), %v3571_v0 }
  0x18   : > { %s3842_s17 = scalar_select %p468_p10, %s3807_s25, 1  ;;  %3448 = vmatprep.subr.bf16.mxu1 %v3717_v1 }
  0x1a   : > { %s3851_s20 = sshll.u32 %s3842_s17, 2  ;;  %s3311_s26 = sshll.u32 %s3842_s17, 9 }
  0x1b   : > { %s3858_s15 = scalar_lea.vmem %s4381_s2, %s3311_s26  ;;  %s485_s18 = scalar_lea.vmem %s4382_s3, %s3851_s20  ;;  %3449 = vmatpush3.bf16.msra.mxu1 %v3574_v2 }
  0x1c   : > { %v3864_v3 = vld [vmem:[%s485_s18] sm:$0xf]  ;;  %s476_s23 = scalar_lea.vmem %s4380_s1, %s3851_s20  ;;  %v3559_v8 = vld [vmem:[%s3858_s15 + $0x48] sm:$0xff]   ;;  %v3561_v10 = vld [vmem:[%s3858_s15 + $0x50] sm:$0xff]   ;;  %s3310_s5 = sshll.u32 %s3842_s17, 5 }
  0x1d   : > { %v636_v4 = vsel %vm634_vm0, %v3864_v3, 0  ;;  %v627_v5 = vld [vmem:[%s476_s23] sm:$0xf]  ;;  %v3560_v9 = vld [vmem:[%s3858_s15 + $0x8] sm:$0xff]   ;;  %v3562_v11 = vld [vmem:[%s3858_s15 + $0x10] sm:$0xff]   ;;  %s3883_s26 = scalar_lea.vmem %s4379_s0, %s3310_s5  ;;  %s3085_s30 = sshll.u32 %s3842_s17, 3 }
  0x1e   : > { %v3557_v6 = vld [vmem:[%s3858_s15 + $0x40] sm:$0xff]   ;;  %3441 = vmatpush3.bf16.msra.mxu0 %v636_v4  ;;  %v3563_v12 = vld [vmem:[%s3858_s15 + $0x58] sm:$0xff]   ;;  %v3567_v17 = vld [vmem:[%s3858_s15 + $0x68] sm:$0xff]   ;;  %s489_s29 = scalar_lea.vmem %s4383_s4, %s3085_s30  ;;  %s493_s30 = scalar_lea.vmem %s4390_s11, %s3851_s20 }
  0x1f   : > { %v3558_v7 = vld [vmem:[%s3858_s15] sm:$0xff]   ;;  %3334 = vmatprep.subr.bf16.mxu0 %v3557_v6  ;;  %v3564_v13 = vld [vmem:[%s3858_s15 + $0x18] sm:$0xff]   ;;  %v3568_v19 = vld [vmem:[%s3858_s15 + $0x28] sm:$0xff]   ;;  %s3328_s17 = sshll.u32 %s3807_s25, 11  ;;  %s3720_s5 = smov [#allocation2]  }
  0x20   : > { %v3565_v14 = vld [vmem:[%s3858_s15 + $0x60] sm:$0xff]   ;;  %v3569_v20 = vld [vmem:[%s3858_s15 + $0x70] sm:$0xff]   ;;  %v3572_v22 = vld [vmem:[%s3858_s15 + $0x78] sm:$0xff]   ;;  %s4333_s19 = scalar_lea.hbm %s4391_s12, %s3328_s17  ;;  %s3657_s23 = sshll.u32 %s3720_s5, 4  ;;  %s3658_s23 = int_to_ptr.vmem [resolvable:$false] %s3657_s23 }
  0x21   : > { %3443 = vmatmul.mubr.msk.bf16.vlgmr.msra.gmra.mrb[0].mxu0 %vm630_vm2, %v627_v5  ;;  %v3566_v15 = vld [vmem:[%s3858_s15 + $0x20] sm:$0xff]   ;;  %v3570_v21 = vld [vmem:[%s3858_s15 + $0x30] sm:$0xff]   ;;  %v3573_v23 = vld [vmem:[%s3858_s15 + $0x38] sm:$0xff]  }
  0x22   : > { %3335 = vmatpush3.bf16.msra.mxu0 %v3558_v7  ;;  %v495_v16 = vld [vmem:[%s3883_s26] sm:$0xff]  ;;  %v3583_v28 = vld [vmem:[%s3858_s15 + $0x148] sm:$0xff]   ;;  %v3587_v30 = vld [vmem:[%s3858_s15 + $0x150] sm:$0xff]  }
  0x23   : > { %3336 = vmatprep.subr.bf16.mxu0 %v3559_v8  ;;  %v3092_v18 = vcombine.high %v495_v16, %v495_v16  ;;  %v3091_v24 = vcombine.low %v495_v16, %v495_v16  ;;  %v3577_v25 = vld [vmem:[%s3858_s15 + $0xc0] sm:$0xff]   ;;  %v3584_v29 = vld [vmem:[%s3858_s15 + $0x108] sm:$0xff]   ;;  %v3588_v31 = vld [vmem:[%s3858_s15 + $0x110] sm:$0xff]  }
  0x24   : > { %3356 = vmatprep.subr.bf16.mxu1 %v3577_v25  ;;  %v3579_v26 = vld [vmem:[%s3858_s15 + $0x140] sm:$0xff]   ;;  %v3591_v32 = vld [vmem:[%s3858_s15 + $0x158] sm:$0xff]   ;;  %v3599_v36 = vld [vmem:[%s3858_s15 + $0x168] sm:$0xff]  }
  0x25   : > { %1183 = vmatprep.mubr.bf16.mxu0 %v3092_v18  ;;  %v3580_v27 = vld [vmem:[%s3858_s15 + $0x100] sm:$0xff]   ;;  %v3592_v33 = vld [vmem:[%s3858_s15 + $0x118] sm:$0xff]   ;;  %v3600_v37 = vld [vmem:[%s3858_s15 + $0x128] sm:$0xff]  }
  0x26   : > { %3337 = vmatpush3.bf16.msra.mxu0 %v3560_v9  ;;  %v3595_v34 = vld [vmem:[%s3858_s15 + $0x160] sm:$0xff]   ;;  %v3603_v38 = vld [vmem:[%s3858_s15 + $0x170] sm:$0xff]   ;;  %v3607_v40 = vld [vmem:[%s3858_s15 + $0x178] sm:$0xff]  }
  0x27   : > { %3338 = vmatprep.subr.bf16.mxu0 %v3561_v10  ;;  %v3596_v35 = vld [vmem:[%s3858_s15 + $0x120] sm:$0xff]   ;;  %v3604_v39 = vld [vmem:[%s3858_s15 + $0x130] sm:$0xff]   ;;  %v3610_v41 = vld [vmem:[%s3858_s15 + $0x138] sm:$0xff]  }
  0x28   : > { %v497_v42 = vld [vmem:[%s3883_s26 + $0x10] sm:$0xff]  ;;  %v496_v45 = vld [vmem:[%s3883_s26 + $0x8] sm:$0xff]  ;;  %v3578_v47 = vld [vmem:[%s3858_s15 + $0x80] sm:$0xff]  }
  0x29   : > { %v3096_v43 = vcombine.high %v497_v42, %v497_v42  ;;  %v3095_v44 = vcombine.low %v497_v42, %v497_v42  ;;  %v3094_v48 = vcombine.high %v496_v45, %v496_v45  ;;  %v3581_v51 = vld [vmem:[%s3858_s15 + $0xc8] sm:$0xff]   ;;  %v3585_v55 = vld [vmem:[%s3858_s15 + $0xd0] sm:$0xff]   ;;  %v3589_v57 = vld [vmem:[%s3858_s15 + $0xd8] sm:$0xff]   ;;  %v3093_v7 = vcombine.low %v496_v45, %v496_v45 }
  0x2a   : > { %3339 = vmatpush3.bf16.msra.mxu0 %v3562_v11  ;;  %v3582_v54 = vld [vmem:[%s3858_s15 + $0x88] sm:$0xff]   ;;  %v3586_v56 = vld [vmem:[%s3858_s15 + $0x90] sm:$0xff]   ;;  %v3590_v58 = vld [vmem:[%s3858_s15 + $0x98] sm:$0xff]  }
  0x2b   : > { %3340 = vmatprep.subr.bf16.mxu0 %v3563_v12  ;;  %v3593_v59 = vld [vmem:[%s3858_s15 + $0xe0] sm:$0xff]   ;;  %v3597_v61 = vld [vmem:[%s3858_s15 + $0xe8] sm:$0xff]   ;;  %v3601_v63 = vld [vmem:[%s3858_s15 + $0xf0] sm:$0xff]  }
  0x2c   : > { %v3594_v60 = vld [vmem:[%s3858_s15 + $0xa0] sm:$0xff]   ;;  %v3598_v62 = vld [vmem:[%s3858_s15 + $0xa8] sm:$0xff]   ;;  %v3602_v0 = vld [vmem:[%s3858_s15 + $0xb0] sm:$0xff]  }
  0x2d   : > { %v3605_v2 = vld [vmem:[%s3858_s15 + $0xf8] sm:$0xff]   ;;  %v3611_v5 = vld [vmem:[%s3858_s15 + $0x1c0] sm:$0xff]   ;;  %v3615_v11 = vld [vmem:[%s3858_s15 + $0x1c8] sm:$0xff]  }
  0x2e   : > { %3341 = vmatpush3.bf16.msra.mxu0 %v3564_v13  ;;  %v3606_v4 = vld [vmem:[%s3858_s15 + $0xb8] sm:$0xff]   ;;  %v3614_v8 = vld [vmem:[%s3858_s15 + $0x180] sm:$0xff]   ;;  %v3616_v16 = vld [vmem:[%s3858_s15 + $0x188] sm:$0xff]  }
  0x2f   : > { %3342 = vmatprep.subr.bf16.mxu0 %v3565_v14  ;;  %v498_v6 = vld [vmem:[%s3883_s26 + $0x18] sm:$0xff]  ;;  %v3618_v18 = vld [vmem:[%s3858_s15 + $0x190] sm:$0xff]   ;;  %s465_s26 = sand.u32 1, %s3707_s22  }
  0x30   : > { %v3098_v9 = vcombine.high %v498_v6, %v498_v6  ;;  %v3625_v25 = vld [vmem:[%s3858_s15 + $0x1f0] sm:$0xff]   ;;  %s3078_s28 = sshll.u32 %s465_s26, 7  ;;  %s2926_s25 = scalar_lea.sflag [#allocation3], %s465_s26 }
  0x32   : > { %3343 = vmatpush3.bf16.msra.mxu0 %v3566_v15 }
  0x33   : > { %3344 = vmatprep.subr.bf16.mxu0 %v3567_v17  ;;  %v3617_v17 = vld [vmem:[%s3858_s15 + $0x1d0] sm:$0xff]  }
  0x36   : > { %3345 = vmatpush3.bf16.msra.mxu0 %v3568_v19  ;;  %v3619_v19 = vld [vmem:[%s3858_s15 + $0x1d8] sm:$0xff]  }
  0x37   : > { %3346 = vmatprep.subr.bf16.mxu0 %v3569_v20  ;;  %v3620_v20 = vld [vmem:[%s3858_s15 + $0x198] sm:$0xff]  }
  0x3a   : > { %3347 = vmatpush3.bf16.msra.mxu0 %v3570_v21  ;;  %v3621_v21 = vld [vmem:[%s3858_s15 + $0x1e0] sm:$0xff]  }
  0x3b   : > { %3348 = vmatprep.subr.bf16.mxu0 %v3572_v22  ;;  %v3622_v22 = vld [vmem:[%s3858_s15 + $0x1a0] sm:$0xff]  }
  0x3e   : > { %3349 = vmatpush3.bf16.msra.mxu0 %v3573_v23  ;;  %v3623_v23 = vld [vmem:[%s3858_s15 + $0x1e8] sm:$0xff]  }
  0x3f   : > { %3378 = vmatprep.subr.bf16.mxu0 %v3579_v26  ;;  %v3626_v26 = vld [vmem:[%s3858_s15 + $0x1b0] sm:$0xff]  }
  0x41   : > { %1184 = vmatmul.mubr.bf16.vlgmr.msra.gmra.mrb[4].mxu0 %v3091_v24  ;;  %v3624_v24 = vld [vmem:[%s3858_s15 + $0x1a8] sm:$0xff]  }
  0x42   : > { %3379 = vmatpush3.bf16.msra.mxu0 %v3580_v27  ;;  %1263 = vmatprep.mubr.bf16.mxu0 %v3096_v43  ;;  %v3627_v27 = vld [vmem:[%s3858_s15 + $0x1f8] sm:$0xff]  }
  0x43   : > { %3380 = vmatprep.subr.bf16.mxu0 %v3583_v28  ;;  %v3628_v28 = vld [vmem:[%s3858_s15 + $0x1b8] sm:$0xff]  }
  0x46   : > { %3381 = vmatpush3.bf16.msra.mxu0 %v3584_v29  ;;  %v3097_v29 = vcombine.low %v498_v6, %v498_v6  ;;  %v1734_v6 = vld [vmem:[%s4389_s10] sm:$0xff] }
  0x47   : > { %3382 = vmatprep.subr.bf16.mxu0 %v3587_v30 }
  0x4a   : > { %3383 = vmatpush3.bf16.msra.mxu0 %v3588_v31 }
  0x4b   : > { %3384 = vmatprep.subr.bf16.mxu0 %v3591_v32 }
  0x4e   : > { %3385 = vmatpush3.bf16.msra.mxu0 %v3592_v33 }
  0x4f   : > { %3386 = vmatprep.subr.bf16.mxu0 %v3595_v34 }
  0x52   : > { %3387 = vmatpush3.bf16.msra.mxu0 %v3596_v35  ;;  %v3631_v35 = vld [vmem:[%s4385_s6] sm:$0xff]  }
  0x53   : > { %3388 = vmatprep.subr.bf16.mxu0 %v3599_v36  ;;  %v3632_v36 = vld [vmem:[%s4385_s6 + $0x10] sm:$0xff]  }
  0x56   : > { %3389 = vmatpush3.bf16.msra.mxu0 %v3600_v37  ;;  %v3633_v37 = vld [vmem:[%s4385_s6 + $0x8] sm:$0xff]  }
  0x57   : > { %3390 = vmatprep.subr.bf16.mxu0 %v3603_v38  ;;  %v3634_v38 = vld [vmem:[%s4385_s6 + $0x18] sm:$0xff]  }
  0x5a   : > { %3391 = vmatpush3.bf16.msra.mxu0 %v3604_v39  ;;  %v3719_v39 = vmov 0  }
  0x5b   : > { %3392 = vmatprep.subr.bf16.mxu0 %v3607_v40  ;;  %3556 = vset.pattern.permute.xlu0 %v3719_v39  ;;  %v629_v40 = vld [vmem:[%s489_s29] sm:$0xff]  ;;  %s4312_s29 = scalar_lea.vmem [#allocation2], %s3078_s28 }
  0x5c   : > { %1727 = vperm.xlu0 %3556, %v629_v40   ;;  %s2943_s15 = sshll.u32 %s4312_s29, 4  ;;  %s4335_s15 = int_to_ptr.vmem [resolvable:$true] %s2943_s15 }
  0x5d   : > { %s3653_s20 = scalar_lea.vmem %s4335_s15, 2048  ;;  %p3660_p0 = scmp.lt.s32.totalorder %s4335_s15, %s3658_s23 }
  0x5e   : > { %3393 = vmatpush3.bf16.msra.mxu0 %v3610_v41  ;;  %p3654_p11 = scmp.ne.s32.totalorder %s4335_s15, %s3653_s20 }
  0x5f   : > { %3454 = vmatprep.subr.bf16.mxu0 %v3717_v1 }
  0x60   : > { %p3655_p12 = pnand %p3654_p11, %p3824_p5 }
  0x61   : > { %1264 = vmatmul.mubr.bf16.vlgmr.msra.gmra.mrb[8].mxu0 %v3095_v44 }
  0x62   : > { %3458 = vmatprep.mubr.msk.bf16.mxu0 %vm3718_vm1, %v3717_v1  ;;  %3455 = vmatpush3.bf16.msra.mxu0 %v3631_v35  ;;  %p3656_p13 = pneg %p3655_p12 }
  0x63   : > { %3456 = vmatprep.subr.bf16.mxu0 %v3717_v1 }
  0x66   : > { %3457 = vmatpush3.bf16.msra.mxu0 %v3633_v37 }
  0x67   : > { %3462 = vmatprep.subr.bf16.mxu0 %v3717_v1 }
  0xf4   : > { %v672_v46 = vpop.f32.mrb[0].mxu0 }
  0xf5   : > { %v678_v49 = vpack.c.bf16 %v672_v46, %v672_v46  ;;  %v3444_v50 = vpop.f32.mrb[1].mxu0 }
  0xf6   : > { %v675_v52 = vpop.f32.mrb[2].mxu0 }
  0xf7   : > { %v3445_v53 = vpop.f32.mrb[3].mxu0  ;;  %3451 = vmatmul.mubr.msk.bf16.vlgmr.msra.gmra.mrb[0].mxu1 %vm695_vm3, %v678_v49 }
  0xf8   : > { %3357 = vmatpush3.bf16.msra.mxu1 %v3578_v47  ;;  %1223 = vmatprep.mubr.bf16.mxu1 %v3094_v48 }
  0xf9   : > { %3358 = vmatprep.subr.bf16.mxu1 %v3581_v51 }
  0xfc   : > { %3359 = vmatpush3.bf16.msra.mxu1 %v3582_v54 }
  0xfd   : > { %3360 = vmatprep.subr.bf16.mxu1 %v3585_v55 }
 0x100   : > { %3361 = vmatpush3.bf16.msra.mxu1 %v3586_v56 }
 0x101   : > { %3362 = vmatprep.subr.bf16.mxu1 %v3589_v57 }
 0x104   : > { %3363 = vmatpush3.bf16.msra.mxu1 %v3590_v58 }
 0x105   : > { %3364 = vmatprep.subr.bf16.mxu1 %v3593_v59  ;;  %v3635_v59 = vld [vmem:[%s4386_s7] sm:$0xff]  }
 0x108   : > { %3365 = vmatpush3.bf16.msra.mxu1 %v3594_v60  ;;  %v3636_v60 = vld [vmem:[%s4386_s7 + $0x10] sm:$0xff]  }
 0x109   : > { %3366 = vmatprep.subr.bf16.mxu1 %v3597_v61 }
 0x10c   : > { %3367 = vmatpush3.bf16.msra.mxu1 %v3598_v62  ;;  %v3637_v62 = vld [vmem:[%s4386_s7 + $0x8] sm:$0xff]  }
 0x10d   : > { %3368 = vmatprep.subr.bf16.mxu1 %v3601_v63  ;;  %v3638_v63 = vld [vmem:[%s4386_s7 + $0x18] sm:$0xff]  }
 0x110   : > { %3369 = vmatpush3.bf16.msra.mxu1 %v3602_v0  ;;  %v3639_v0 = vld [vmem:[%s4385_s6 + $0x20] sm:$0xff]  }
 0x111   : > { %3370 = vmatprep.subr.bf16.mxu1 %v3605_v2  ;;  %v3641_v2 = vld [vmem:[%s4386_s7 + $0x20] sm:$0xff]  }
 0x114   : > { %3371 = vmatpush3.bf16.msra.mxu1 %v3606_v4  ;;  %v3350_v10 = vpop.f32.mrb[4].mxu0  ;;  %v3640_v4 = vld [vmem:[%s4385_s6 + $0x28] sm:$0xff]  }
 0x115   : > { %3400 = vmatprep.subr.bf16.mxu1 %v3611_v5  ;;  %v3351_v12 = vpop.f32.mrb[5].mxu0  ;;  %v3642_v5 = vld [vmem:[%s4386_s7 + $0x28] sm:$0xff]  }
 0x116   : > { %v3352_v13 = vadd.f32 %v3351_v12, %v3350_v10  ;;  %v3353_v14 = vpop.f32.mrb[6].mxu0  ;;  %v1751_v10 = vld [vmem:[%s4389_s10 + $0x88] sm:$0xff] }
 0x117   : > { %1224 = vmatmul.mubr.bf16.vlgmr.msra.gmra.mrb[4].mxu1 %v3093_v7  ;;  %v3354_v15 = vpop.f32.mrb[7].mxu0  ;;  %v1750_v7 = vld [vmem:[%s4389_s10 + $0x80] sm:$0xff] }
 0x118   : > { %3401 = vmatpush3.bf16.msra.mxu1 %v3614_v8  ;;  %1303 = vmatprep.mubr.bf16.mxu1 %v3098_v9  ;;  %v3209_v8 = vcombine.low %v1734_v6, %v1750_v7  ;;  %v3210_v9 = vcombine.high %v1734_v6, %v1750_v7  ;;  %v1782_v14 = vld [vmem:[%s4389_s10 + $0x180] sm:$0xff]  ;;  %v1767_v15 = vld [vmem:[%s4389_s10 + $0x108] sm:$0xff]  ;;  %v1722_v6 = vunpack.c.l.bf16 %v3864_v3 }
 0x119   : > { %3402 = vmatprep.subr.bf16.mxu1 %v3615_v11 }
 0x11c   : > { %3403 = vmatpush3.bf16.msra.mxu1 %v3616_v16 }
 0x11d   : > { %3404 = vmatprep.subr.bf16.mxu1 %v3617_v17  ;;  %v1783_v17 = vld [vmem:[%s4389_s10 + $0x188] sm:$0xff] }
 0x120   : > { %3405 = vmatpush3.bf16.msra.mxu1 %v3618_v18 }
 0x121   : > { %3406 = vmatprep.subr.bf16.mxu1 %v3619_v19  ;;  %v3243_v19 = vcombine.low %v1767_v15, %v1783_v17 }
 0x124   : > { %3407 = vmatpush3.bf16.msra.mxu1 %v3620_v20  ;;  %v3244_v20 = vcombine.high %v1767_v15, %v1783_v17 }
 0x125   : > { %3408 = vmatprep.subr.bf16.mxu1 %v3621_v21  ;;  %v4050_v21 = vld [vmem:[%s4389_s10 + $0x10] sm:$0xff] }
 0x128   : > { %3409 = vmatpush3.bf16.msra.mxu1 %v3622_v22  ;;  %v4055_v22 = vld [vmem:[%s4389_s10 + $0x90] sm:$0xff] }
 0x129   : > { %3410 = vmatprep.subr.bf16.mxu1 %v3623_v23  ;;  %v4060_v23 = vld [vmem:[%s4389_s10 + $0x18] sm:$0xff] }
 0x12c   : > { %3411 = vmatpush3.bf16.msra.mxu1 %v3624_v24  ;;  %v3214_v24 = vcombine.high %v4050_v21, %v4055_v22 }
 0x12d   : > { %3412 = vmatprep.subr.bf16.mxu1 %v3625_v25  ;;  %v4067_v25 = vld [vmem:[%s4389_s10 + $0x98] sm:$0xff] }
 0x130   : > { %3413 = vmatpush3.bf16.msra.mxu1 %v3626_v26  ;;  %v3213_v26 = vcombine.low %v4050_v21, %v4055_v22  ;;  %v1786_v21 = vld [vmem:[%s4389_s10 + $0x1a0] sm:$0xff]  ;;  %v1771_v22 = vld [vmem:[%s4389_s10 + $0x128] sm:$0xff] }
 0x131   : > { %3414 = vmatprep.subr.bf16.mxu1 %v3627_v27  ;;  %v3215_v27 = vcombine.low %v4060_v23, %v4067_v25 }
 0x134   : > { %3415 = vmatpush3.bf16.msra.mxu1 %v3628_v28  ;;  %v3394_v30 = vpop.f32.mrb[8].mxu0  ;;  %v3216_v28 = vcombine.high %v4060_v23, %v4067_v25  ;;  %v1787_v23 = vld [vmem:[%s4389_s10 + $0x1a8] sm:$0xff] }
 0x135   : > { %3470 = vmatprep.subr.bf16.mxu1 %v3717_v1  ;;  %v3395_v31 = vpop.f32.mrb[9].mxu0 }
 0x136   : > { %v3396_v32 = vadd.f32 %v3395_v31, %v3394_v30  ;;  %v3397_v33 = vpop.f32.mrb[10].mxu0  ;;  %v3167_v30 = vld [vmem:[%s4388_s9] ss:$0 sm:$0xff] }
 0x137   : > { %1304 = vmatmul.mubr.bf16.vlgmr.msra.gmra.mrb[8].mxu1 %v3097_v29  ;;  %v3398_v34 = vpop.f32.mrb[11].mxu0  ;;  %v3163_v29 = vld [vmem:[%s4387_s8] ss:$0 sm:$0xff]  ;;  %v3186_v33 = vld [vmem:[%s4388_s9 + $0x1] ss:$0 sm:$0xff] }
 0x138   : > { %3474 = vmatprep.mubr.msk.bf16.mxu1 %vm3718_vm1, %v3717_v1  ;;  %3471 = vmatpush3.bf16.msra.mxu1 %v3632_v36  ;;  %v3502_v31 = vadd.f32 %v3167_v30, %v3163_v29 }
 0x139   : > { %3472 = vmatprep.subr.bf16.mxu1 %v3717_v1 }
 0x13c   : > { %3473 = vmatpush3.bf16.msra.mxu1 %v3634_v38 }
 0x13d   : > { %3478 = vmatprep.subr.bf16.mxu1 %v3717_v1 }
 0x1ca   : > { %v733_v41 = vpop.f32.mrb[0].mxu1 }
 0x1cb   : > { %v1186_v42 = vadd.f32 %v3352_v13, %v733_v41  ;;  %v3452_v43 = vpop.f32.mrb[1].mxu1  ;;  %v1766_v13 = vld [vmem:[%s4389_s10 + $0x100] sm:$0xff] }
 0x1cc   : > { %v736_v44 = vpop.f32.mrb[2].mxu1  ;;  %v3242_v16 = vcombine.high %v1766_v13, %v1782_v14  ;;  %v3241_v18 = vcombine.low %v1766_v13, %v1782_v14  ;;  %v1784_v13 = vld [vmem:[%s4389_s10 + $0x190] sm:$0xff]  ;;  %v1769_v14 = vld [vmem:[%s4389_s10 + $0x118] sm:$0xff] }
 0x1cd   : > { %v3453_v45 = vpop.f32.mrb[3].mxu1 }
 0x1ea   : > { %v3372_v46 = vpop.f32.mrb[4].mxu1 }
 0x1eb   : > { %v3373_v47 = vpop.f32.mrb[5].mxu1 }
 0x1ec   : > { %v3374_v48 = vadd.f32 %v3373_v47, %v3372_v46  ;;  %v3375_v49 = vpop.f32.mrb[6].mxu1 }
 0x1ed   : > { %v3376_v50 = vpop.f32.mrb[7].mxu1 }
 0x1ee   : > { %v1226_v51 = vadd.f32 %v3374_v48, %v1186_v42 }
 0x1f0   : > { %v1266_v52 = vadd.f32 %v3396_v32, %v1226_v51  ;;  %v3177_v32 = vld [vmem:[%s4387_s8 + $0x1] ss:$0 sm:$0xff] }
 0x1f1   : > { %v3504_v36 = vadd.f32 %v3186_v33, %v3177_v32  ;;  %v1770_v33 = vld [vmem:[%s4389_s10 + $0x120] sm:$0xff] }
 0x20a   : > { %v3416_v53 = vpop.f32.mrb[8].mxu1 }
 0x20b   : > { %v3417_v54 = vpop.f32.mrb[9].mxu1 }
 0x20c   : > { %v3418_v55 = vadd.f32 %v3417_v54, %v3416_v53  ;;  %v3419_v56 = vpop.f32.mrb[10].mxu1 }
 0x20d   : > { %v3420_v57 = vpop.f32.mrb[11].mxu1 }
 0x20e   : > { %v1306_v58 = vadd.f32 %v3418_v55, %v1266_v52 }
 0x210   : > { %v1311_v61 = vpack.c.bf16 %v1306_v58, %v1306_v58 }
 0x212   : > { %3459 = vmatmul.mubr.msk.bf16.vlgmr.msra.gmra.mrb[12].mxu0 %vm695_vm3, %v1311_v61  ;;  %3475 = vmatmul.mubr.msk.bf16.vlgmr.msra.gmra.mrb[12].mxu1 %vm695_vm3, %v1311_v61 }
 0x213   : > { %3463 = vmatpush3.bf16.msra.mxu0 %v3635_v59  ;;  %3479 = vmatpush3.bf16.msra.mxu1 %v3636_v60  ;;  %v3205_v59 = vld [vmem:[%s4388_s9 + $0x2] ss:$0 sm:$0xff] }
 0x214   : > { %3464 = vmatprep.subr.bf16.mxu0 %v3717_v1  ;;  %3480 = vmatprep.subr.bf16.mxu1 %v3717_v1 }
 0x215   : > { %3466 = vmatprep.mubr.msk.bf16.mxu0 %vm3718_vm1, %v3717_v1  ;;  %3482 = vmatprep.mubr.msk.bf16.mxu1 %vm3718_vm1, %v3717_v1 }
 0x217   : > { %3465 = vmatpush3.bf16.msra.mxu0 %v3637_v62  ;;  %3481 = vmatpush3.bf16.msra.mxu1 %v3638_v63  ;;  %v3196_v62 = vld [vmem:[%s4387_s8 + $0x2] ss:$0 sm:$0xff] }
 0x218   : > { %3486 = vmatprep.subr.bf16.mxu0 %v3717_v1  ;;  %3494 = vmatprep.subr.bf16.mxu1 %v3717_v1 }
 0x21e   : > { %3467 = vmatmul.mubr.msk.bf16.vlgmr.msra.gmra.mrb[12].mxu0 %vm695_vm3, %v3864_v3  ;;  %3483 = vmatmul.mubr.msk.bf16.vlgmr.msra.gmra.mrb[12].mxu1 %vm695_vm3, %v3864_v3 }
 0x21f   : > { %3487 = vmatpush3.bf16.msra.mxu0 %v3639_v0  ;;  %3490 = vmatprep.mubr.msk.bf16.mxu0 %vm3718_vm1, %v3717_v1 }
 0x220   : > { %3488 = vmatprep.subr.bf16.mxu0 %v3717_v1  ;;  %3495 = vmatpush3.bf16.msra.mxu1 %v3641_v2 }
 0x221   : > { %3496 = vmatprep.subr.bf16.mxu1 %v3717_v1  ;;  %3498 = vmatprep.mubr.msk.bf16.mxu1 %vm3718_vm1, %v3717_v1  ;;  %v1735_v1 = vld [vmem:[%s4389_s10 + $0x8] sm:$0xff] }
 0x222   : > { %v3211_v11 = vcombine.low %v1735_v1, %v1751_v10  ;;  %v3212_v12 = vcombine.high %v1735_v1, %v1751_v10  ;;  %v1728_v10 = vpop.permute.xlu0 %1727 }
 0x223   : > { %3489 = vmatpush3.bf16.msra.mxu0 %v3640_v4 }
 0x224   : > { %3497 = vmatpush3.bf16.msra.mxu1 %v3642_v5  ;;  %2121 = vmatprep.subr.bf16.mxu0 %v3210_v9 }
 0x225   : > { %2162 = vmatprep.subr.bf16.mxu1 %v3212_v12  ;;  %v1768_v12 = vld [vmem:[%s4389_s10 + $0x110] sm:$0xff] }
 0x226   : > { %3491 = vmatmul.mubr.msk.bf16.vlgmr.msra.gmra.mrb[16].mxu0 %vm695_vm3, %v1311_v61  ;;  %v3246_v17 = vcombine.high %v1768_v12, %v1784_v13  ;;  %v3245_v29 = vcombine.low %v1768_v12, %v1784_v13  ;;  %v1776_v13 = vld [vmem:[%s4389_s10 + $0x150] sm:$0xff] }
 0x227   : > { %3499 = vmatmul.mubr.msk.bf16.vlgmr.msra.gmra.mrb[16].mxu1 %vm695_vm3, %v3864_v3  ;;  %2153 = vmatprep.mubr.bf16.mxu0 %v3719_v39  ;;  %v1785_v3 = vld [vmem:[%s4389_s10 + $0x198] sm:$0xff] }
 0x228   : > { %2194 = vmatprep.mubr.bf16.mxu1 %v3719_v39  ;;  %2122 = vmatpush1.bf16.msra.mxu0 %v3209_v8  ;;  %v3247_v30 = vcombine.low %v1769_v14, %v1785_v3 }
 0x229   : > { %2163 = vmatpush1.bf16.msra.mxu1 %v3211_v11  ;;  %2123 = vmatprep.subr.bf16.mxu0 %v3242_v16 }
 0x22a   : > { %2164 = vmatprep.subr.bf16.mxu1 %v3244_v20  ;;  %v1754_v20 = vld [vmem:[%s4389_s10 + $0xa0] sm:$0xff] }
 0x22c   : > { %2124 = vmatpush1.bf16.msra.mxu0 %v3241_v18  ;;  %v3248_v18 = vcombine.high %v1769_v14, %v1785_v3  ;;  %v1792_v14 = vld [vmem:[%s4389_s10 + $0x1d0] sm:$0xff]  ;;  %v1777_v3 = vld [vmem:[%s4389_s10 + $0x158] sm:$0xff] }
 0x22d   : > { %2165 = vmatpush1.bf16.msra.mxu1 %v3243_v19  ;;  %2203 = vmatprep.subr.bf16.mxu0 %v3214_v24  ;;  %v1738_v19 = vld [vmem:[%s4389_s10 + $0x20] sm:$0xff]  ;;  %v1739_v24 = vld [vmem:[%s4389_s10 + $0x28] sm:$0xff] }
 0x22e   : > { %2244 = vmatprep.subr.bf16.mxu1 %v3216_v28  ;;  %v1755_v28 = vld [vmem:[%s4389_s10 + $0xa8] sm:$0xff]  ;;  %v3217_v25 = vcombine.low %v1738_v19, %v1754_v20 }
 0x22f   : > { %v3220_v32 = vcombine.high %v1739_v24, %v1755_v28 }
 0x2f1   : > { %v1437_v34 = vpop.f32.mrb[12].mxu0  ;;  %v1574_v35 = vpop.f32.mrb[12].mxu1 }
 0x2f2   : > { %v3503_v37 = vadd.f32 %v3502_v31, %v1437_v34  ;;  %v3468_v38 = vpop.f32.mrb[13].mxu0  ;;  %v3484_v40 = vpop.f32.mrb[13].mxu1  ;;  %v3505_v46 = vadd.f32 %v3504_v36, %v1574_v35  ;;  %v3218_v31 = vcombine.high %v1738_v19, %v1754_v20  ;;  %v3252_v34 = vcombine.high %v1771_v22, %v1787_v23  ;;  %v1740_v35 = vld [vmem:[%s4389_s10 + $0x30] sm:$0xff] }
 0x2f3   : > { %v1440_v41 = vpop.f32.mrb[14].mxu0  ;;  %v1577_v42 = vpop.f32.mrb[14].mxu1  ;;  %v1756_v36 = vld [vmem:[%s4389_s10 + $0xb0] sm:$0xff]  ;;  %v1757_v38 = vld [vmem:[%s4389_s10 + $0xb8] sm:$0xff]  ;;  %v3249_v40 = vcombine.low %v1770_v33, %v1786_v21  ;;  %v3262_v19 = vcombine.high %v1776_v13, %v1792_v14 }
 0x2f4   : > { %v3171_v43 = vmul.f32 -1.442695, %v3503_v37  ;;  %v3469_v44 = vpop.f32.mrb[15].mxu0  ;;  %v3485_v45 = vpop.f32.mrb[15].mxu1  ;;  %v3190_v47 = vmul.f32 -1.442695, %v3505_v46  ;;  %v3251_v41 = vcombine.low %v1771_v22, %v1787_v23  ;;  %v3222_v42 = vcombine.high %v1740_v35, %v1756_v36 }
 0x2f5   : > { %v1741_v37 = vld [vmem:[%s4389_s10 + $0x38] sm:$0xff]  ;;  %v1772_v44 = vld [vmem:[%s4389_s10 + $0x130] sm:$0xff]  ;;  %v1778_v22 = vld [vmem:[%s4389_s10 + $0x160] sm:$0xff] }
 0x2f6   : > { %3643 = vpow2.f32 %v3171_v43  ;;  %v3224_v43 = vcombine.high %v1741_v37, %v1757_v38  ;;  %v1788_v45 = vld [vmem:[%s4389_s10 + $0x1b0] sm:$0xff]  ;;  %v1773_v46 = vld [vmem:[%s4389_s10 + $0x138] sm:$0xff]  ;;  %v1794_v23 = vld [vmem:[%s4389_s10 + $0x1e0] sm:$0xff] }
 0x2f7   : > { %3645 = vpow2.f32 %v3190_v47  ;;  %v1789_v47 = vld [vmem:[%s4389_s10 + $0x1b8] sm:$0xff] }
 0x2f9   : > { %v1646_v48 = vpop.f32.mrb[16].mxu0 }
 0x2fa   : > { %v3492_v49 = vpop.f32.mrb[17].mxu0  ;;  %v1711_v50 = vpop.f32.mrb[16].mxu1  ;;  %v1647_v0 = vadd.f32 %v3196_v62, %v1646_v48  ;;  %v3221_v48 = vcombine.low %v1740_v35, %v1756_v36  ;;  %v1775_v62 = vld [vmem:[%s4389_s10 + $0x148] sm:$0xff]  ;;  %v3266_v35 = vcombine.high %v1778_v22, %v1794_v23 }
 0x2fb   : > { %v1649_v51 = vpop.f32.mrb[18].mxu0  ;;  %v3500_v52 = vpop.f32.mrb[17].mxu1  ;;  %v1712_v61 = vadd.f32 %v3205_v59, %v1711_v50  ;;  %v3223_v49 = vcombine.low %v1741_v37, %v1757_v38  ;;  %v3254_v50 = vcombine.high %v1772_v44, %v1788_v45  ;;  %v1748_v37 = vld [vmem:[%s4389_s10 + $0x70] sm:$0xff] }
 0x2fc   : > { %v3493_v53 = vpop.f32.mrb[19].mxu0  ;;  %v1714_v54 = vpop.f32.mrb[18].mxu1  ;;  %v3256_v51 = vcombine.high %v1773_v46, %v1789_v47  ;;  %v1742_v52 = vld [vmem:[%s4389_s10 + $0x40] sm:$0xff]  ;;  %v1764_v38 = vld [vmem:[%s4389_s10 + $0xf0] sm:$0xff] }
 0x2fd   : > { %v3501_v55 = vpop.f32.mrb[19].mxu1  ;;  %v1758_v53 = vld [vmem:[%s4389_s10 + $0xc0] sm:$0xff]  ;;  %v1743_v54 = vld [vmem:[%s4389_s10 + $0x48] sm:$0xff] }
 0x2fe   : > { %v1759_v55 = vld [vmem:[%s4389_s10 + $0xc8] sm:$0xff] }
 0x2ff   : > { %v3228_v59 = vcombine.high %v1743_v54, %v1759_v55 }
 0x300   : > { %v3644_v56 = vpop.eup %3643 }
 0x301   : > { %v1447_v57 = vadd.f32 1.0, %v3644_v56  ;;  %v3646_v58 = vpop.eup %3645  ;;  %v3253_v56 = vcombine.low %v1772_v44, %v1788_v45  ;;  %v3238_v44 = vcombine.high %v1748_v37, %v1764_v38 }
 0x302   : > { %v1584_v60 = vadd.f32 1.0, %v3646_v58  ;;  %v3226_v58 = vcombine.high %v1742_v52, %v1758_v53 }
 0x303   : > { %3647 = vrcp.f32 %v1447_v57  ;;  %v3255_v57 = vcombine.low %v1773_v46, %v1789_v47  ;;  %v1780_v46 = vld [vmem:[%s4389_s10 + $0x170] sm:$0xff] }
 0x304   : > { %3649 = vrcp.f32 %v1584_v60  ;;  %v1774_v60 = vld [vmem:[%s4389_s10 + $0x140] sm:$0xff]  ;;  %v1796_v47 = vld [vmem:[%s4389_s10 + $0x1f0] sm:$0xff] }
 0x30d   : > { %v3648_v63 = vpop.eup %3647 }
 0x30e   : > { %v1717_v2 = vmul.f32 %v3648_v63, %v1712_v61  ;;  %v3650_v5 = vpop.eup %3649  ;;  %v1790_v61 = vld [vmem:[%s4389_s10 + $0x1c0] sm:$0xff]  ;;  %v1791_v63 = vld [vmem:[%s4389_s10 + $0x1c8] sm:$0xff] }
 0x30f   : > { %v1720_v7 = vsub.f32 1.0, %v3650_v5  ;;  %v1723_v9 = vmul.f32 %v3650_v5, %v1722_v6  ;;  %v3260_v5 = vcombine.high %v1775_v62, %v1791_v63  ;;  %v1744_v6 = vld [vmem:[%s4389_s10 + $0x50] sm:$0xff] }
 0x310   : > { %v1718_v4 = vadd.f32 %v1717_v2, %v1647_v0  ;;  %v3225_v0 = vcombine.low %v1742_v52, %v1758_v53  ;;  %v3227_v2 = vcombine.low %v1743_v54, %v1759_v55  ;;  %v3270_v52 = vcombine.high %v1780_v46, %v1796_v47 }
 0x311   : > { %v3269_v54 = vcombine.low %v1780_v46, %v1796_v47 }
 0x312   : > { %3651 = vtanh.f32 %v1718_v4  ;;  %v3258_v4 = vcombine.high %v1774_v60, %v1790_v61 }
 0x31c   : > { %v3652_v1 = vpop.eup %3651 }
 0x31d   : > { %v1721_v8 = vmul.f32 %v3652_v1, %v1720_v7  ;;  %v1760_v7 = vld [vmem:[%s4389_s10 + $0xd0] sm:$0xff]  ;;  %v1745_v1 = vld [vmem:[%s4389_s10 + $0x58] sm:$0xff] }
 0x31f   : > { %v1724_v11 = vadd.f32 %v1723_v9, %v1721_v8  ;;  %v1761_v8 = vld [vmem:[%s4389_s10 + $0xd8] sm:$0xff]  ;;  %v3257_v9 = vcombine.low %v1774_v60, %v1790_v61 }
 0x320   : > { %v3232_v12 = vcombine.high %v1745_v1, %v1761_v8 }
 0x321   : > { %v1730_v15 = vmul.f32 %v1728_v10, %v1724_v11  ;;  %v3259_v10 = vcombine.low %v1775_v62, %v1791_v63  ;;  %v3230_v11 = vcombine.high %v1744_v6, %v1760_v7 }
 0x323   : > { %v4110_v16 = vpack.c.bf16 %v1730_v15, %v1730_v15  ;;  %v1793_v15 = vld [vmem:[%s4389_s10 + $0x1d8] sm:$0xff] }
 0x324   : > { %v3264_v20 = vcombine.high %v1777_v3, %v1793_v15 }
 0x325   : > { %1733 = vst.msk [vmem:[%s493_s30] sm:$0xf] %vm1732_vm4, %v4110_v16  ;;  %3273 = vmatmul.mubr.msk.bf16.vlgmr.msra.gmra.mrb[20].mxu0 %vm695_vm3, %v4110_v16  ;;  %3274 = vmatmul.mubr.msk.bf16.vlgmr.msra.gmra.mrb[20].mxu1 %vm695_vm3, %v4110_v16  ;;  %s3659_s30 = scalar_lea.vmem %s3658_s23, 4096 }
 0x326   : > { %2204 = vmatpush1.bf16.msra.mxu0 %v3213_v26  ;;  %2245 = vmatpush1.bf16.msra.mxu1 %v3215_v27  ;;  %v3219_v26 = vcombine.low %v1739_v24, %v1755_v28  ;;  %v3250_v27 = vcombine.high %v1770_v33, %v1786_v21  ;;  %v1746_v24 = vld [vmem:[%s4389_s10 + $0x60] sm:$0xff]  ;;  %p3661_p1 = scmp.lt.s32.totalorder %s3659_s30, %s3653_s20 }
 0x327   : > { %2205 = vmatprep.subr.bf16.mxu0 %v3246_v17  ;;  %2246 = vmatprep.subr.bf16.mxu1 %v3248_v18  ;;  %v3229_v17 = vcombine.low %v1744_v6, %v1760_v7  ;;  %v3231_v18 = vcombine.low %v1745_v1, %v1761_v8  ;;  %v1762_v28 = vld [vmem:[%s4389_s10 + $0xe0] sm:$0xff] }
 0x328   : > { %2235 = vmatprep.mubr.bf16.mxu0 %v3719_v39  ;;  %2276 = vmatprep.mubr.bf16.mxu1 %v3719_v39  ;;  %v3234_v33 = vcombine.high %v1746_v24, %v1762_v28  ;;  %p3662_p2 = por %p3661_p1, %p3660_p0 }
 0x32a   : > { %2206 = vmatpush1.bf16.msra.mxu0 %v3245_v29  ;;  %2247 = vmatpush1.bf16.msra.mxu1 %v3247_v30  ;;  %v1747_v29 = vld [vmem:[%s4389_s10 + $0x68] sm:$0xff]  ;;  %p3663_p3 = pnand %p3662_p2, %p3656_p13 }
 0x32b   : > { %2285 = vmatprep.subr.bf16.mxu0 %v3218_v31  ;;  %2326 = vmatprep.subr.bf16.mxu1 %v3220_v32  ;;  %v1763_v30 = vld [vmem:[%s4389_s10 + $0xe8] sm:$0xff]  ;;  %v3261_v31 = vcombine.low %v1776_v13, %v1792_v14  ;;  %v3263_v32 = vcombine.low %v1777_v3, %v1793_v15 }
 0x32c   : > { %v3236_v21 = vcombine.high %v1747_v29, %v1763_v30 }
 0x32d   : > { %3275 = vmatmul.mubr.msk.bf16.vlgmr.msra.gmra.mrb[24].mxu0 %vm695_vm3, %v4110_v16  ;;  %3276 = vmatmul.mubr.msk.bf16.vlgmr.msra.gmra.mrb[24].mxu1 %vm695_vm3, %v4110_v16 }
 0x32e   : > { %2286 = vmatpush1.bf16.msra.mxu0 %v3217_v25  ;;  %2327 = vmatpush1.bf16.msra.mxu1 %v3219_v26  ;;  %v1779_v25 = vld [vmem:[%s4389_s10 + $0x168] sm:$0xff] }
 0x32f   : > { %2287 = vmatprep.subr.bf16.mxu0 %v3250_v27  ;;  %2328 = vmatprep.subr.bf16.mxu1 %v3252_v34  ;;  %v1795_v26 = vld [vmem:[%s4389_s10 + $0x1e8] sm:$0xff]  ;;  %v3233_v27 = vcombine.low %v1746_v24, %v1762_v28  ;;  %v3235_v34 = vcombine.low %v1747_v29, %v1763_v30 }
 0x330   : > { %2317 = vmatprep.mubr.bf16.mxu0 %v3719_v39  ;;  %2358 = vmatprep.mubr.bf16.mxu1 %v3719_v39  ;;  %v3268_v36 = vcombine.high %v1779_v25, %v1795_v26 }
 0x332   : > { %2288 = vmatpush1.bf16.msra.mxu0 %v3249_v40  ;;  %2329 = vmatpush1.bf16.msra.mxu1 %v3251_v41  ;;  %v1749_v40 = vld [vmem:[%s4389_s10 + $0x78] sm:$0xff] }
 0x333   : > { %2367 = vmatprep.subr.bf16.mxu0 %v3222_v42  ;;  %2408 = vmatprep.subr.bf16.mxu1 %v3224_v43  ;;  %v1765_v41 = vld [vmem:[%s4389_s10 + $0xf8] sm:$0xff]  ;;  %v3265_v42 = vcombine.low %v1778_v22, %v1794_v23  ;;  %v3267_v43 = vcombine.low %v1779_v25, %v1795_v26 }
 0x334   : > { %v3240_v45 = vcombine.high %v1749_v40, %v1765_v41 }
 0x335   : > { %3277 = vmatmul.mubr.msk.bf16.vlgmr.msra.gmra.mrb[28].mxu0 %vm695_vm3, %v4110_v16  ;;  %3278 = vmatmul.mubr.msk.bf16.vlgmr.msra.gmra.mrb[28].mxu1 %vm695_vm3, %v4110_v16 }
 0x336   : > { %2368 = vmatpush1.bf16.msra.mxu0 %v3221_v48  ;;  %2409 = vmatpush1.bf16.msra.mxu1 %v3223_v49  ;;  %v1781_v48 = vld [vmem:[%s4389_s10 + $0x178] sm:$0xff] }
 0x337   : > { %2369 = vmatprep.subr.bf16.mxu0 %v3254_v50  ;;  %2410 = vmatprep.subr.bf16.mxu1 %v3256_v51  ;;  %v1797_v49 = vld [vmem:[%s4389_s10 + $0x1f8] sm:$0xff]  ;;  %v3237_v50 = vcombine.low %v1748_v37, %v1764_v38  ;;  %v3239_v51 = vcombine.low %v1749_v40, %v1765_v41 }
 0x338   : > { %2399 = vmatprep.mubr.bf16.mxu0 %v3719_v39  ;;  %2440 = vmatprep.mubr.bf16.mxu1 %v3719_v39  ;;  %v3272_v53 = vcombine.high %v1781_v48, %v1797_v49  ;;  %v3271_v55 = vcombine.low %v1781_v48, %v1797_v49 }
 0x33a   : > { %2370 = vmatpush1.bf16.msra.mxu0 %v3253_v56  ;;  %2411 = vmatpush1.bf16.msra.mxu1 %v3255_v57 }
 0x33b   : > { %2449 = vmatprep.subr.bf16.mxu0 %v3226_v58  ;;  %2490 = vmatprep.subr.bf16.mxu1 %v3228_v59 }
 0x33d   : > { %3279 = vmatmul.mubr.msk.bf16.vlgmr.msra.gmra.mrb[32].mxu0 %vm695_vm3, %v4110_v16  ;;  %3280 = vmatmul.mubr.msk.bf16.vlgmr.msra.gmra.mrb[32].mxu1 %vm695_vm3, %v4110_v16 }
 0x33e   : > { %2450 = vmatpush1.bf16.msra.mxu0 %v3225_v0  ;;  %2491 = vmatpush1.bf16.msra.mxu1 %v3227_v2 }
 0x33f   : > { %2451 = vmatprep.subr.bf16.mxu0 %v3258_v4  ;;  %2492 = vmatprep.subr.bf16.mxu1 %v3260_v5 }
 0x340   : > { %2481 = vmatprep.mubr.bf16.mxu0 %v3719_v39  ;;  %2522 = vmatprep.mubr.bf16.mxu1 %v3719_v39 }
 0x342   : > { %2452 = vmatpush1.bf16.msra.mxu0 %v3257_v9  ;;  %2493 = vmatpush1.bf16.msra.mxu1 %v3259_v10 }
 0x343   : > { %2531 = vmatprep.subr.bf16.mxu0 %v3230_v11  ;;  %2572 = vmatprep.subr.bf16.mxu1 %v3232_v12 }
 0x345   : > { %3281 = vmatmul.mubr.msk.bf16.vlgmr.msra.gmra.mrb[36].mxu0 %vm695_vm3, %v4110_v16  ;;  %3282 = vmatmul.mubr.msk.bf16.vlgmr.msra.gmra.mrb[36].mxu1 %vm695_vm3, %v4110_v16 }
 0x346   : > { %2532 = vmatpush1.bf16.msra.mxu0 %v3229_v17  ;;  %2573 = vmatpush1.bf16.msra.mxu1 %v3231_v18 }
 0x347   : > { %2533 = vmatprep.subr.bf16.mxu0 %v3262_v19  ;;  %2574 = vmatprep.subr.bf16.mxu1 %v3264_v20 }
 0x348   : > { %2563 = vmatprep.mubr.bf16.mxu0 %v3719_v39  ;;  %2604 = vmatprep.mubr.bf16.mxu1 %v3719_v39 }
 0x34a   : > { %2534 = vmatpush1.bf16.msra.mxu0 %v3261_v31  ;;  %2575 = vmatpush1.bf16.msra.mxu1 %v3263_v32 }
 0x34b   : > { %2613 = vmatprep.subr.bf16.mxu0 %v3234_v33  ;;  %2654 = vmatprep.subr.bf16.mxu1 %v3236_v21 }
 0x34d   : > { %3283 = vmatmul.mubr.msk.bf16.vlgmr.msra.gmra.mrb[40].mxu0 %vm695_vm3, %v4110_v16  ;;  %3284 = vmatmul.mubr.msk.bf16.vlgmr.msra.gmra.mrb[40].mxu1 %vm695_vm3, %v4110_v16 }
 0x34e   : > { %2614 = vmatpush1.bf16.msra.mxu0 %v3233_v27  ;;  %2655 = vmatpush1.bf16.msra.mxu1 %v3235_v34 }
 0x34f   : > { %2615 = vmatprep.subr.bf16.mxu0 %v3266_v35  ;;  %2656 = vmatprep.subr.bf16.mxu1 %v3268_v36 }
 0x350   : > { %2645 = vmatprep.mubr.bf16.mxu0 %v3719_v39  ;;  %2686 = vmatprep.mubr.bf16.mxu1 %v3719_v39 }
 0x352   : > { %2616 = vmatpush1.bf16.msra.mxu0 %v3265_v42  ;;  %2657 = vmatpush1.bf16.msra.mxu1 %v3267_v43 }
 0x353   : > { %2695 = vmatprep.subr.bf16.mxu0 %v3238_v44  ;;  %2736 = vmatprep.subr.bf16.mxu1 %v3240_v45 }
 0x355   : > { %3285 = vmatmul.mubr.msk.bf16.vlgmr.msra.gmra.mrb[44].mxu0 %vm695_vm3, %v4110_v16  ;;  %3286 = vmatmul.mubr.msk.bf16.vlgmr.msra.gmra.mrb[44].mxu1 %vm695_vm3, %v4110_v16 }
 0x356   : > { %2696 = vmatpush1.bf16.msra.mxu0 %v3237_v50  ;;  %2737 = vmatpush1.bf16.msra.mxu1 %v3239_v51 }
 0x357   : > { %2697 = vmatprep.subr.bf16.mxu0 %v3270_v52  ;;  %2738 = vmatprep.subr.bf16.mxu1 %v3272_v53 }
 0x358   : > { %2727 = vmatprep.mubr.bf16.mxu0 %v3719_v39  ;;  %2768 = vmatprep.mubr.bf16.mxu1 %v3719_v39 }
 0x35a   : > { %2698 = vmatpush1.bf16.msra.mxu0 %v3269_v54  ;;  %2739 = vmatpush1.bf16.msra.mxu1 %v3271_v55 }
 0x35d   : > { %3287 = vmatmul.mubr.msk.bf16.vlgmr.msra.gmra.mrb[48].mxu0 %vm695_vm3, %v4110_v16  ;;  %3288 = vmatmul.mubr.msk.bf16.vlgmr.msra.gmra.mrb[48].mxu1 %vm695_vm3, %v4110_v16 }
 0x3f8   : > { %v2155_v56 = vpop.f32.mrb[20].mxu0  ;;  %v2196_v57 = vpop.f32.mrb[20].mxu1 }
 0x3f9   : > { %v2157_v58 = vpop.f32.mrb[21].mxu0  ;;  %v2198_v59 = vpop.f32.mrb[21].mxu1 }
 0x3fa   : > { %v3312_v60 = vpack.c.bf16 %v2157_v58, %v2155_v56  ;;  %v3313_v61 = vpack.c.bf16 %v2198_v59, %v2196_v57  ;;  %v2159_v62 = vpop.f32.mrb[22].mxu0  ;;  %v2200_v63 = vpop.f32.mrb[22].mxu1 }
 0x3fb   : > { %v2160_v39 = vpop.f32.mrb[23].mxu0  ;;  %v2201_v0 = vpop.f32.mrb[23].mxu1 }
 0x3fc   : > { %2905 = vst [vmem:[%s4312_s29] sm:$0xff] %v3312_v60  ;;  %2906 = vst [vmem:[%s4312_s29 + $0x8] sm:$0xff] %v3313_v61 }
 0x400   : > { %v2237_v16 = vpop.f32.mrb[24].mxu0  ;;  %v2278_v2 = vpop.f32.mrb[24].mxu1 }
 0x401   : > { %v2239_v4 = vpop.f32.mrb[25].mxu0  ;;  %v2280_v5 = vpop.f32.mrb[25].mxu1 }
 0x402   : > { %v3314_v6 = vpack.c.bf16 %v2239_v4, %v2237_v16  ;;  %v3315_v7 = vpack.c.bf16 %v2280_v5, %v2278_v2  ;;  %v2241_v1 = vpop.f32.mrb[26].mxu0  ;;  %v2282_v8 = vpop.f32.mrb[26].mxu1 }
 0x403   : > { %v2242_v9 = vpop.f32.mrb[27].mxu0  ;;  %v2283_v10 = vpop.f32.mrb[27].mxu1 }
 0x404   : > { %2907 = vst [vmem:[%s4312_s29 + $0x10] sm:$0xff] %v3314_v6  ;;  %2908 = vst [vmem:[%s4312_s29 + $0x18] sm:$0xff] %v3315_v7 }
 0x408   : > { %v2319_v11 = vpop.f32.mrb[28].mxu0  ;;  %v2360_v12 = vpop.f32.mrb[28].mxu1 }
 0x409   : > { %v2321_v13 = vpop.f32.mrb[29].mxu0  ;;  %v2362_v14 = vpop.f32.mrb[29].mxu1 }
 0x40a   : > { %v3316_v3 = vpack.c.bf16 %v2321_v13, %v2319_v11  ;;  %v3317_v15 = vpack.c.bf16 %v2362_v14, %v2360_v12  ;;  %v2323_v17 = vpop.f32.mrb[30].mxu0  ;;  %v2364_v18 = vpop.f32.mrb[30].mxu1 }
 0x40b   : > { %v2324_v19 = vpop.f32.mrb[31].mxu0  ;;  %v2365_v20 = vpop.f32.mrb[31].mxu1 }
 0x40c   : > { %2909 = vst [vmem:[%s4312_s29 + $0x20] sm:$0xff] %v3316_v3  ;;  %2910 = vst [vmem:[%s4312_s29 + $0x28] sm:$0xff] %v3317_v15 }
 0x410   : > { %v2401_v24 = vpop.f32.mrb[32].mxu0  ;;  %v2442_v28 = vpop.f32.mrb[32].mxu1 }
 0x411   : > { %v2403_v29 = vpop.f32.mrb[33].mxu0  ;;  %v2444_v30 = vpop.f32.mrb[33].mxu1 }
 0x412   : > { %v3318_v31 = vpack.c.bf16 %v2403_v29, %v2401_v24  ;;  %v3319_v32 = vpack.c.bf16 %v2444_v30, %v2442_v28  ;;  %v2405_v33 = vpop.f32.mrb[34].mxu0  ;;  %v2446_v21 = vpop.f32.mrb[34].mxu1 }
 0x413   : > { %v2406_v22 = vpop.f32.mrb[35].mxu0  ;;  %v2447_v23 = vpop.f32.mrb[35].mxu1 }
 0x414   : > { %2911 = vst [vmem:[%s4312_s29 + $0x30] sm:$0xff] %v3318_v31  ;;  %2912 = vst [vmem:[%s4312_s29 + $0x38] sm:$0xff] %v3319_v32 }
 0x418   : > { %v2483_v25 = vpop.f32.mrb[36].mxu0  ;;  %v2524_v26 = vpop.f32.mrb[36].mxu1 }
 0x419   : > { %v2485_v27 = vpop.f32.mrb[37].mxu0  ;;  %v2526_v34 = vpop.f32.mrb[37].mxu1 }
 0x41a   : > { %v3320_v35 = vpack.c.bf16 %v2485_v27, %v2483_v25  ;;  %v3321_v36 = vpack.c.bf16 %v2526_v34, %v2524_v26  ;;  %v2487_v37 = vpop.f32.mrb[38].mxu0  ;;  %v2528_v38 = vpop.f32.mrb[38].mxu1 }
 0x41b   : > { %v2488_v40 = vpop.f32.mrb[39].mxu0  ;;  %v2529_v41 = vpop.f32.mrb[39].mxu1 }
 0x41c   : > { %2913 = vst [vmem:[%s4312_s29 + $0x40] sm:$0xff] %v3320_v35  ;;  %2914 = vst [vmem:[%s4312_s29 + $0x48] sm:$0xff] %v3321_v36 }
 0x420   : > { %v2565_v42 = vpop.f32.mrb[40].mxu0  ;;  %v2606_v43 = vpop.f32.mrb[40].mxu1 }
 0x421   : > { %v2567_v44 = vpop.f32.mrb[41].mxu0  ;;  %v2608_v45 = vpop.f32.mrb[41].mxu1 }
 0x422   : > { %v3322_v46 = vpack.c.bf16 %v2567_v44, %v2565_v42  ;;  %v3323_v47 = vpack.c.bf16 %v2608_v45, %v2606_v43  ;;  %v2569_v48 = vpop.f32.mrb[42].mxu0  ;;  %v2610_v49 = vpop.f32.mrb[42].mxu1 }
 0x423   : > { %v2570_v50 = vpop.f32.mrb[43].mxu0  ;;  %v2611_v51 = vpop.f32.mrb[43].mxu1 }
 0x424   : > { %2915 = vst [vmem:[%s4312_s29 + $0x50] sm:$0xff] %v3322_v46  ;;  %2916 = vst [vmem:[%s4312_s29 + $0x58] sm:$0xff] %v3323_v47 }
 0x428   : > { %v2647_v52 = vpop.f32.mrb[44].mxu0  ;;  %v2688_v53 = vpop.f32.mrb[44].mxu1 }
 0x429   : > { %v2649_v54 = vpop.f32.mrb[45].mxu0  ;;  %v2690_v55 = vpop.f32.mrb[45].mxu1 }
 0x42a   : > { %v3324_v56 = vpack.c.bf16 %v2649_v54, %v2647_v52  ;;  %v3325_v57 = vpack.c.bf16 %v2690_v55, %v2688_v53  ;;  %v2651_v58 = vpop.f32.mrb[46].mxu0  ;;  %v2692_v59 = vpop.f32.mrb[46].mxu1 }
 0x42b   : > { %v2652_v60 = vpop.f32.mrb[47].mxu0  ;;  %v2693_v61 = vpop.f32.mrb[47].mxu1 }
 0x42c   : > { %2917 = vst [vmem:[%s4312_s29 + $0x60] sm:$0xff] %v3324_v56  ;;  %2918 = vst [vmem:[%s4312_s29 + $0x68] sm:$0xff] %v3325_v57 }
 0x430   : > { %v2729_v62 = vpop.f32.mrb[48].mxu0  ;;  %v2770_v63 = vpop.f32.mrb[48].mxu1 }
 0x431   : > { %v2731_v39 = vpop.f32.mrb[49].mxu0  ;;  %v2772_v0 = vpop.f32.mrb[49].mxu1 }
 0x432   : > { %v3326_v16 = vpack.c.bf16 %v2731_v39, %v2729_v62  ;;  %v3327_v2 = vpack.c.bf16 %v2772_v0, %v2770_v63  ;;  %v2733_v4 = vpop.f32.mrb[50].mxu0  ;;  %v2774_v5 = vpop.f32.mrb[50].mxu1 }
 0x433   : > { %v2734_v6 = vpop.f32.mrb[51].mxu0  ;;  %v2775_v7 = vpop.f32.mrb[51].mxu1 }
 0x434   : > { %2919 = vst [vmem:[%s4312_s29 + $0x70] sm:$0xff] %v3326_v16  ;;  %2920 = vst [vmem:[%s4312_s29 + $0x78] sm:$0xff] %v3327_v2 }
 0x435   : > { %3666 = shalt.err (!%p3663_p3)
}
 0x436   : > { %s3667_s26 = scalar_lea.hbm %s4333_s19, 2048  ;;  %s3671_s17 = scalar_lea.hbm %s4391_s12, 4096 }
 0x437   : > { %p3668_p4 = scmp.ne.s32.totalorder %s4333_s19, %s3667_s26  ;;  %p3672_p9 = scmp.lt.u32.totalorder %s4333_s19, %s4391_s12 }
 0x438   : > { %p3673_p10 = scmp.lt.u32.totalorder %s3671_s17, %s3667_s26  ;;  %p3675_p12 = scmp.lt.u32.totalorder %s3667_s26, %s4333_s19 }
 0x439   : > { %p3669_p7 = pnand %p3668_p4, %p3824_p5 }
 0x43a   : > { %p3674_p11 = por %p3673_p10, %p3672_p9 }
 0x43b   : > { %p3670_p8 = pneg %p3669_p7 }
 0x43c   : > { %p3676_p13 = por %p3675_p12, %p3674_p11 }
 0x43e   : > { %p3677_p0 = pnand %p3676_p13, %p3670_p8 }
 0x440   : > { %3680 = shalt.err (!%p3677_p0)
}
 0x441   : > { %3514 = dma.vmem_to_hbm [thread:$0]  (%p3824_p5), %s4335_s15, 2048, %s4333_s19, %s2926_s25  }
 0x442 PF: > { %p3520_p1 = scmp.ge.s32.totalorder %s3715_s24, 2  ;;  %s2962_s20 = sand.u32 1, %s3703_s21  }
 0x443   : > { %s2963_s5 = scalar_lea.sflag [#allocation3], %s2962_s20 }
 0x444   : > { %p3517_p2 = pnand %p3520_p1, %p3828_p6 }
 0x446   : > { %3698 = dma.done.wait (!%p3517_p2), %s2963_s5, 2048  }
 0x447   : > { %3700 = vsyncadd (!%p3517_p2), %s2963_s5, 4294965248  ;;  %s4399_s23 = sld [smem:[#allocation5_spill]]  ;;  %s4400_s30 = sld [smem:[#allocation6_spill]] }
 0x448   : > { %p23_p3 = scmp.ge.s32.totalorder %s3811_s27, 4   ;;  %s4401_s21 = smov %s3707_s22 }
 0x449   : > { %s4404_s24 = smov %s3811_s27 }
 0x44a   :  { %25 = sbr.rel (!%p23_p3) target bundleno = 5 (0x5), region = 131 }
 0x44d   : > { %s4402_s22 = smov %s4399_s23  ;;  %s4403_s23 = smov %s4400_s30 }
 0x451   :  { %2968 = vsyncpa [#allocation3], 1 }
 0x452   :  { %2970 = vsyncpa [#allocation3 + $0x1], 1 }

// kernel: mpnn_forward.9
= control target key start
LH: loop header
LB: loop body
LE: loop exit
PB: predicated region body
PF: predicated region fallthrough
CT: control target
= control target key end

     0   :  { %s2674_s0 = inlined_call_operand.vmem [shape: bf16[16,32], index: 0, kind: input, shape index: {}]   ;;  %s2675_s1 = inlined_call_operand.vmem [shape: bf16[16,32], index: 1, kind: input, shape index: {}]   ;;  %s2676_s2 = inlined_call_operand.vmem [shape: f32[16,1], index: 2, kind: input, shape index: {}]   ;;  %s2677_s3 = inlined_call_operand.vmem [shape: bf16[32,128], index: 3, kind: input, shape index: {}]   ;;  %s2678_s4 = inlined_call_operand.vmem [shape: bf16[32,128], index: 4, kind: input, shape index: {}]   ;;  %s2679_s5 = inlined_call_operand.vmem [shape: f32[1,128], index: 5, kind: input, shape index: {}]   ;;  %s2680_s6 = inlined_call_operand.vmem [shape: bf16[128,256], index: 6, kind: input, shape index: {}]   ;;  %s2681_s7 = inlined_call_operand.vmem [shape: f32[1,256], index: 7, kind: input, shape index: {}]   ;;  %s2682_s8 = inlined_call_operand.vmem [shape: bf16[256,128], index: 8, kind: input, shape index: {}]   ;;  %s2683_s9 = inlined_call_operand.vmem [shape: f32[1,128], index: 9, kind: input, shape index: {}]   ;;  %s2684_s10 = inlined_call_operand.vmem [shape: bf16[128,6], index: 10, kind: input, shape index: {}]   ;;  %s2685_s11 = inlined_call_operand.vmem [shape: f32[1,6], index: 11, kind: input, shape index: {}]   ;;  %s2686_s12 = inlined_call_operand.vmem [shape: bf16[32,128], index: 12, kind: input, shape index: {}]   ;;  %s2687_s13 = inlined_call_operand.vmem [shape: f32[1,128], index: 13, kind: input, shape index: {}]   ;;  %s2688_s14 = inlined_call_operand.vmem [shape: bf16[128,256], index: 14, kind: input, shape index: {}]   ;;  %s2689_s15 = inlined_call_operand.vmem [shape: f32[1,256], index: 15, kind: input, shape index: {}]   ;;  %s2690_s16 = inlined_call_operand.vmem [shape: bf16[256,128], index: 16, kind: input, shape index: {}]   ;;  %s2691_s17 = inlined_call_operand.vmem [shape: f32[1,128], index: 17, kind: input, shape index: {}]   ;;  %s2692_s18 = inlined_call_operand.vmem [shape: bf16[128,6], index: 18, kind: input, shape index: {}]   ;;  %s2693_s19 = inlined_call_operand.vmem [shape: f32[1,6], index: 19, kind: input, shape index: {}]   ;;  %s2694_s20 = inlined_call_operand.vmem [shape: f32[16,6], index: 20, kind: output, shape index: {}]  }
   0x1   :  { %2699 = sst [smem:[#allocation2_spill]] %s2674_s0 }
   0x2   :  { %2700 = sst [smem:[#allocation3_spill]] %s2675_s1  ;;  %s2307_s1 = smov 0  }
   0x3   :  { %2701 = sst [smem:[#allocation4_spill]] %s2676_s2 }
   0x4   :  { %2702 = sst [smem:[#allocation5_spill]] %s2677_s3 }
   0x5   :  { %2703 = sst [smem:[#allocation6_spill]] %s2678_s4 }
   0x6 LB: > { %s1831_s22 = sadd.s32 4294967295, %s2197_s1   ;;  %p1835_p0 = scmp.ge.s32.totalorder %s2197_s1, 1  ;;  %s2197_s1 = sphi %s2307_s1, %s30_s1  }
   0x7   : > { %p579_p1 = scmp.lt.s32.totalorder %s2197_s1, 3 }
   0x9   : > { %p580_p2 = pnand %p1835_p0, %p579_p1 }
   0xa   : > { %s2704_s2 = sld [smem:[#allocation6_spill]] (!%p580_p2)  ;;  %v2199_v1 = vmov (!%p580_p2), 0.0   ;;  %s2705_s26 = sld [smem:[#allocation5_spill]] (!%p580_p2)  ;;  %vm2200_vm0 = vmmov (!%p580_p2), 0   ;;  %v2091_v5 = vld [vmem:[%s2680_s6 + $0x4] ss:$8 sps:$4 sm:$0xff] (!%p580_p2)   ;;  %v810_v59 = vlaneseq (!%p580_p2) }
   0xb   : > { %583 = sbr.rel (%p580_p2) target bundleno = 1351 (0x547), region = 100  ;;  %2009 = vmatprep.subr.bf16.mxu0 (!%p580_p2), %v2199_v1  ;;  %2017 = vmatprep.subr.bf16.mxu1 (!%p580_p2), %v2199_v1  ;;  %p643_p3 = scmp.lt.s32.totalorder (!%p580_p2), %s1831_s22, 1  ;;  %vm683_vm1 = vcmask (!%p580_p2), 261120   ;;  %v2089_v6 = vld [vmem:[%s2680_s6] ss:$8 sps:$4 sm:$0xff] (!%p580_p2)   ;;  %v2201_v23 = vmov (!%p580_p2), 0  }
   0xc   : > { %2013 = vmatprep.mubr.msk.bf16.mxu0 (!%p580_p2), %vm2200_vm0, %v2199_v1  ;;  %2021 = vmatprep.mubr.msk.bf16.mxu1 (!%p580_p2), %vm2200_vm0, %v2199_v1  ;;  %s2706_s27 = sld [smem:[#allocation3_spill]] (!%p580_p2)  ;;  %v2094_v7 = vld [vmem:[%s2680_s6 + $0x14] ss:$8 sps:$4 sm:$0xff] (!%p580_p2)   ;;  %v2092_v10 = vld [vmem:[%s2680_s6 + $0x10] ss:$8 sps:$4 sm:$0xff] (!%p580_p2)   ;;  %v2113_v24 = vld [vmem:[%s2682_s8 + $0x40] sm:$0xff] (!%p580_p2)  }
   0xd   : > { %v2097_v11 = vld [vmem:[%s2680_s6 + $0x24] ss:$8 sps:$4 sm:$0xff] (!%p580_p2)   ;;  %v2095_v12 = vld [vmem:[%s2680_s6 + $0x20] ss:$8 sps:$4 sm:$0xff] (!%p580_p2)   ;;  %v2100_v13 = vld [vmem:[%s2680_s6 + $0x34] ss:$8 sps:$4 sm:$0xff] (!%p580_p2)   ;;  %2084 = vset.pattern.permute.xlu0 (!%p580_p2), %v2201_v23 }
   0xe   : > { %v2098_v14 = vld [vmem:[%s2680_s6 + $0x30] ss:$8 sps:$4 sm:$0xff] (!%p580_p2)   ;;  %v2103_v15 = vld [vmem:[%s2680_s6 + $0x44] ss:$8 sps:$4 sm:$0xff] (!%p580_p2)   ;;  %v2101_v16 = vld [vmem:[%s2680_s6 + $0x40] ss:$8 sps:$4 sm:$0xff] (!%p580_p2)  }
   0xf   : > { %v2106_v17 = vld [vmem:[%s2680_s6 + $0x54] ss:$8 sps:$4 sm:$0xff] (!%p580_p2)   ;;  %v2104_v18 = vld [vmem:[%s2680_s6 + $0x50] ss:$8 sps:$4 sm:$0xff] (!%p580_p2)   ;;  %v2109_v19 = vld [vmem:[%s2680_s6 + $0x64] ss:$8 sps:$4 sm:$0xff] (!%p580_p2)  }
  0x10   : > { %v2085_v0 = vld [vmem:[%s2704_s2] sm:$0xff] (!%p580_p2)   ;;  %v2087_v3 = vld [vmem:[%s2704_s2 + $0x8] sm:$0xff] (!%p580_p2)   ;;  %s2707_s2 = sld [smem:[#allocation2_spill]] (!%p580_p2)  ;;  %v2112_v21 = vld [vmem:[%s2680_s6 + $0x74] ss:$8 sps:$4 sm:$0xff] (!%p580_p2)   ;;  %v2478_v60 = vshrl.u32 (!%p580_p2), %v810_v59, 7 }
  0x11   : > { %v2086_v2 = vld [vmem:[%s2705_s26] sm:$0xff] (!%p580_p2)   ;;  %2010 = vmatpush3.bf16.msra.mxu0 (!%p580_p2), %v2085_v0  ;;  %v2088_v4 = vld [vmem:[%s2705_s26 + $0x8] sm:$0xff] (!%p580_p2)   ;;  %v2110_v22 = vld [vmem:[%s2680_s6 + $0x70] ss:$8 sps:$4 sm:$0xff] (!%p580_p2)   ;;  %vm1752_vm2 = vcmask (!%p580_p2), 48128  }
  0x12   : > { %2018 = vmatpush3.bf16.msra.mxu1 %v2086_v2  ;;  %2011 = vmatprep.subr.bf16.mxu0 %v2199_v1  ;;  %s2710_s22 = smov (!%p643_p3, %s1831_s22), 1  ;;  %v2107_v20 = vld [vmem:[%s2680_s6 + $0x60] ss:$8 sps:$4 sm:$0xff]   ;;  %v2117_v28 = vld [vmem:[%s2682_s8 + $0x50] sm:$0xff]   ;;  %v2119_v30 = vld [vmem:[%s2682_s8 + $0x58] sm:$0xff]   ;;  %v812_v61 = vsub.s32 0, %v2478_v60 }
  0x13   : > { %2019 = vmatprep.subr.bf16.mxu1 %v2199_v1  ;;  %s1836_s21 = sshll.u32 %s2710_s22, 2  ;;  %v2114_v25 = vld [vmem:[%s2682_s8] sm:$0xff]   ;;  %v2115_v26 = vld [vmem:[%s2682_s8 + $0x48] sm:$0xff]   ;;  %v2118_v29 = vld [vmem:[%s2682_s8 + $0x10] sm:$0xff]   ;;  %v816_v63 = vsub.s32 1, %v2478_v60  ;;  %s1838_s0 = sshll.u32 %s2710_s22, 3 }
  0x14   : > { %s650_s28 = scalar_lea.vmem %s2706_s27, %s1836_s21  ;;  %v2116_v27 = vld [vmem:[%s2682_s8 + $0x8] sm:$0xff]   ;;  %v2120_v31 = vld [vmem:[%s2682_s8 + $0x18] sm:$0xff]   ;;  %v2121_v32 = vld [vmem:[%s2682_s8 + $0x60] sm:$0xff]   ;;  %s658_s23 = scalar_lea.vmem %s2694_s20, %s1838_s0 }
  0x15   : > { %2012 = vmatpush3.bf16.msra.mxu0 %v2087_v3  ;;  %v2353_v8 = vld [vmem:[%s650_s28] sm:$0xf]  ;;  %v2123_v34 = vld [vmem:[%s2682_s8 + $0x68] sm:$0xff]   ;;  %v2125_v49 = vld [vmem:[%s2682_s8 + $0x70] sm:$0xff]  }
  0x16   : > { %2020 = vmatpush3.bf16.msra.mxu1 %v2088_v4  ;;  %s646_s26 = scalar_lea.vmem %s2707_s2, %s1836_s21  ;;  %900 = vmatprep.subr.bf16.mxu0 %v2091_v5  ;;  %v2122_v33 = vld [vmem:[%s2682_s8 + $0x20] sm:$0xff]   ;;  %v2124_v35 = vld [vmem:[%s2682_s8 + $0x28] sm:$0xff]   ;;  %v2126_v50 = vld [vmem:[%s2682_s8 + $0x30] sm:$0xff]   ;;  %s2708_s2 = sld [smem:[#allocation4_spill]] }
  0x17   : > { %v660_v9 = vld [vmem:[%s646_s26] sm:$0xf]  ;;  %1944 = vmatprep.subr.bf16.mxu1 %v2113_v24  ;;  %v2127_v51 = vld [vmem:[%s2682_s8 + $0x78] sm:$0xff]   ;;  %v2132_v54 = vld [vmem:[%s2684_s10 + $0x8] sm:$0xff]  }
  0x18   : > { %2014 = vmatmul.mubr.msk.bf16.vlgmr.msra.gmra.mrb[0].mxu0 %vm683_vm1, %v2353_v8  ;;  %v1846_v38 = vld [vmem:[%s2679_s5] ss:$0 sm:$0xff]  ;;  %v2128_v52 = vld [vmem:[%s2682_s8 + $0x38] sm:$0xff]   ;;  %v2136_v55 = vld [vmem:[%s2684_s10 + $0x10] sm:$0xff]  }
  0x19   : > { %2022 = vmatmul.mubr.msk.bf16.vlgmr.msra.gmra.mrb[0].mxu1 %vm683_vm1, %v660_v9  ;;  %901 = vmatpush1.bf16.msra.mxu0 %v2089_v6  ;;  %v2131_v53 = vld [vmem:[%s2684_s10] sm:$0xff]   ;;  %v2140_v56 = vld [vmem:[%s2684_s10 + $0x18] sm:$0xff]   ;;  %v2148_v58 = vld [vmem:[%s2684_s10 + $0x28] sm:$0xff]  }
  0x1a   : > { %902 = vmatprep.subr.bf16.mxu0 %v2094_v7  ;;  %932 = vmatprep.mubr.bf16.mxu0 %v2201_v23  ;;  %v2144_v57 = vld [vmem:[%s2684_s10 + $0x20] sm:$0xff]   ;;  %v2186_v60 = vld [vmem:[%s2692_s18 + $0x38] sm:$0xff]  }
  0x1b   : > { %1945 = vmatpush3.bf16.msra.mxu1 %v2114_v25  ;;  %v808_v62 = vld [vmem:[%s2681_s7] sm:$0x3]  ;;  %v2152_v25 = vld [vmem:[%s2684_s10 + $0x30] sm:$0xff]  }
  0x1c   : > { %1946 = vmatprep.subr.bf16.mxu1 %v2115_v26  ;;  %v813_v0 = vrot.slane %v808_v62, %v812_v61  ;;  %v817_v2 = vrot.slane %v808_v62, %v816_v63  ;;  %v2149_v24 = vld [vmem:[%s2688_s14 + $0x40] ss:$8 sps:$4 sm:$0xff]   ;;  %v2155_v26 = vld [vmem:[%s2688_s14 + $0x54] ss:$8 sps:$4 sm:$0xff]   ;;  %s654_s21 = scalar_lea.vmem %s2708_s2, %s1838_s0 }
  0x1d   : > { %903 = vmatpush1.bf16.msra.mxu0 %v2092_v10  ;;  %v2172_v59 = vld [vmem:[%s2690_s16 + $0x20] sm:$0xff]   ;;  %v2173_v62 = vld [vmem:[%s2690_s16 + $0x68] sm:$0xff]  }
  0x1e   : > { %904 = vmatprep.subr.bf16.mxu0 %v2097_v11 }
  0x1f   : > { %1947 = vmatpush3.bf16.msra.mxu1 %v2116_v27  ;;  %v2153_v27 = vld [vmem:[%s2688_s14 + $0x50] ss:$8 sps:$4 sm:$0xff]  }
  0x20   : > { %1948 = vmatprep.subr.bf16.mxu1 %v2117_v28  ;;  %v2156_v28 = vld [vmem:[%s2684_s10 + $0x38] sm:$0xff]  }
  0x21   : > { %905 = vmatpush1.bf16.msra.mxu0 %v2095_v12 }
  0x22   : > { %906 = vmatprep.subr.bf16.mxu0 %v2100_v13  ;;  %v2129_v13 = vld [vmem:[%s2686_s12] sm:$0xff]  }
  0x23   : > { %1949 = vmatpush3.bf16.msra.mxu1 %v2118_v29  ;;  %v2159_v29 = vld [vmem:[%s2688_s14 + $0x64] ss:$8 sps:$4 sm:$0xff]  }
  0x24   : > { %1950 = vmatprep.subr.bf16.mxu1 %v2119_v30  ;;  %v2157_v30 = vld [vmem:[%s2688_s14 + $0x60] ss:$8 sps:$4 sm:$0xff]  }
  0x25   : > { %907 = vmatpush1.bf16.msra.mxu0 %v2098_v14 }
  0x26   : > { %908 = vmatprep.subr.bf16.mxu0 %v2103_v15  ;;  %v2130_v15 = vld [vmem:[%s2686_s12 + $0x8] sm:$0xff]  }
  0x27   : > { %1951 = vmatpush3.bf16.msra.mxu1 %v2120_v31  ;;  %v2162_v31 = vld [vmem:[%s2688_s14 + $0x74] ss:$8 sps:$4 sm:$0xff]  }
  0x28   : > { %1952 = vmatprep.subr.bf16.mxu1 %v2121_v32  ;;  %v2160_v32 = vld [vmem:[%s2688_s14 + $0x70] ss:$8 sps:$4 sm:$0xff]  }
  0x29   : > { %909 = vmatpush1.bf16.msra.mxu0 %v2101_v16  ;;  %v2135_v16 = vld [vmem:[%s2688_s14 + $0x4] ss:$8 sps:$4 sm:$0xff]  }
  0x2a   : > { %910 = vmatprep.subr.bf16.mxu0 %v2106_v17  ;;  %v2133_v17 = vld [vmem:[%s2688_s14] ss:$8 sps:$4 sm:$0xff]  }
  0x2b   : > { %1953 = vmatpush3.bf16.msra.mxu1 %v2122_v33  ;;  %v2163_v33 = vld [vmem:[%s2690_s16 + $0x40] sm:$0xff]  }
  0x2c   : > { %1954 = vmatprep.subr.bf16.mxu1 %v2123_v34 }
  0x2d   : > { %911 = vmatpush1.bf16.msra.mxu0 %v2104_v18  ;;  %v2139_v18 = vld [vmem:[%s2688_s14 + $0x14] ss:$8 sps:$4 sm:$0xff]  }
  0x2e   : > { %912 = vmatprep.subr.bf16.mxu0 %v2109_v19  ;;  %v2137_v19 = vld [vmem:[%s2688_s14 + $0x10] ss:$8 sps:$4 sm:$0xff]  }
  0x2f   : > { %1955 = vmatpush3.bf16.msra.mxu1 %v2124_v35  ;;  %v1863_v35 = vld [vmem:[%s2683_s9] ss:$0 sm:$0xff] }
  0x30   : > { %1956 = vmatprep.subr.bf16.mxu1 %v2125_v49 }
  0x31   : > { %913 = vmatpush1.bf16.msra.mxu0 %v2107_v20  ;;  %v2143_v20 = vld [vmem:[%s2688_s14 + $0x24] ss:$8 sps:$4 sm:$0xff]  }
  0x32   : > { %914 = vmatprep.subr.bf16.mxu0 %v2112_v21  ;;  %v2141_v21 = vld [vmem:[%s2688_s14 + $0x20] ss:$8 sps:$4 sm:$0xff]  }
  0x33   : > { %1957 = vmatpush3.bf16.msra.mxu1 %v2126_v50 }
  0x34   : > { %1958 = vmatprep.subr.bf16.mxu1 %v2127_v51 }
  0x35   : > { %915 = vmatpush1.bf16.msra.mxu0 %v2110_v22  ;;  %v2145_v22 = vld [vmem:[%s2688_s14 + $0x30] ss:$8 sps:$4 sm:$0xff]  }
  0x36   : > { %2025 = vmatprep.subr.bf16.mxu0 %v2199_v1 }
  0x37   : > { %1959 = vmatpush3.bf16.msra.mxu1 %v2128_v52  ;;  %v2166_v52 = vld [vmem:[%s2690_s16 + $0x8] sm:$0xff]  }
  0x38   : > { %2045 = vmatprep.subr.bf16.mxu1 %v2199_v1 }
  0xeb   : > { %v721_v36 = vpop.f32.mrb[0].mxu0 }
  0xec   : > { %v776_v37 = vpop.f32.mrb[0].mxu1  ;;  %v2015_v39 = vpop.f32.mrb[1].mxu0 }
  0xed   : > { %v777_v40 = vadd.f32 %v776_v37, %v721_v36  ;;  %v2023_v41 = vpop.f32.mrb[1].mxu1  ;;  %v724_v42 = vpop.f32.mrb[2].mxu0 }
  0xee   : > { %v779_v43 = vpop.f32.mrb[2].mxu1  ;;  %v2016_v44 = vpop.f32.mrb[3].mxu0  ;;  %v1890_v42 = vld [vmem:[%s2687_s13] ss:$0 sm:$0xff] }
  0xef   : > { %v789_v45 = vadd.f32 %v1846_v38, %v777_v40  ;;  %v2024_v46 = vpop.f32.mrb[3].mxu1  ;;  %v2164_v43 = vld [vmem:[%s2690_s16] sm:$0xff]  }
  0xf0   : > { %v2165_v46 = vld [vmem:[%s2690_s16 + $0x48] sm:$0xff]  }
  0xf1   : > { %v790_v47 = vmax.f32 %v789_v45, 0.0 }
  0xf3   : > { %v791_v48 = vpack.c.bf16 %v790_v47, %v790_v47 }
  0xf5   : > { %933 = vmatmul.mubr.bf16.vlgmr.msra.gmra.mrb[4].mxu0 %v791_v48 }
  0xf6   : > { %2041 = vmatprep.mubr.msk.bf16.mxu0 %vm2200_vm0, %v2199_v1  ;;  %2026 = vmatpush3.bf16.msra.mxu0 %v2131_v53  ;;  %v2167_v53 = vld [vmem:[%s2690_s16 + $0x50] sm:$0xff]  }
  0xf7   : > { %2027 = vmatprep.subr.bf16.mxu0 %v2199_v1 }
  0xfa   : > { %2028 = vmatpush3.bf16.msra.mxu0 %v2132_v54 }
  0xfb   : > { %2029 = vmatprep.subr.bf16.mxu0 %v2199_v1 }
  0xfe   : > { %2030 = vmatpush3.bf16.msra.mxu0 %v2136_v55  ;;  %v2168_v55 = vld [vmem:[%s2690_s16 + $0x10] sm:$0xff]  }
  0xff   : > { %2031 = vmatprep.subr.bf16.mxu0 %v2199_v1 }
 0x102   : > { %2032 = vmatpush3.bf16.msra.mxu0 %v2140_v56  ;;  %v2169_v56 = vld [vmem:[%s2690_s16 + $0x58] sm:$0xff]  }
 0x103   : > { %2033 = vmatprep.subr.bf16.mxu0 %v2199_v1 }
 0x106   : > { %2034 = vmatpush3.bf16.msra.mxu0 %v2144_v57  ;;  %v2170_v57 = vld [vmem:[%s2690_s16 + $0x18] sm:$0xff]  }
 0x107   : > { %2035 = vmatprep.subr.bf16.mxu0 %v2199_v1 }
 0x10a   : > { %2036 = vmatpush3.bf16.msra.mxu0 %v2148_v58  ;;  %v2171_v58 = vld [vmem:[%s2690_s16 + $0x60] sm:$0xff]  }
 0x10b   : > { %2037 = vmatprep.subr.bf16.mxu0 %v2199_v1 }
 0x10e   : > { %2038 = vmatpush3.bf16.msra.mxu0 %v2152_v25 }
 0x10f   : > { %2039 = vmatprep.subr.bf16.mxu0 %v2199_v1 }
 0x112   : > { %2040 = vmatpush3.bf16.msra.mxu0 %v2156_v28 }
 0x113   : > { %1978 = vmatprep.subr.bf16.mxu0 %v2163_v33 }
 0x1c8   : > { %v934_v3 = vpop.f32.mrb[4].mxu0 }
 0x1c9   : > { %v935_v4 = vadd.f32 %v934_v3, %v813_v0  ;;  %v936_v5 = vpop.f32.mrb[5].mxu0  ;;  %v2174_v0 = vld [vmem:[%s2690_s16 + $0x28] sm:$0xff]   ;;  %v2176_v3 = vld [vmem:[%s2690_s16 + $0x30] sm:$0xff]  }
 0x1ca   : > { %v937_v6 = vadd.f32 %v936_v5, %v817_v2  ;;  %v938_v7 = vpop.f32.mrb[6].mxu0  ;;  %v2175_v2 = vld [vmem:[%s2690_s16 + $0x70] sm:$0xff]   ;;  %v2178_v5 = vld [vmem:[%s2690_s16 + $0x38] sm:$0xff]  }
 0x1cb   : > { %v941_v9 = vmax.f32 %v935_v4, 0.0  ;;  %v939_v10 = vpop.f32.mrb[7].mxu0  ;;  %v2177_v4 = vld [vmem:[%s2690_s16 + $0x78] sm:$0xff]   ;;  %v2180_v7 = vld [vmem:[%s2692_s18 + $0x8] sm:$0xff]  }
 0x1cc   : > { %v942_v11 = vmax.f32 %v937_v6, 0.0  ;;  %v2179_v6 = vld [vmem:[%s2692_s18] sm:$0xff]   ;;  %v2182_v10 = vld [vmem:[%s2692_s18 + $0x18] sm:$0xff]  }
 0x1cd   : > { %v943_v14 = vpack.c.bf16 %v941_v9, %v941_v9  ;;  %v2181_v9 = vld [vmem:[%s2692_s18 + $0x10] sm:$0xff]  }
 0x1ce   : > { %v944_v12 = vpack.c.bf16 %v942_v11, %v942_v11  ;;  %v2183_v11 = vld [vmem:[%s2692_s18 + $0x20] sm:$0xff]  }
 0x1d0   : > { %1112 = vmatprep.mubr.bf16.mxu1 %v944_v12  ;;  %v2184_v12 = vld [vmem:[%s2692_s18 + $0x28] sm:$0xff]  }
 0x1d1   : > { %1113 = vmatmul.mubr.bf16.vlgmr.msra.gmra.mrb[4].mxu1 %v943_v14 }
 0x1d2   : > { %2046 = vmatpush3.bf16.msra.mxu1 %v2129_v13  ;;  %2049 = vmatprep.mubr.msk.bf16.mxu1 %vm2200_vm0, %v2199_v1  ;;  %v1320_v13 = vld [vmem:[%s2689_s15] sm:$0x3] }
 0x1d3   : > { %2047 = vmatprep.subr.bf16.mxu1 %v2199_v1 }
 0x1d6   : > { %2048 = vmatpush3.bf16.msra.mxu1 %v2130_v15 }
 0x1d7   : > { %1412 = vmatprep.subr.bf16.mxu1 %v2135_v16 }
 0x1d9   : > { %2050 = vmatmul.mubr.msk.bf16.vlgmr.msra.gmra.mrb[8].mxu1 %vm683_vm1, %v2353_v8  ;;  %v2147_v8 = vld [vmem:[%s2688_s14 + $0x34] ss:$8 sps:$4 sm:$0xff]  }
 0x1da   : > { %1413 = vmatpush1.bf16.msra.mxu1 %v2133_v17  ;;  %1444 = vmatprep.mubr.bf16.mxu1 %v2201_v23  ;;  %v2151_v23 = vld [vmem:[%s2688_s14 + $0x44] ss:$8 sps:$4 sm:$0xff]   ;;  %v1325_v17 = vrot.slane %v1320_v13, %v812_v61  ;;  %v2185_v61 = vld [vmem:[%s2692_s18 + $0x30] sm:$0xff]  }
 0x1db   : > { %1414 = vmatprep.subr.bf16.mxu1 %v2139_v18 }
 0x1de   : > { %1415 = vmatpush1.bf16.msra.mxu1 %v2137_v19  ;;  %v1329_v19 = vrot.slane %v1320_v13, %v816_v63  ;;  %v662_v63 = vld [vmem:[%s654_s21] sm:$0xff] }
 0x1df   : > { %1416 = vmatprep.subr.bf16.mxu1 %v2143_v20  ;;  %1748 = vperm.xlu0 %2084, %v662_v63  }
 0x1e2   : > { %1417 = vmatpush1.bf16.msra.mxu1 %v2141_v21 }
 0x1e3   : > { %1418 = vmatprep.subr.bf16.mxu1 %v2147_v8 }
 0x1e6   : > { %1419 = vmatpush1.bf16.msra.mxu1 %v2145_v22 }
 0x1e7   : > { %1420 = vmatprep.subr.bf16.mxu1 %v2151_v23 }
 0x1ea   : > { %1421 = vmatpush1.bf16.msra.mxu1 %v2149_v24 }
 0x1eb   : > { %1422 = vmatprep.subr.bf16.mxu1 %v2155_v26 }
 0x1ee   : > { %1423 = vmatpush1.bf16.msra.mxu1 %v2153_v27 }
 0x1ef   : > { %1424 = vmatprep.subr.bf16.mxu1 %v2159_v29 }
 0x1f2   : > { %1425 = vmatpush1.bf16.msra.mxu1 %v2157_v30  ;;  %v1910_v30 = vld [vmem:[%s2691_s17] ss:$0 sm:$0xff] }
 0x1f3   : > { %1426 = vmatprep.subr.bf16.mxu1 %v2162_v31 }
 0x1f6   : > { %1427 = vmatpush1.bf16.msra.mxu1 %v2160_v32 }
 0x1f7   : > { %2053 = vmatprep.subr.bf16.mxu1 %v2199_v1 }
 0x2a4   : > { %v1960_v34 = vpop.f32.mrb[4].mxu1 }
 0x2a5   : > { %v1961_v36 = vpop.f32.mrb[5].mxu1 }
 0x2a6   : > { %v1962_v37 = vadd.f32 %v1961_v36, %v1960_v34  ;;  %v1963_v38 = vpop.f32.mrb[6].mxu1 }
 0x2a7   : > { %v1964_v39 = vpop.f32.mrb[7].mxu1 }
 0x2a8   : > { %v1115_v40 = vadd.f32 %v1962_v37, %v1863_v35  ;;  %v1880_v37 = vld [vmem:[%s2685_s11] ss:$0 sm:$0xff] }
 0x2aa   : > { %v1120_v41 = vmax.f32 %v1115_v40, 0.0 }
 0x2ac   : > { %v1121_v44 = vpack.c.bf16 %v1120_v41, %v1120_v41  ;;  %v1296_v45 = vpop.f32.mrb[8].mxu1 }
 0x2ad   : > { %v1297_v47 = vadd.f32 %v1890_v42, %v1296_v45  ;;  %v2051_v48 = vpop.f32.mrb[9].mxu1  ;;  %v1927_v42 = vld [vmem:[%s2693_s19] ss:$0 sm:$0xff] }
 0x2ae   : > { %2042 = vmatmul.mubr.bf16.vlgmr.msra.gmra.mrb[8].mxu0 %v1121_v44  ;;  %v1299_v49 = vpop.f32.mrb[10].mxu1  ;;  %v1749_v48 = vpop.permute.xlu0 %1748 }
 0x2af   : > { %v1302_v50 = vmax.f32 %v1297_v47, 0.0  ;;  %v2052_v51 = vpop.f32.mrb[11].mxu1  ;;  %1979 = vmatpush3.bf16.msra.mxu0 %v2164_v43 }
 0x2b0   : > { %1980 = vmatprep.subr.bf16.mxu0 %v2165_v46 }
 0x2b1   : > { %v1303_v54 = vpack.c.bf16 %v1302_v50, %v1302_v50 }
 0x2b3   : > { %1445 = vmatmul.mubr.bf16.vlgmr.msra.gmra.mrb[12].mxu1 %v1303_v54  ;;  %1981 = vmatpush3.bf16.msra.mxu0 %v2166_v52 }
 0x2b4   : > { %1982 = vmatprep.subr.bf16.mxu0 %v2167_v53  ;;  %2069 = vmatprep.mubr.msk.bf16.mxu1 %vm2200_vm0, %v2199_v1 }
 0x2b5   : > { %2054 = vmatpush3.bf16.msra.mxu1 %v2179_v6 }
 0x2b6   : > { %2055 = vmatprep.subr.bf16.mxu1 %v2199_v1 }
 0x2b7   : > { %1983 = vmatpush3.bf16.msra.mxu0 %v2168_v55 }
 0x2b8   : > { %1984 = vmatprep.subr.bf16.mxu0 %v2169_v56 }
 0x2b9   : > { %2056 = vmatpush3.bf16.msra.mxu1 %v2180_v7 }
 0x2ba   : > { %2057 = vmatprep.subr.bf16.mxu1 %v2199_v1 }
 0x2bb   : > { %1985 = vmatpush3.bf16.msra.mxu0 %v2170_v57 }
 0x2bc   : > { %1986 = vmatprep.subr.bf16.mxu0 %v2171_v58 }
 0x2bd   : > { %2058 = vmatpush3.bf16.msra.mxu1 %v2181_v9 }
 0x2be   : > { %2059 = vmatprep.subr.bf16.mxu1 %v2199_v1 }
 0x2bf   : > { %1987 = vmatpush3.bf16.msra.mxu0 %v2172_v59 }
 0x2c0   : > { %1988 = vmatprep.subr.bf16.mxu0 %v2173_v62 }
 0x2c1   : > { %2060 = vmatpush3.bf16.msra.mxu1 %v2182_v10 }
 0x2c2   : > { %2061 = vmatprep.subr.bf16.mxu1 %v2199_v1 }
 0x2c3   : > { %1989 = vmatpush3.bf16.msra.mxu0 %v2174_v0 }
 0x2c4   : > { %1990 = vmatprep.subr.bf16.mxu0 %v2175_v2 }
 0x2c5   : > { %2062 = vmatpush3.bf16.msra.mxu1 %v2183_v11 }
 0x2c6   : > { %2063 = vmatprep.subr.bf16.mxu1 %v2199_v1 }
 0x2c7   : > { %1991 = vmatpush3.bf16.msra.mxu0 %v2176_v3 }
 0x2c8   : > { %1992 = vmatprep.subr.bf16.mxu0 %v2177_v4 }
 0x2c9   : > { %2064 = vmatpush3.bf16.msra.mxu1 %v2184_v12 }
 0x2ca   : > { %2065 = vmatprep.subr.bf16.mxu1 %v2199_v1 }
 0x2cb   : > { %1993 = vmatpush3.bf16.msra.mxu0 %v2178_v5 }
 0x2cd   : > { %2066 = vmatpush3.bf16.msra.mxu1 %v2185_v61 }
 0x2ce   : > { %2067 = vmatprep.subr.bf16.mxu1 %v2199_v1 }
 0x2d1   : > { %2068 = vmatpush3.bf16.msra.mxu1 %v2186_v60 }
 0x381   : > { %v1227_v14 = vpop.f32.mrb[8].mxu0 }
 0x382   : > { %v2043_v15 = vpop.f32.mrb[9].mxu0  ;;  %v1228_v38 = vadd.f32 %v1880_v37, %v1227_v14 }
 0x383   : > { %v1230_v16 = vpop.f32.mrb[10].mxu0 }
 0x384   : > { %v2044_v18 = vpop.f32.mrb[11].mxu0  ;;  %v1889_v39 = vmul.f32 -1.442695, %v1228_v38 }
 0x386   : > { %v1446_v20 = vpop.f32.mrb[12].mxu1  ;;  %2187 = vpow2.f32 %v1889_v39 }
 0x387   : > { %v1447_v21 = vadd.f32 %v1446_v20, %v1325_v17  ;;  %v1448_v8 = vpop.f32.mrb[13].mxu1 }
 0x388   : > { %v1449_v22 = vadd.f32 %v1448_v8, %v1329_v19  ;;  %v1450_v23 = vpop.f32.mrb[14].mxu1 }
 0x389   : > { %v1453_v24 = vmax.f32 %v1447_v21, 0.0  ;;  %v1451_v25 = vpop.f32.mrb[15].mxu1 }
 0x38a   : > { %v1454_v26 = vmax.f32 %v1449_v22, 0.0 }
 0x38b   : > { %v1455_v28 = vpack.c.bf16 %v1453_v24, %v1453_v24 }
 0x38c   : > { %v1456_v27 = vpack.c.bf16 %v1454_v26, %v1454_v26 }
 0x38e   : > { %1624 = vmatprep.mubr.bf16.mxu0 %v1456_v27 }
 0x38f   : > { %1625 = vmatmul.mubr.bf16.vlgmr.msra.gmra.mrb[12].mxu0 %v1455_v28 }
 0x390   : > { %v2188_v40 = vpop.eup %2187 }
 0x391   : > { %v1236_v41 = vadd.f32 1.0, %v2188_v40 }
 0x393   : > { %2189 = vrcp.f32 %v1236_v41 }
 0x39d   : > { %v2190_v46 = vpop.eup %2189 }
 0x462   : > { %v1994_v29 = vpop.f32.mrb[12].mxu0 }
 0x463   : > { %v1995_v31 = vpop.f32.mrb[13].mxu0 }
 0x464   : > { %v1996_v1 = vadd.f32 %v1995_v31, %v1994_v29  ;;  %v1997_v32 = vpop.f32.mrb[14].mxu0 }
 0x465   : > { %v1998_v33 = vpop.f32.mrb[15].mxu0 }
 0x466   : > { %v1627_v34 = vadd.f32 %v1996_v1, %v1910_v30 }
 0x468   : > { %v1632_v35 = vmax.f32 %v1627_v34, 0.0 }
 0x46a   : > { %v1633_v36 = vpack.c.bf16 %v1632_v35, %v1632_v35 }
 0x46c   : > { %2070 = vmatmul.mubr.bf16.vlgmr.msra.gmra.mrb[16].mxu1 %v1633_v36 }
 0x53f   : > { %v1739_v43 = vpop.f32.mrb[16].mxu1 }
 0x540   : > { %v1740_v44 = vadd.f32 %v1927_v42, %v1739_v43  ;;  %v2071_v45 = vpop.f32.mrb[17].mxu1 }
 0x541   : > { %v1742_v47 = vpop.f32.mrb[18].mxu1 }
 0x542   : > { %v2072_v49 = vpop.f32.mrb[19].mxu1  ;;  %v1745_v50 = vmul.f32 %v2190_v46, %v1740_v44 }
 0x544   : > { %v1751_v51 = vmul.f32 %v1749_v48, %v1745_v50 }
 0x546   : > { %1753 = vst.msk [vmem:[%s658_s23] sm:$0xff] %vm1752_vm2, %v1751_v51 }
 0x547 PF: > { %s30_s1 = sadd.s32 1, %s2197_s1  }
 0x548   : > { %p27_p4 = scmp.ge.s32.totalorder %s30_s1, 4  }
 0x54a   :  { %29 = sbr.rel (!%p27_p4) target bundleno = 6 (0x6), region = 136 }

</bundles_post_ra>
